<compile_context>
chip_gen: v7x
topology: tpu7x:2x2x1
jax: 0.10.0
libtpu: 0.0.40
codegen_flags: <defaults>
</compile_context>

<pallas_src>
import jax
import jax.numpy as jnp
from jax.experimental import pallas as pl
from jax.experimental.pallas import tpu as pltpu

# small, module-consistent shapes
B = 2            # graphs in batch
N = 8            # nodes per graph
H = 32           # hiddim
NH = N * H       # 256-lane minor dim (node index i folded with features)
NUM_LAYER = 3    # subggnn layers (module default 6; kept small)
NUM_TASKS = 1
OUT_PAD = 128    # lane-dense output width (sliced to NUM_TASKS outside the kernel)

# ---- static column offsets into the packed parameter operands (all slabs 128-aligned) ----
# stack A : rows = H
CA_T0 = 0                      # tile(w0, (1, N))               [H, NH]
CA_O2 = NH                     # wo2 zero-padded to OUT_PAD     [H, OUT_PAD]
WCOLS_A = NH + OUT_PAD         # 384

# stack B : rows = NH (block-diagonal / row-stacked weights)
CB_T1 = 0                      # blockdiag(w1)                  [NH, NH]


def cb_c1(l):                  # blockdiag(wc1[l])
    return NH * (1 + l)


def cb_c2(l):                  # blockdiag(wc2[l])
    return NH * (1 + NUM_LAYER + l)


CB_P1 = NH * (1 + 2 * NUM_LAYER)       # blockdiag(wp1)          1792
CB_P2 = CB_P1 + NH                     # blockdiag(wp2)          2048
CB_O1 = CB_P2 + NH                     # tile(wo1,(N,1))/N       2304  (npool mean fused in)
WCOLS_B = CB_O1 + OUT_PAD              # 2432

# bias row
BB_T0 = 0
BB_T1 = NH


def bb_c1(l):
    return NH * (2 + l)


def bb_c2(l):
    return NH * (2 + NUM_LAYER + l)


BB_P1 = NH * (2 + 2 * NUM_LAYER)       # 2048
BB_P2 = BB_P1 + NH                     # 2304
BB_O1 = BB_P2 + NH                     # 2560 (128-aligned, width H)
BB_O2 = BB_O1 + OUT_PAD                # 2688
BCOLS = BB_O2 + OUT_PAD                # 2816


def sp_kernel(x_ref, xrow_ref, arep_ref, yd_ref, wa_ref, wb_ref, b_ref, out_ref):
    # Per grid step: one graph b.
    #   x_ref    [1, N, H]      node embeddings
    #   xrow_ref [1, 1, NH]     same, lane-dense (node index folded into lanes)
    #   arep_ref [1, N, N, NH]  arep[0,k,j,i*H+h] = A[b,j,k,h]   (edge emb, j-major, replicated over i)
    #   yd_ref   [1, N, NH]     yd[0,j,i*H+h]    = Xemb[b,i,j,h] (tuple emb, j-major, lane-dense)
    #   wa_ref   [H,  WCOLS_A]  lane-packed H-row weights
    #   wb_ref   [NH, WCOLS_B]  lane-packed NH-row (block-diag / stacked) weights
    #   b_ref    [1,  BCOLS]    lane-packed biases
    #   out_ref  [1, 1, OUT_PAD]
    f32 = jnp.float32

    # ---- tupleinit:  Yd[j, i*H+h] = lin0(x)[j,h] * lin1(x)[i,h] * Xemb[b,i,j,h] ----
    # lin0 replicated over i via a pre-tiled weight; lin1 via a block-diag weight on lane-dense x.
    x0r = (jnp.dot(x_ref[0], wa_ref[:, CA_T0:CA_T0 + NH], preferred_element_type=f32)
           + b_ref[:, BB_T0:BB_T0 + NH])                                    # [N, NH]
    x1r = (jnp.dot(xrow_ref[0], wb_ref[:, CB_T1:CB_T1 + NH], preferred_element_type=f32)
           + b_ref[:, BB_T1:BB_T1 + NH])                                    # [1, NH]
    Yd = x0r * x1r * yd_ref[0]                                              # [N, NH]

    # ---- NUM_LAYER dense subgraph-conv layers with residual ----
    # Hot loop: full-lane FMAs; A side is a plain VMEM load (hoisted/replicated in the wrapper),
    # Y side is one sublane-broadcast of a single row per k.
    for l in range(NUM_LAYER):
        t = arep_ref[0, 0] * Yd[0:1, :]
        for k in range(1, N):
            t = t + arep_ref[0, k] * Yd[k:k + 1, :]                         # [N, NH]
        c1, c2 = cb_c1(l), cb_c2(l)
        t = jnp.maximum(
            jnp.dot(t, wb_ref[:, c1:c1 + NH], preferred_element_type=f32)
            + b_ref[:, bb_c1(l):bb_c1(l) + NH], 0.0)
        t = (jnp.dot(t, wb_ref[:, c2:c2 + NH], preferred_element_type=f32)
             + b_ref[:, bb_c2(l):bb_c2(l) + NH])
        Yd = Yd + t                                                         # residual

    # ---- lpool: max over the second tuple index j (sublane reduce, stays lane-dense) ----
    xp = jnp.max(Yd, axis=0, keepdims=True)                                 # [1, NH]

    # ---- poolmlp (2 layers, tailact=True), per-node via block-diag weights ----
    xp = jnp.maximum(
        jnp.dot(xp, wb_ref[:, CB_P1:CB_P1 + NH], preferred_element_type=f32)
        + b_ref[:, BB_P1:BB_P1 + NH], 0.0)
    xp = jnp.maximum(
        jnp.dot(xp, wb_ref[:, CB_P2:CB_P2 + NH], preferred_element_type=f32)
        + b_ref[:, BB_P2:BB_P2 + NH], 0.0)

    # ---- npool (mean over nodes, fused into pred_lin layer 1) + pred_lin ----
    hg = jnp.maximum(
        jnp.dot(xp, wb_ref[:, CB_O1:CB_O1 + H], preferred_element_type=f32)
        + b_ref[:, BB_O1:BB_O1 + H], 0.0)                                   # [1, H]
    out = (jnp.dot(hg, wa_ref[:, CA_O2:CA_O2 + OUT_PAD], preferred_element_type=f32)
           + b_ref[:, BB_O2:BB_O2 + OUT_PAD])                               # [1, OUT_PAD]
    out_ref[0] = out


def _block_diag(w):
    # [H, H] -> [NH, NH] block-diagonal (per-node copy of w); built by XLA in the wrapper.
    return jnp.kron(jnp.eye(N, dtype=w.dtype), w)


def _pack_params(params):
    # stack A (H rows)
    wa = jnp.zeros((H, WCOLS_A), jnp.float32)
    wa = wa.at[:, CA_T0:CA_T0 + NH].set(jnp.tile(params['w0'], (1, N)))
    wa = wa.at[:, CA_O2:CA_O2 + NUM_TASKS].set(params['wo2'])
    # stack B (NH rows)
    wb = jnp.zeros((NH, WCOLS_B), jnp.float32)
    wb = wb.at[:, CB_T1:CB_T1 + NH].set(_block_diag(params['w1']))
    for l in range(NUM_LAYER):
        wb = wb.at[:, cb_c1(l):cb_c1(l) + NH].set(_block_diag(params['wc1'][l]))
        wb = wb.at[:, cb_c2(l):cb_c2(l) + NH].set(_block_diag(params['wc2'][l]))
    wb = wb.at[:, CB_P1:CB_P1 + NH].set(_block_diag(params['wp1']))
    wb = wb.at[:, CB_P2:CB_P2 + NH].set(_block_diag(params['wp2']))
    wb = wb.at[:, CB_O1:CB_O1 + H].set(jnp.tile(params['wo1'], (N, 1)) / N)   # npool mean fused
    # bias row
    bb = jnp.zeros((1, BCOLS), jnp.float32)
    bb = bb.at[:, BB_T0:BB_T0 + NH].set(jnp.tile(params['b0'], (1, N)))
    bb = bb.at[:, BB_T1:BB_T1 + NH].set(jnp.tile(params['b1'], (1, N)))
    for l in range(NUM_LAYER):
        bb = bb.at[:, bb_c1(l):bb_c1(l) + NH].set(jnp.tile(params['bc1'][l], (1, N)))
        bb = bb.at[:, bb_c2(l):bb_c2(l) + NH].set(jnp.tile(params['bc2'][l], (1, N)))
    bb = bb.at[:, BB_P1:BB_P1 + NH].set(jnp.tile(params['bp1'], (1, N)))
    bb = bb.at[:, BB_P2:BB_P2 + NH].set(jnp.tile(params['bp2'], (1, N)))
    bb = bb.at[:, BB_O1:BB_O1 + H].set(params['bo1'])
    bb = bb.at[:, BB_O2:BB_O2 + NUM_TASKS].set(params['bo2'])
    return wa, wb, bb


def sp_forward(params, x_idx, A_idx, X_idx):
    # embedding gathers (glue), with the j-major layout folded into the gather indices
    x2d = jnp.take(params['emb_x'], x_idx, axis=0)                          # [B, N, H]
    xrow = x2d.reshape(B, 1, NH)                                            # lane-dense copy of x
    A_T = jnp.take(params['emb_ea'], jnp.swapaxes(A_idx, 1, 2), axis=0)     # [B, Nk, Nj, H]
    arep = jnp.broadcast_to(A_T[:, :, :, None, :],
                            (B, N, N, N, H)).reshape(B, N, N, NH)           # replicated over i
    yd = jnp.take(params['emb_tf'], jnp.swapaxes(X_idx, 1, 2), axis=0).reshape(B, N, NH)

    wa, wb, bb = _pack_params(params)

    flops = B * (2 * N * H * NH + 2 * NH * NH + 2 * N * NH
                 + NUM_LAYER * (2 * N * N * NH + 2 * 2 * N * NH * NH + 4 * N * NH)
                 + 2 * 2 * NH * NH + 2 * NH * H + 2 * H * OUT_PAD)
    bytes_accessed = 4 * (x2d.size + xrow.size + arep.size + yd.size
                          + wa.size + wb.size + bb.size + B * OUT_PAD)

    out = pl.pallas_call(
        sp_kernel,
        out_shape=jax.ShapeDtypeStruct((B, 1, OUT_PAD), jnp.float32),
        grid=(B,),
        in_specs=[
            pl.BlockSpec((1, N, H), lambda b: (b, 0, 0)),
            pl.BlockSpec((1, 1, NH), lambda b: (b, 0, 0)),
            pl.BlockSpec((1, N, N, NH), lambda b: (b, 0, 0, 0)),
            pl.BlockSpec((1, N, NH), lambda b: (b, 0, 0)),
            pl.BlockSpec((H, WCOLS_A), lambda b: (0, 0)),
            pl.BlockSpec((NH, WCOLS_B), lambda b: (0, 0)),
            pl.BlockSpec((1, BCOLS), lambda b: (0, 0)),
        ],
        out_specs=pl.BlockSpec((1, 1, OUT_PAD), lambda b: (b, 0, 0)),
        compiler_params=pltpu.CompilerParams(dimension_semantics=("parallel",)),
        cost_estimate=pl.CostEstimate(flops=flops, transcendentals=0,
                                      bytes_accessed=bytes_accessed),
    )(x2d, xrow, arep, yd, wa, wb, bb)
    return out[:, 0, :NUM_TASKS]


def reference(params, x_idx, A_idx, X_idx):
    x = params['emb_x'][x_idx]
    A = params['emb_ea'][A_idx]
    X = params['emb_tf'][X_idx]
    x0 = x @ params['w0'] + params['b0']
    x1 = x @ params['w1'] + params['b1']
    X = x0[:, None, :, :] * x1[:, :, None, :] * X
    for l in range(NUM_LAYER):
        tX = jnp.einsum('bjkh,bikh->bijh', A, X)
        t = jnp.maximum(tX @ params['wc1'][l] + params['bc1'][l], 0.0)
        t = t @ params['wc2'][l] + params['bc2'][l]
        X = X + t
    xp = X.max(axis=2)
    xp = jnp.maximum(xp @ params['wp1'] + params['bp1'], 0.0)
    xp = jnp.maximum(xp @ params['wp2'] + params['bp2'], 0.0)
    h = xp.mean(axis=1)
    h = jnp.maximum(h @ params['wo1'] + params['bo1'], 0.0)
    return h @ params['wo2'] + params['bo2']


def init_params(key):
    ks = jax.random.split(key, 24)
    a = 1.0 / jnp.sqrt(H)
    u = lambda k, shp, s=a: jax.random.uniform(k, shp, jnp.float32, -s, s)
    emb_ea = 0.2 * jax.random.normal(ks[1], (16, H), jnp.float32)
    emb_ea = emb_ea.at[0].set(0.0)   # padding_idx=0
    return dict(
        emb_x=0.2 * jax.random.normal(ks[0], (32, H), jnp.float32),
        emb_ea=emb_ea,
        emb_tf=0.2 * jax.random.normal(ks[2], (16, H), jnp.float32),
        w0=u(ks[3], (H, H)), b0=u(ks[4], (1, H)),
        w1=u(ks[5], (H, H)), b1=u(ks[6], (1, H)),
        wc1=u(ks[7], (NUM_LAYER, H, H)), bc1=u(ks[8], (NUM_LAYER, 1, H)),
        wc2=u(ks[9], (NUM_LAYER, H, H)), bc2=u(ks[10], (NUM_LAYER, 1, H)),
        wp1=u(ks[11], (H, H)), bp1=u(ks[12], (1, H)),
        wp2=u(ks[13], (H, H)), bp2=u(ks[14], (1, H)),
        wo1=u(ks[15], (H, H)), bo1=u(ks[16], (1, H)),
        wo2=u(ks[17], (H, NUM_TASKS)), bo2=u(ks[18], (1, NUM_TASKS)),
    )


if __name__ == "__main__":
    key = jax.random.PRNGKey(0)
    params = init_params(key)

    kx, ka, kt = jax.random.split(jax.random.PRNGKey(1), 3)
    x_idx = jax.random.randint(kx, (B, N), 0, 32)             # atom types
    A_idx = jax.random.randint(ka, (B, N, N), 0, 16)          # edge types (0 = padding)
    X_idx = jax.random.randint(kt, (B, N, N), 0, 16)          # tuple features

    out = jax.block_until_ready(sp_forward(params, x_idx, A_idx, X_idx))
    ref = jax.block_until_ready(reference(params, x_idx, A_idx, X_idx))

    assert out.shape == (B, NUM_TASKS)
    assert jnp.allclose(out, ref, rtol=1e-4, atol=1e-4), (out, ref)
    print("KERNEL_OK")
</pallas_src>

<mosaic_0001>
module attributes {stable_mosaic.version = 11 : i64} {
  func.func @sp_kernel(%arg0: i32, %arg1: memref<1x8x32xf32, #tpu.memory_space<vmem>>, %arg2: memref<1x1x256xf32, #tpu.memory_space<vmem>>, %arg3: memref<1x8x8x256xf32, #tpu.memory_space<vmem>>, %arg4: memref<1x8x256xf32, #tpu.memory_space<vmem>>, %arg5: memref<32x384xf32, #tpu.memory_space<vmem>>, %arg6: memref<256x2432xf32, #tpu.memory_space<vmem>>, %arg7: memref<1x2816xf32, #tpu.memory_space<vmem>>, %arg8: memref<1x1x128xf32, #tpu.memory_space<vmem>>) attributes {dimension_semantics = [#tpu.dimension_semantics<parallel>], iteration_bounds = array<i64: 2>, scalar_prefetch = 0 : i64, scratch_operands = 0 : i64, tpu.core_type = #tpu.core_type<tc>, window_params = [{transform_indices = @transform_0, window_bounds = array<i64: 1, 8, 32>}, {transform_indices = @transform_1, window_bounds = array<i64: 1, 1, 256>}, {transform_indices = @transform_2, window_bounds = array<i64: 1, 8, 8, 256>}, {transform_indices = @transform_3, window_bounds = array<i64: 1, 8, 256>}, {pipeline_mode = #tpu.pipeline_mode<synchronous>, transform_indices = @transform_4, window_bounds = array<i64: 32, 384>}, {pipeline_mode = #tpu.pipeline_mode<synchronous>, transform_indices = @transform_5, window_bounds = array<i64: 256, 2432>}, {pipeline_mode = #tpu.pipeline_mode<synchronous>, transform_indices = @transform_6, window_bounds = array<i64: 1, 2816>}, {transform_indices = @transform_7, window_bounds = array<i64: 1, 1, 128>}]} {
    %c0 = arith.constant 0 : index
    %c0_0 = arith.constant 0 : index
    %c0_1 = arith.constant 0 : index
    %0 = vector.load %arg1[%c0, %c0_0, %c0_1] : memref<1x8x32xf32, #tpu.memory_space<vmem>>, vector<1x8x32xf32>
    %1 = vector.shape_cast %0 : vector<1x8x32xf32> to vector<8x32xf32>
    %c0_2 = arith.constant 0 : index
    %c0_3 = arith.constant 0 : index
    %2 = vector.load %arg5[%c0_2, %c0_3] : memref<32x384xf32, #tpu.memory_space<vmem>>, vector<32x256xf32>
    %cst = arith.constant dense<0.000000e+00> : vector<8x256xf32>
    %3 = tpu.matmul %1, %2, %cst {dimension_numbers = #tpu.dot_dimension_numbers<[1], [0], [0], [1], [0, 0, 1, 1], [], []>} : vector<8x32xf32>, vector<32x256xf32>, vector<8x256xf32> -> vector<8x256xf32>
    %c0_4 = arith.constant 0 : index
    %c0_5 = arith.constant 0 : index
    %4 = vector.load %arg7[%c0_4, %c0_5] : memref<1x2816xf32, #tpu.memory_space<vmem>>, vector<1x256xf32>
    %5 = vector.broadcast %4 : vector<1x256xf32> to vector<8x256xf32>
    %6 = arith.addf %3, %5 : vector<8x256xf32>
    %c0_6 = arith.constant 0 : index
    %c0_7 = arith.constant 0 : index
    %c0_8 = arith.constant 0 : index
    %7 = vector.load %arg2[%c0_6, %c0_7, %c0_8] : memref<1x1x256xf32, #tpu.memory_space<vmem>>, vector<1x1x256xf32>
    %8 = vector.shape_cast %7 : vector<1x1x256xf32> to vector<1x256xf32>
    %c0_9 = arith.constant 0 : index
    %c0_10 = arith.constant 0 : index
    %9 = vector.load %arg6[%c0_9, %c0_10] : memref<256x2432xf32, #tpu.memory_space<vmem>>, vector<256x256xf32>
    %cst_11 = arith.constant dense<0.000000e+00> : vector<1x256xf32>
    %10 = tpu.matmul %8, %9, %cst_11 {dimension_numbers = #tpu.dot_dimension_numbers<[1], [0], [0], [1], [0, 0, 1, 1], [], []>} : vector<1x256xf32>, vector<256x256xf32>, vector<1x256xf32> -> vector<1x256xf32>
    %c0_12 = arith.constant 0 : index
    %c256 = arith.constant 256 : index
    %11 = vector.load %arg7[%c0_12, %c256] : memref<1x2816xf32, #tpu.memory_space<vmem>>, vector<1x256xf32>
    %12 = arith.addf %10, %11 : vector<1x256xf32>
    %13 = vector.broadcast %12 : vector<1x256xf32> to vector<8x256xf32>
    %14 = arith.mulf %6, %13 : vector<8x256xf32>
    %c0_13 = arith.constant 0 : index
    %c0_14 = arith.constant 0 : index
    %c0_15 = arith.constant 0 : index
    %15 = vector.load %arg4[%c0_13, %c0_14, %c0_15] : memref<1x8x256xf32, #tpu.memory_space<vmem>>, vector<1x8x256xf32>
    %16 = vector.shape_cast %15 : vector<1x8x256xf32> to vector<8x256xf32>
    %17 = arith.mulf %14, %16 : vector<8x256xf32>
    %c0_16 = arith.constant 0 : index
    %c0_17 = arith.constant 0 : index
    %c0_18 = arith.constant 0 : index
    %c0_19 = arith.constant 0 : index
    %18 = vector.load %arg3[%c0_16, %c0_17, %c0_18, %c0_19] : memref<1x8x8x256xf32, #tpu.memory_space<vmem>>, vector<1x1x8x256xf32>
    %19 = vector.shape_cast %18 : vector<1x1x8x256xf32> to vector<8x256xf32>
    %20 = vector.extract_strided_slice %17 {offsets = [0, 0], sizes = [1, 256], strides = [1, 1]} : vector<8x256xf32> to vector<1x256xf32>
    %21 = vector.broadcast %20 : vector<1x256xf32> to vector<8x256xf32>
    %22 = arith.mulf %19, %21 : vector<8x256xf32>
    %c0_20 = arith.constant 0 : index
    %c1 = arith.constant 1 : index
    %c0_21 = arith.constant 0 : index
    %c0_22 = arith.constant 0 : index
    %23 = vector.load %arg3[%c0_20, %c1, %c0_21, %c0_22] : memref<1x8x8x256xf32, #tpu.memory_space<vmem>>, vector<1x1x8x256xf32>
    %24 = vector.shape_cast %23 : vector<1x1x8x256xf32> to vector<8x256xf32>
    %25 = vector.extract_strided_slice %17 {offsets = [1, 0], sizes = [1, 256], strides = [1, 1]} : vector<8x256xf32> to vector<1x256xf32>
    %26 = vector.broadcast %25 : vector<1x256xf32> to vector<8x256xf32>
    %27 = arith.mulf %24, %26 : vector<8x256xf32>
    %28 = arith.addf %22, %27 : vector<8x256xf32>
    %c0_23 = arith.constant 0 : index
    %c2 = arith.constant 2 : index
    %c0_24 = arith.constant 0 : index
    %c0_25 = arith.constant 0 : index
    %29 = vector.load %arg3[%c0_23, %c2, %c0_24, %c0_25] : memref<1x8x8x256xf32, #tpu.memory_space<vmem>>, vector<1x1x8x256xf32>
    %30 = vector.shape_cast %29 : vector<1x1x8x256xf32> to vector<8x256xf32>
    %31 = vector.extract_strided_slice %17 {offsets = [2, 0], sizes = [1, 256], strides = [1, 1]} : vector<8x256xf32> to vector<1x256xf32>
    %32 = vector.broadcast %31 : vector<1x256xf32> to vector<8x256xf32>
    %33 = arith.mulf %30, %32 : vector<8x256xf32>
    %34 = arith.addf %28, %33 : vector<8x256xf32>
    %c0_26 = arith.constant 0 : index
    %c3 = arith.constant 3 : index
    %c0_27 = arith.constant 0 : index
    %c0_28 = arith.constant 0 : index
    %35 = vector.load %arg3[%c0_26, %c3, %c0_27, %c0_28] : memref<1x8x8x256xf32, #tpu.memory_space<vmem>>, vector<1x1x8x256xf32>
    %36 = vector.shape_cast %35 : vector<1x1x8x256xf32> to vector<8x256xf32>
    %37 = vector.extract_strided_slice %17 {offsets = [3, 0], sizes = [1, 256], strides = [1, 1]} : vector<8x256xf32> to vector<1x256xf32>
    %38 = vector.broadcast %37 : vector<1x256xf32> to vector<8x256xf32>
    %39 = arith.mulf %36, %38 : vector<8x256xf32>
    %40 = arith.addf %34, %39 : vector<8x256xf32>
    %c0_29 = arith.constant 0 : index
    %c4 = arith.constant 4 : index
    %c0_30 = arith.constant 0 : index
    %c0_31 = arith.constant 0 : index
    %41 = vector.load %arg3[%c0_29, %c4, %c0_30, %c0_31] : memref<1x8x8x256xf32, #tpu.memory_space<vmem>>, vector<1x1x8x256xf32>
    %42 = vector.shape_cast %41 : vector<1x1x8x256xf32> to vector<8x256xf32>
    %43 = vector.extract_strided_slice %17 {offsets = [4, 0], sizes = [1, 256], strides = [1, 1]} : vector<8x256xf32> to vector<1x256xf32>
    %44 = vector.broadcast %43 : vector<1x256xf32> to vector<8x256xf32>
    %45 = arith.mulf %42, %44 : vector<8x256xf32>
    %46 = arith.addf %40, %45 : vector<8x256xf32>
    %c0_32 = arith.constant 0 : index
    %c5 = arith.constant 5 : index
    %c0_33 = arith.constant 0 : index
    %c0_34 = arith.constant 0 : index
    %47 = vector.load %arg3[%c0_32, %c5, %c0_33, %c0_34] : memref<1x8x8x256xf32, #tpu.memory_space<vmem>>, vector<1x1x8x256xf32>
    %48 = vector.shape_cast %47 : vector<1x1x8x256xf32> to vector<8x256xf32>
    %49 = vector.extract_strided_slice %17 {offsets = [5, 0], sizes = [1, 256], strides = [1, 1]} : vector<8x256xf32> to vector<1x256xf32>
    %50 = vector.broadcast %49 : vector<1x256xf32> to vector<8x256xf32>
    %51 = arith.mulf %48, %50 : vector<8x256xf32>
    %52 = arith.addf %46, %51 : vector<8x256xf32>
    %c0_35 = arith.constant 0 : index
    %c6 = arith.constant 6 : index
    %c0_36 = arith.constant 0 : index
    %c0_37 = arith.constant 0 : index
    %53 = vector.load %arg3[%c0_35, %c6, %c0_36, %c0_37] : memref<1x8x8x256xf32, #tpu.memory_space<vmem>>, vector<1x1x8x256xf32>
    %54 = vector.shape_cast %53 : vector<1x1x8x256xf32> to vector<8x256xf32>
    %55 = vector.extract_strided_slice %17 {offsets = [6, 0], sizes = [1, 256], strides = [1, 1]} : vector<8x256xf32> to vector<1x256xf32>
    %56 = vector.broadcast %55 : vector<1x256xf32> to vector<8x256xf32>
    %57 = arith.mulf %54, %56 : vector<8x256xf32>
    %58 = arith.addf %52, %57 : vector<8x256xf32>
    %c0_38 = arith.constant 0 : index
    %c7 = arith.constant 7 : index
    %c0_39 = arith.constant 0 : index
    %c0_40 = arith.constant 0 : index
    %59 = vector.load %arg3[%c0_38, %c7, %c0_39, %c0_40] : memref<1x8x8x256xf32, #tpu.memory_space<vmem>>, vector<1x1x8x256xf32>
    %60 = vector.shape_cast %59 : vector<1x1x8x256xf32> to vector<8x256xf32>
    %61 = vector.extract_strided_slice %17 {offsets = [7, 0], sizes = [1, 256], strides = [1, 1]} : vector<8x256xf32> to vector<1x256xf32>
    %62 = vector.broadcast %61 : vector<1x256xf32> to vector<8x256xf32>
    %63 = arith.mulf %60, %62 : vector<8x256xf32>
    %64 = arith.addf %58, %63 : vector<8x256xf32>
    %c0_41 = arith.constant 0 : index
    %c256_42 = arith.constant 256 : index
    %65 = vector.load %arg6[%c0_41, %c256_42] : memref<256x2432xf32, #tpu.memory_space<vmem>>, vector<256x256xf32>
    %cst_43 = arith.constant dense<0.000000e+00> : vector<8x256xf32>
    %66 = tpu.matmul %64, %65, %cst_43 {dimension_numbers = #tpu.dot_dimension_numbers<[1], [0], [0], [1], [0, 0, 1, 1], [], []>} : vector<8x256xf32>, vector<256x256xf32>, vector<8x256xf32> -> vector<8x256xf32>
    %c0_44 = arith.constant 0 : index
    %c512 = arith.constant 512 : index
    %67 = vector.load %arg7[%c0_44, %c512] : memref<1x2816xf32, #tpu.memory_space<vmem>>, vector<1x256xf32>
    %68 = vector.broadcast %67 : vector<1x256xf32> to vector<8x256xf32>
    %69 = arith.addf %66, %68 : vector<8x256xf32>
    %cst_45 = arith.constant 0.000000e+00 : f32
    %70 = vector.broadcast %cst_45 : f32 to vector<8x256xf32>
    %71 = arith.maximumf %69, %70 : vector<8x256xf32>
    %c0_46 = arith.constant 0 : index
    %c1024 = arith.constant 1024 : index
    %72 = vector.load %arg6[%c0_46, %c1024] : memref<256x2432xf32, #tpu.memory_space<vmem>>, vector<256x256xf32>
    %cst_47 = arith.constant dense<0.000000e+00> : vector<8x256xf32>
    %73 = tpu.matmul %71, %72, %cst_47 {dimension_numbers = #tpu.dot_dimension_numbers<[1], [0], [0], [1], [0, 0, 1, 1], [], []>} : vector<8x256xf32>, vector<256x256xf32>, vector<8x256xf32> -> vector<8x256xf32>
    %c0_48 = arith.constant 0 : index
    %c1280 = arith.constant 1280 : index
    %74 = vector.load %arg7[%c0_48, %c1280] : memref<1x2816xf32, #tpu.memory_space<vmem>>, vector<1x256xf32>
    %75 = vector.broadcast %74 : vector<1x256xf32> to vector<8x256xf32>
    %76 = arith.addf %73, %75 : vector<8x256xf32>
    %77 = arith.addf %17, %76 : vector<8x256xf32>
    %c0_49 = arith.constant 0 : index
    %c0_50 = arith.constant 0 : index
    %c0_51 = arith.constant 0 : index
    %c0_52 = arith.constant 0 : index
    %78 = vector.load %arg3[%c0_49, %c0_50, %c0_51, %c0_52] : memref<1x8x8x256xf32, #tpu.memory_space<vmem>>, vector<1x1x8x256xf32>
    %79 = vector.shape_cast %78 : vector<1x1x8x256xf32> to vector<8x256xf32>
    %80 = vector.extract_strided_slice %77 {offsets = [0, 0], sizes = [1, 256], strides = [1, 1]} : vector<8x256xf32> to vector<1x256xf32>
    %81 = vector.broadcast %80 : vector<1x256xf32> to vector<8x256xf32>
    %82 = arith.mulf %79, %81 : vector<8x256xf32>
    %c0_53 = arith.constant 0 : index
    %c1_54 = arith.constant 1 : index
    %c0_55 = arith.constant 0 : index
    %c0_56 = arith.constant 0 : index
    %83 = vector.load %arg3[%c0_53, %c1_54, %c0_55, %c0_56] : memref<1x8x8x256xf32, #tpu.memory_space<vmem>>, vector<1x1x8x256xf32>
    %84 = vector.shape_cast %83 : vector<1x1x8x256xf32> to vector<8x256xf32>
    %85 = vector.extract_strided_slice %77 {offsets = [1, 0], sizes = [1, 256], strides = [1, 1]} : vector<8x256xf32> to vector<1x256xf32>
    %86 = vector.broadcast %85 : vector<1x256xf32> to vector<8x256xf32>
    %87 = arith.mulf %84, %86 : vector<8x256xf32>
    %88 = arith.addf %82, %87 : vector<8x256xf32>
    %c0_57 = arith.constant 0 : index
    %c2_58 = arith.constant 2 : index
    %c0_59 = arith.constant 0 : index
    %c0_60 = arith.constant 0 : index
    %89 = vector.load %arg3[%c0_57, %c2_58, %c0_59, %c0_60] : memref<1x8x8x256xf32, #tpu.memory_space<vmem>>, vector<1x1x8x256xf32>
    %90 = vector.shape_cast %89 : vector<1x1x8x256xf32> to vector<8x256xf32>
    %91 = vector.extract_strided_slice %77 {offsets = [2, 0], sizes = [1, 256], strides = [1, 1]} : vector<8x256xf32> to vector<1x256xf32>
    %92 = vector.broadcast %91 : vector<1x256xf32> to vector<8x256xf32>
    %93 = arith.mulf %90, %92 : vector<8x256xf32>
    %94 = arith.addf %88, %93 : vector<8x256xf32>
    %c0_61 = arith.constant 0 : index
    %c3_62 = arith.constant 3 : index
    %c0_63 = arith.constant 0 : index
    %c0_64 = arith.constant 0 : index
    %95 = vector.load %arg3[%c0_61, %c3_62, %c0_63, %c0_64] : memref<1x8x8x256xf32, #tpu.memory_space<vmem>>, vector<1x1x8x256xf32>
    %96 = vector.shape_cast %95 : vector<1x1x8x256xf32> to vector<8x256xf32>
    %97 = vector.extract_strided_slice %77 {offsets = [3, 0], sizes = [1, 256], strides = [1, 1]} : vector<8x256xf32> to vector<1x256xf32>
    %98 = vector.broadcast %97 : vector<1x256xf32> to vector<8x256xf32>
    %99 = arith.mulf %96, %98 : vector<8x256xf32>
    %100 = arith.addf %94, %99 : vector<8x256xf32>
    %c0_65 = arith.constant 0 : index
    %c4_66 = arith.constant 4 : index
    %c0_67 = arith.constant 0 : index
    %c0_68 = arith.constant 0 : index
    %101 = vector.load %arg3[%c0_65, %c4_66, %c0_67, %c0_68] : memref<1x8x8x256xf32, #tpu.memory_space<vmem>>, vector<1x1x8x256xf32>
    %102 = vector.shape_cast %101 : vector<1x1x8x256xf32> to vector<8x256xf32>
    %103 = vector.extract_strided_slice %77 {offsets = [4, 0], sizes = [1, 256], strides = [1, 1]} : vector<8x256xf32> to vector<1x256xf32>
    %104 = vector.broadcast %103 : vector<1x256xf32> to vector<8x256xf32>
    %105 = arith.mulf %102, %104 : vector<8x256xf32>
    %106 = arith.addf %100, %105 : vector<8x256xf32>
    %c0_69 = arith.constant 0 : index
    %c5_70 = arith.constant 5 : index
    %c0_71 = arith.constant 0 : index
    %c0_72 = arith.constant 0 : index
    %107 = vector.load %arg3[%c0_69, %c5_70, %c0_71, %c0_72] : memref<1x8x8x256xf32, #tpu.memory_space<vmem>>, vector<1x1x8x256xf32>
    %108 = vector.shape_cast %107 : vector<1x1x8x256xf32> to vector<8x256xf32>
    %109 = vector.extract_strided_slice %77 {offsets = [5, 0], sizes = [1, 256], strides = [1, 1]} : vector<8x256xf32> to vector<1x256xf32>
    %110 = vector.broadcast %109 : vector<1x256xf32> to vector<8x256xf32>
    %111 = arith.mulf %108, %110 : vector<8x256xf32>
    %112 = arith.addf %106, %111 : vector<8x256xf32>
    %c0_73 = arith.constant 0 : index
    %c6_74 = arith.constant 6 : index
    %c0_75 = arith.constant 0 : index
    %c0_76 = arith.constant 0 : index
    %113 = vector.load %arg3[%c0_73, %c6_74, %c0_75, %c0_76] : memref<1x8x8x256xf32, #tpu.memory_space<vmem>>, vector<1x1x8x256xf32>
    %114 = vector.shape_cast %113 : vector<1x1x8x256xf32> to vector<8x256xf32>
    %115 = vector.extract_strided_slice %77 {offsets = [6, 0], sizes = [1, 256], strides = [1, 1]} : vector<8x256xf32> to vector<1x256xf32>
    %116 = vector.broadcast %115 : vector<1x256xf32> to vector<8x256xf32>
    %117 = arith.mulf %114, %116 : vector<8x256xf32>
    %118 = arith.addf %112, %117 : vector<8x256xf32>
    %c0_77 = arith.constant 0 : index
    %c7_78 = arith.constant 7 : index
    %c0_79 = arith.constant 0 : index
    %c0_80 = arith.constant 0 : index
    %119 = vector.load %arg3[%c0_77, %c7_78, %c0_79, %c0_80] : memref<1x8x8x256xf32, #tpu.memory_space<vmem>>, vector<1x1x8x256xf32>
    %120 = vector.shape_cast %119 : vector<1x1x8x256xf32> to vector<8x256xf32>
    %121 = vector.extract_strided_slice %77 {offsets = [7, 0], sizes = [1, 256], strides = [1, 1]} : vector<8x256xf32> to vector<1x256xf32>
    %122 = vector.broadcast %121 : vector<1x256xf32> to vector<8x256xf32>
    %123 = arith.mulf %120, %122 : vector<8x256xf32>
    %124 = arith.addf %118, %123 : vector<8x256xf32>
    %c0_81 = arith.constant 0 : index
    %c512_82 = arith.constant 512 : index
    %125 = vector.load %arg6[%c0_81, %c512_82] : memref<256x2432xf32, #tpu.memory_space<vmem>>, vector<256x256xf32>
    %cst_83 = arith.constant dense<0.000000e+00> : vector<8x256xf32>
    %126 = tpu.matmul %124, %125, %cst_83 {dimension_numbers = #tpu.dot_dimension_numbers<[1], [0], [0], [1], [0, 0, 1, 1], [], []>} : vector<8x256xf32>, vector<256x256xf32>, vector<8x256xf32> -> vector<8x256xf32>
    %c0_84 = arith.constant 0 : index
    %c768 = arith.constant 768 : index
    %127 = vector.load %arg7[%c0_84, %c768] : memref<1x2816xf32, #tpu.memory_space<vmem>>, vector<1x256xf32>
    %128 = vector.broadcast %127 : vector<1x256xf32> to vector<8x256xf32>
    %129 = arith.addf %126, %128 : vector<8x256xf32>
    %cst_85 = arith.constant 0.000000e+00 : f32
    %130 = vector.broadcast %cst_85 : f32 to vector<8x256xf32>
    %131 = arith.maximumf %129, %130 : vector<8x256xf32>
    %c0_86 = arith.constant 0 : index
    %c1280_87 = arith.constant 1280 : index
    %132 = vector.load %arg6[%c0_86, %c1280_87] : memref<256x2432xf32, #tpu.memory_space<vmem>>, vector<256x256xf32>
    %cst_88 = arith.constant dense<0.000000e+00> : vector<8x256xf32>
    %133 = tpu.matmul %131, %132, %cst_88 {dimension_numbers = #tpu.dot_dimension_numbers<[1], [0], [0], [1], [0, 0, 1, 1], [], []>} : vector<8x256xf32>, vector<256x256xf32>, vector<8x256xf32> -> vector<8x256xf32>
    %c0_89 = arith.constant 0 : index
    %c1536 = arith.constant 1536 : index
    %134 = vector.load %arg7[%c0_89, %c1536] : memref<1x2816xf32, #tpu.memory_space<vmem>>, vector<1x256xf32>
    %135 = vector.broadcast %134 : vector<1x256xf32> to vector<8x256xf32>
    %136 = arith.addf %133, %135 : vector<8x256xf32>
    %137 = arith.addf %77, %136 : vector<8x256xf32>
    %c0_90 = arith.constant 0 : index
    %c0_91 = arith.constant 0 : index
    %c0_92 = arith.constant 0 : index
    %c0_93 = arith.constant 0 : index
    %138 = vector.load %arg3[%c0_90, %c0_91, %c0_92, %c0_93] : memref<1x8x8x256xf32, #tpu.memory_space<vmem>>, vector<1x1x8x256xf32>
    %139 = vector.shape_cast %138 : vector<1x1x8x256xf32> to vector<8x256xf32>
    %140 = vector.extract_strided_slice %137 {offsets = [0, 0], sizes = [1, 256], strides = [1, 1]} : vector<8x256xf32> to vector<1x256xf32>
    %141 = vector.broadcast %140 : vector<1x256xf32> to vector<8x256xf32>
    %142 = arith.mulf %139, %141 : vector<8x256xf32>
    %c0_94 = arith.constant 0 : index
    %c1_95 = arith.constant 1 : index
    %c0_96 = arith.constant 0 : index
    %c0_97 = arith.constant 0 : index
    %143 = vector.load %arg3[%c0_94, %c1_95, %c0_96, %c0_97] : memref<1x8x8x256xf32, #tpu.memory_space<vmem>>, vector<1x1x8x256xf32>
    %144 = vector.shape_cast %143 : vector<1x1x8x256xf32> to vector<8x256xf32>
    %145 = vector.extract_strided_slice %137 {offsets = [1, 0], sizes = [1, 256], strides = [1, 1]} : vector<8x256xf32> to vector<1x256xf32>
    %146 = vector.broadcast %145 : vector<1x256xf32> to vector<8x256xf32>
    %147 = arith.mulf %144, %146 : vector<8x256xf32>
    %148 = arith.addf %142, %147 : vector<8x256xf32>
    %c0_98 = arith.constant 0 : index
    %c2_99 = arith.constant 2 : index
    %c0_100 = arith.constant 0 : index
    %c0_101 = arith.constant 0 : index
    %149 = vector.load %arg3[%c0_98, %c2_99, %c0_100, %c0_101] : memref<1x8x8x256xf32, #tpu.memory_space<vmem>>, vector<1x1x8x256xf32>
    %150 = vector.shape_cast %149 : vector<1x1x8x256xf32> to vector<8x256xf32>
    %151 = vector.extract_strided_slice %137 {offsets = [2, 0], sizes = [1, 256], strides = [1, 1]} : vector<8x256xf32> to vector<1x256xf32>
    %152 = vector.broadcast %151 : vector<1x256xf32> to vector<8x256xf32>
    %153 = arith.mulf %150, %152 : vector<8x256xf32>
    %154 = arith.addf %148, %153 : vector<8x256xf32>
    %c0_102 = arith.constant 0 : index
    %c3_103 = arith.constant 3 : index
    %c0_104 = arith.constant 0 : index
    %c0_105 = arith.constant 0 : index
    %155 = vector.load %arg3[%c0_102, %c3_103, %c0_104, %c0_105] : memref<1x8x8x256xf32, #tpu.memory_space<vmem>>, vector<1x1x8x256xf32>
    %156 = vector.shape_cast %155 : vector<1x1x8x256xf32> to vector<8x256xf32>
    %157 = vector.extract_strided_slice %137 {offsets = [3, 0], sizes = [1, 256], strides = [1, 1]} : vector<8x256xf32> to vector<1x256xf32>
    %158 = vector.broadcast %157 : vector<1x256xf32> to vector<8x256xf32>
    %159 = arith.mulf %156, %158 : vector<8x256xf32>
    %160 = arith.addf %154, %159 : vector<8x256xf32>
    %c0_106 = arith.constant 0 : index
    %c4_107 = arith.constant 4 : index
    %c0_108 = arith.constant 0 : index
    %c0_109 = arith.constant 0 : index
    %161 = vector.load %arg3[%c0_106, %c4_107, %c0_108, %c0_109] : memref<1x8x8x256xf32, #tpu.memory_space<vmem>>, vector<1x1x8x256xf32>
    %162 = vector.shape_cast %161 : vector<1x1x8x256xf32> to vector<8x256xf32>
    %163 = vector.extract_strided_slice %137 {offsets = [4, 0], sizes = [1, 256], strides = [1, 1]} : vector<8x256xf32> to vector<1x256xf32>
    %164 = vector.broadcast %163 : vector<1x256xf32> to vector<8x256xf32>
    %165 = arith.mulf %162, %164 : vector<8x256xf32>
    %166 = arith.addf %160, %165 : vector<8x256xf32>
    %c0_110 = arith.constant 0 : index
    %c5_111 = arith.constant 5 : index
    %c0_112 = arith.constant 0 : index
    %c0_113 = arith.constant 0 : index
    %167 = vector.load %arg3[%c0_110, %c5_111, %c0_112, %c0_113] : memref<1x8x8x256xf32, #tpu.memory_space<vmem>>, vector<1x1x8x256xf32>
    %168 = vector.shape_cast %167 : vector<1x1x8x256xf32> to vector<8x256xf32>
    %169 = vector.extract_strided_slice %137 {offsets = [5, 0], sizes = [1, 256], strides = [1, 1]} : vector<8x256xf32> to vector<1x256xf32>
    %170 = vector.broadcast %169 : vector<1x256xf32> to vector<8x256xf32>
    %171 = arith.mulf %168, %170 : vector<8x256xf32>
    %172 = arith.addf %166, %171 : vector<8x256xf32>
    %c0_114 = arith.constant 0 : index
    %c6_115 = arith.constant 6 : index
    %c0_116 = arith.constant 0 : index
    %c0_117 = arith.constant 0 : index
    %173 = vector.load %arg3[%c0_114, %c6_115, %c0_116, %c0_117] : memref<1x8x8x256xf32, #tpu.memory_space<vmem>>, vector<1x1x8x256xf32>
    %174 = vector.shape_cast %173 : vector<1x1x8x256xf32> to vector<8x256xf32>
    %175 = vector.extract_strided_slice %137 {offsets = [6, 0], sizes = [1, 256], strides = [1, 1]} : vector<8x256xf32> to vector<1x256xf32>
    %176 = vector.broadcast %175 : vector<1x256xf32> to vector<8x256xf32>
    %177 = arith.mulf %174, %176 : vector<8x256xf32>
    %178 = arith.addf %172, %177 : vector<8x256xf32>
    %c0_118 = arith.constant 0 : index
    %c7_119 = arith.constant 7 : index
    %c0_120 = arith.constant 0 : index
    %c0_121 = arith.constant 0 : index
    %179 = vector.load %arg3[%c0_118, %c7_119, %c0_120, %c0_121] : memref<1x8x8x256xf32, #tpu.memory_space<vmem>>, vector<1x1x8x256xf32>
    %180 = vector.shape_cast %179 : vector<1x1x8x256xf32> to vector<8x256xf32>
    %181 = vector.extract_strided_slice %137 {offsets = [7, 0], sizes = [1, 256], strides = [1, 1]} : vector<8x256xf32> to vector<1x256xf32>
    %182 = vector.broadcast %181 : vector<1x256xf32> to vector<8x256xf32>
    %183 = arith.mulf %180, %182 : vector<8x256xf32>
    %184 = arith.addf %178, %183 : vector<8x256xf32>
    %c0_122 = arith.constant 0 : index
    %c768_123 = arith.constant 768 : index
    %185 = vector.load %arg6[%c0_122, %c768_123] : memref<256x2432xf32, #tpu.memory_space<vmem>>, vector<256x256xf32>
    %cst_124 = arith.constant dense<0.000000e+00> : vector<8x256xf32>
    %186 = tpu.matmul %184, %185, %cst_124 {dimension_numbers = #tpu.dot_dimension_numbers<[1], [0], [0], [1], [0, 0, 1, 1], [], []>} : vector<8x256xf32>, vector<256x256xf32>, vector<8x256xf32> -> vector<8x256xf32>
    %c0_125 = arith.constant 0 : index
    %c1024_126 = arith.constant 1024 : index
    %187 = vector.load %arg7[%c0_125, %c1024_126] : memref<1x2816xf32, #tpu.memory_space<vmem>>, vector<1x256xf32>
    %188 = vector.broadcast %187 : vector<1x256xf32> to vector<8x256xf32>
    %189 = arith.addf %186, %188 : vector<8x256xf32>
    %cst_127 = arith.constant 0.000000e+00 : f32
    %190 = vector.broadcast %cst_127 : f32 to vector<8x256xf32>
    %191 = arith.maximumf %189, %190 : vector<8x256xf32>
    %c0_128 = arith.constant 0 : index
    %c1536_129 = arith.constant 1536 : index
    %192 = vector.load %arg6[%c0_128, %c1536_129] : memref<256x2432xf32, #tpu.memory_space<vmem>>, vector<256x256xf32>
    %cst_130 = arith.constant dense<0.000000e+00> : vector<8x256xf32>
    %193 = tpu.matmul %191, %192, %cst_130 {dimension_numbers = #tpu.dot_dimension_numbers<[1], [0], [0], [1], [0, 0, 1, 1], [], []>} : vector<8x256xf32>, vector<256x256xf32>, vector<8x256xf32> -> vector<8x256xf32>
    %c0_131 = arith.constant 0 : index
    %c1792 = arith.constant 1792 : index
    %194 = vector.load %arg7[%c0_131, %c1792] : memref<1x2816xf32, #tpu.memory_space<vmem>>, vector<1x256xf32>
    %195 = vector.broadcast %194 : vector<1x256xf32> to vector<8x256xf32>
    %196 = arith.addf %193, %195 : vector<8x256xf32>
    %197 = arith.addf %137, %196 : vector<8x256xf32>
    %cst_132 = arith.constant dense<0xFF800000> : vector<256xf32>
    %198 = vector.multi_reduction <maximumf>, %197, %cst_132 [0] : vector<8x256xf32> to vector<256xf32>
    %199 = vector.shape_cast %198 : vector<256xf32> to vector<1x256xf32>
    %c0_133 = arith.constant 0 : index
    %c1792_134 = arith.constant 1792 : index
    %200 = vector.load %arg6[%c0_133, %c1792_134] : memref<256x2432xf32, #tpu.memory_space<vmem>>, vector<256x256xf32>
    %cst_135 = arith.constant dense<0.000000e+00> : vector<1x256xf32>
    %201 = tpu.matmul %199, %200, %cst_135 {dimension_numbers = #tpu.dot_dimension_numbers<[1], [0], [0], [1], [0, 0, 1, 1], [], []>} : vector<1x256xf32>, vector<256x256xf32>, vector<1x256xf32> -> vector<1x256xf32>
    %c0_136 = arith.constant 0 : index
    %c2048 = arith.constant 2048 : index
    %202 = vector.load %arg7[%c0_136, %c2048] : memref<1x2816xf32, #tpu.memory_space<vmem>>, vector<1x256xf32>
    %203 = arith.addf %201, %202 : vector<1x256xf32>
    %cst_137 = arith.constant 0.000000e+00 : f32
    %204 = vector.broadcast %cst_137 : f32 to vector<1x256xf32>
    %205 = arith.maximumf %203, %204 : vector<1x256xf32>
    %c0_138 = arith.constant 0 : index
    %c2048_139 = arith.constant 2048 : index
    %206 = vector.load %arg6[%c0_138, %c2048_139] : memref<256x2432xf32, #tpu.memory_space<vmem>>, vector<256x256xf32>
    %cst_140 = arith.constant dense<0.000000e+00> : vector<1x256xf32>
    %207 = tpu.matmul %205, %206, %cst_140 {dimension_numbers = #tpu.dot_dimension_numbers<[1], [0], [0], [1], [0, 0, 1, 1], [], []>} : vector<1x256xf32>, vector<256x256xf32>, vector<1x256xf32> -> vector<1x256xf32>
    %c0_141 = arith.constant 0 : index
    %c2304 = arith.constant 2304 : index
    %208 = vector.load %arg7[%c0_141, %c2304] : memref<1x2816xf32, #tpu.memory_space<vmem>>, vector<1x256xf32>
    %209 = arith.addf %207, %208 : vector<1x256xf32>
    %cst_142 = arith.constant 0.000000e+00 : f32
    %210 = vector.broadcast %cst_142 : f32 to vector<1x256xf32>
    %211 = arith.maximumf %209, %210 : vector<1x256xf32>
    %c0_143 = arith.constant 0 : index
    %c2304_144 = arith.constant 2304 : index
    %212 = vector.load %arg6[%c0_143, %c2304_144] : memref<256x2432xf32, #tpu.memory_space<vmem>>, vector<256x32xf32>
    %cst_145 = arith.constant dense<0.000000e+00> : vector<1x32xf32>
    %213 = tpu.matmul %211, %212, %cst_145 {dimension_numbers = #tpu.dot_dimension_numbers<[1], [0], [0], [1], [0, 0, 1, 1], [], []>} : vector<1x256xf32>, vector<256x32xf32>, vector<1x32xf32> -> vector<1x32xf32>
    %c0_146 = arith.constant 0 : index
    %c2560 = arith.constant 2560 : index
    %214 = vector.load %arg7[%c0_146, %c2560] : memref<1x2816xf32, #tpu.memory_space<vmem>>, vector<1x32xf32>
    %215 = arith.addf %213, %214 : vector<1x32xf32>
    %cst_147 = arith.constant 0.000000e+00 : f32
    %216 = vector.broadcast %cst_147 : f32 to vector<1x32xf32>
    %217 = arith.maximumf %215, %216 : vector<1x32xf32>
    %c0_148 = arith.constant 0 : index
    %c256_149 = arith.constant 256 : index
    %218 = vector.load %arg5[%c0_148, %c256_149] : memref<32x384xf32, #tpu.memory_space<vmem>>, vector<32x128xf32>
    %cst_150 = arith.constant dense<0.000000e+00> : vector<1x128xf32>
    %219 = tpu.matmul %217, %218, %cst_150 {dimension_numbers = #tpu.dot_dimension_numbers<[1], [0], [0], [1], [0, 0, 1, 1], [], []>} : vector<1x32xf32>, vector<32x128xf32>, vector<1x128xf32> -> vector<1x128xf32>
    %c0_151 = arith.constant 0 : index
    %c2688 = arith.constant 2688 : index
    %220 = vector.load %arg7[%c0_151, %c2688] : memref<1x2816xf32, #tpu.memory_space<vmem>>, vector<1x128xf32>
    %221 = arith.addf %219, %220 : vector<1x128xf32>
    %c0_152 = arith.constant 0 : index
    %c0_153 = arith.constant 0 : index
    %c0_154 = arith.constant 0 : index
    %222 = vector.load %arg8[%c0_152, %c0_153, %c0_154] : memref<1x1x128xf32, #tpu.memory_space<vmem>>, vector<1x1x128xf32>
    %223 = vector.shape_cast %222 : vector<1x1x128xf32> to vector<1x128xf32>
    %224 = vector.shape_cast %221 : vector<1x128xf32> to vector<1x1x128xf32>
    tpu.vector_store %arg8[%c0_152, %c0_153, %c0_154], %224 {strides = array<i32>} : memref<1x1x128xf32, #tpu.memory_space<vmem>>, vector<1x1x128xf32>,
    return
  }
  func.func @transform_0(%arg0: i32) -> (i32, i32, i32) {
    %c0_i32 = arith.constant 0 : i32
    %c0_i32_0 = arith.constant 0 : i32
    %c0_i32_1 = arith.constant 0 : i32
    return %arg0, %c0_i32, %c0_i32_0 : i32, i32, i32
  }
  func.func @transform_1(%arg0: i32) -> (i32, i32, i32) {
    %c0_i32 = arith.constant 0 : i32
    %c0_i32_0 = arith.constant 0 : i32
    %c0_i32_1 = arith.constant 0 : i32
    return %arg0, %c0_i32, %c0_i32_0 : i32, i32, i32
  }
  func.func @transform_2(%arg0: i32) -> (i32, i32, i32, i32) {
    %c0_i32 = arith.constant 0 : i32
    %c0_i32_0 = arith.constant 0 : i32
    %c0_i32_1 = arith.constant 0 : i32
    %c0_i32_2 = arith.constant 0 : i32
    return %arg0, %c0_i32, %c0_i32_0, %c0_i32_1 : i32, i32, i32, i32
  }
  func.func @transform_3(%arg0: i32) -> (i32, i32, i32) {
    %c0_i32 = arith.constant 0 : i32
    %c0_i32_0 = arith.constant 0 : i32
    %c0_i32_1 = arith.constant 0 : i32
    return %arg0, %c0_i32, %c0_i32_0 : i32, i32, i32
  }
  func.func @transform_4(%arg0: i32) -> (i32, i32) {
    %c0_i32 = arith.constant 0 : i32
    %c0_i32_0 = arith.constant 0 : i32
    %c0_i32_1 = arith.constant 0 : i32
    return %c0_i32, %c0_i32_0 : i32, i32
  }
  func.func @transform_5(%arg0: i32) -> (i32, i32) {
    %c0_i32 = arith.constant 0 : i32
    %c0_i32_0 = arith.constant 0 : i32
    %c0_i32_1 = arith.constant 0 : i32
    return %c0_i32, %c0_i32_0 : i32, i32
  }
  func.func @transform_6(%arg0: i32) -> (i32, i32) {
    %c0_i32 = arith.constant 0 : i32
    %c0_i32_0 = arith.constant 0 : i32
    %c0_i32_1 = arith.constant 0 : i32
    return %c0_i32, %c0_i32_0 : i32, i32
  }
  func.func @transform_7(%arg0: i32) -> (i32, i32, i32) {
    %c0_i32 = arith.constant 0 : i32
    %c0_i32_0 = arith.constant 0 : i32
    %c0_i32_1 = arith.constant 0 : i32
    return %arg0, %c0_i32, %c0_i32_0 : i32, i32, i32
  }
}

</mosaic_0001>

<bundles_post_ra>
// kernel: tpu_custom_call.1
= control target key start
LH: loop header
LB: loop body
LE: loop exit
PB: predicated region body
PF: predicated region fallthrough
CT: control target
= control target key end

     0   :  { %s4410_s0 = inlined_call_operand.hbm [shape: f32[2,8,32], index: 0, kind: input, shape index: {}]   ;;  %s4411_s1 = inlined_call_operand.hbm [shape: f32[2,1,256], index: 1, kind: input, shape index: {}]   ;;  %s4412_s2 = inlined_call_operand.hbm [shape: f32[2,8,8,256], index: 2, kind: input, shape index: {}]   ;;  %s4413_s3 = inlined_call_operand.hbm [shape: f32[2,8,256], index: 3, kind: input, shape index: {}]   ;;  %s4414_s4 = inlined_call_operand.hbm [shape: f32[32,384], index: 4, kind: input, shape index: {}]   ;;  %s4415_s5 = inlined_call_operand.hbm [shape: f32[256,2432], index: 5, kind: input, shape index: {}]   ;;  %s4416_s6 = inlined_call_operand.hbm [shape: f32[1,2816], index: 6, kind: input, shape index: {}]   ;;  %s4417_s7 = inlined_call_operand.hbm [shape: f32[2,1,128], index: 7, kind: output, shape index: {}]  }
   0x1   :  { %4432 = sst [smem:[#allocation24_spill]] %s4411_s1 }
   0x2   :  { %4433 = sst [smem:[#allocation25_spill]] %s4414_s4 }
   0x3   :  { %4434 = sst [smem:[#allocation26_spill]] %s4415_s5 }
   0x4   :  { %12 = vsyncpa [#allocation3], 0 }
   0x5   :  { %14 = vsyncpa [#allocation3 + $0x1], 0 }
   0x6   :  { %15 = vsyncpa [#allocation6], 0 }
   0x7   :  { %17 = vsyncpa [#allocation6 + $0x1], 0 }
   0x8   :  { %18 = vsyncpa [#allocation9], 0 }
   0x9   :  { %20 = vsyncpa [#allocation9 + $0x1], 0 }
   0xa   :  { %21 = vsyncpa [#allocation12], 0 }
   0xb   :  { %22 = vsyncpa [#allocation4], 0 }
   0xc   :  { %24 = vsyncpa [#allocation4 + $0x1], 0  ;;  %s3763_s24 = smov 0   ;;  %s3765_s25 = smov 0  }
   0xd   :  { %s3767_s26 = smov 0   ;;  %s3769_s27 = smov 0  }
   0xe LB: > { %4435 = sst [smem:[#allocation21_spill]] %s3700_s26  ;;  %s3784_s28 = sadd.s32 4294967295, %s3704_s27   ;;  %s3704_s27 = sphi %s3769_s27, %s4464_s27   ;;  %s3700_s26 = sphi %s3767_s26, %s4466_s26   ;;  %s3696_s25 = sphi %s3765_s25, %s4468_s25   ;;  %s3692_s24 = sphi %s3763_s24, %s4467_s24  }
   0xf   : > { %s2581_s29 = sadd.s32 4294967294, %s3704_s27   ;;  %p50_p0 = scmp.ne.s32.totalorder %s3696_s25, %s3692_s24 }
  0x10   : > { %p4418_p1 = scmp.eq.s32.totalorder %s3784_s28, 0  ;;  %p221_p3 = scmp.eq.s32.totalorder %s2581_s29, 1 }
  0x11   : > { %p2582_p5 = scmp.ge.s32.totalorder %s3704_s27, 1  ;;  %p228_p7 = scmp.lt.s32.totalorder %s3704_s27, 3 }
  0x12   : > { %p3793_p4 = por %p4418_p1, %p50_p0  ;;  %p3798_p6 = por %p221_p3, %p50_p0 }
  0x13   : > { %p3803_p8 = pnand %p2582_p5, %p228_p7  ;;  %s3706_s10 = smov [#allocation10]  }
  0x14   : > { %s4436_s30 = scalar_select %p3793_p4, 1, 0 }
  0x15   : > { %s4437_s8 = scalar_select %p3798_p6, 1, 0 }
  0x16   : > { %s4438_s9 = scalar_select %p3803_p8, 1, 0 }
  0x17   : > { %s240_s11 = sshll.u32 %s3706_s10, 4  ;;  %p3323_p9 = pneg %p3803_p8  ;;  %s3807_s11 = int_to_ptr.vmem [resolvable:$true] %s240_s11 }
  0x18   : > { %s3707_s13 = smov [#allocation11]   ;;  %s4440_s4 = sld [smem:[#allocation25_spill]] }
  0x19   : > { %p3814_p11 = pnand %p3323_p9, %p4418_p1  ;;  %s253_s14 = sshll.u32 %s3707_s13, 4  ;;  %s3818_s14 = int_to_ptr.vmem [resolvable:$true] %s253_s14 }
  0x1b   : > { %s4439_s12 = scalar_select %p3814_p11, 1, 0 }
  0x1c   : > { %p3828_p13 = pneg %p3814_p11 }
  0x1e   : > { %s3418_s17 = scalar_lea.hbm %s4440_s4, 1536 }
  0x1f   : > { %p3419_p12 = scmp.ne.s32.totalorder %s4440_s4, %s3418_s17  ;;  %p3425_p5 = scmp.lt.u32.totalorder %s3418_s17, %s4440_s4 }
  0x20   : > { %s4441_s20 = scalar_select %p3828_p13, 1, 0 }
  0x21   : > { %p3421_p0 = pnand %p3828_p13, %p3419_p12 }
  0x23   : > { %p3422_p3 = pneg %p3421_p0 }
  0x25   : > { %p3427_p7 = pnand %p3425_p5, %p3422_p3 }
  0x27   : > { %3430 = shalt.err (!%p3427_p7)
}
  0x28   : > { %s3431_s23 = scalar_lea.vmem %s3807_s11, 1536  ;;  %p3439_p2 = scmp.lt.s32.totalorder %s3807_s11, %s3807_s11 }
  0x29   : > { %p3432_p9 = scmp.ne.s32.totalorder %s3807_s11, %s3431_s23  ;;  %p3440_p6 = scmp.lt.s32.totalorder %s3431_s23, %s3431_s23 }
  0x2b   : > { %p3434_p10 = pnand %p3432_p9, %p3828_p13  ;;  %p3441_p12 = por %p3440_p6, %p3439_p2 }
  0x2d   : > { %p3435_p1 = pneg %p3434_p10 }
  0x2f   : > { %p3442_p0 = pnand %p3441_p12, %p3435_p1 }
  0x31   : > { %3445 = shalt.err (!%p3442_p0)
}
  0x32   : > { %s3708_s29 = smov 384   ;;  %s3709_s10 = smov 24  }
  0x33   : > { %3326 = dma.hbm_to_vmem [thread:$0]  (!%p3814_p11), %s4440_s4, 1536, %s3807_s11, [#allocation9], %s3708_s29, %s3708_s29, %s3709_s10  }
  0x34   : > { %s4442_s5 = sld [smem:[#allocation26_spill]] }
  0x3a   : > { %s3446_s18 = scalar_lea.hbm %s4442_s5, 77824 }
  0x3b   : > { %p3447_p2 = scmp.ne.s32.totalorder %s4442_s5, %s3446_s18  ;;  %p3453_p10 = scmp.lt.u32.totalorder %s3446_s18, %s4442_s5 }
  0x3d   : > { %p3449_p1 = pnand %p3447_p2, %p3828_p13 }
  0x3f   : > { %p3450_p6 = pneg %p3449_p1 }
  0x41   : > { %p3455_p3 = pnand %p3453_p10, %p3450_p6 }
  0x43   : > { %3458 = shalt.err (!%p3455_p3)
}
  0x44   : > { %s3459_s11 = scalar_lea.vmem %s3818_s14, 77824  ;;  %p3467_p12 = scmp.lt.s32.totalorder %s3818_s14, %s3818_s14 }
  0x45   : > { %p3460_p5 = scmp.ne.s32.totalorder %s3818_s14, %s3459_s11  ;;  %p3468_p0 = scmp.lt.s32.totalorder %s3459_s11, %s3459_s11 }
  0x47   : > { %p3462_p7 = pnand %p3460_p5, %p3828_p13  ;;  %p3469_p2 = por %p3468_p0, %p3467_p12 }
  0x49   : > { %p3463_p9 = pneg %p3462_p7 }
  0x4b   : > { %p3470_p1 = pnand %p3469_p2, %p3463_p9 }
  0x4d   : > { %3473 = shalt.err (!%p3470_p1)
}
  0x4e   : > { %s3710_s29 = smov 2432   ;;  %s3711_s10 = smov 152  }
  0x4f   : > { %3329 = dma.hbm_to_vmem [thread:$0]  (!%p3814_p11), %s4442_s5, 77824, %s3818_s14, [#allocation12], %s3710_s29, %s3710_s29, %s3711_s10  }
  0x50   : > { %s3873_s16 = sadd.s32 1, %s3704_s27   ;;  %s37_s18 = sadd.s32 1, %s3700_s26 }
  0x51   : > { %4443 = sst [smem:[#allocation22_spill]] %s3873_s16  ;;  %s34_s17 = ssub.s32 %s3704_s27, %s3873_s16 }
  0x52   : > { %p35_p6 = scmp.eq.s32.totalorder %s34_s17, 0  ;;  %p44_p10 = scmp.ne.s32.totalorder %s3700_s26, %s3696_s25 }
  0x53   : > { %p45_p3 = scmp.eq.s32.totalorder %s3704_s27, 0  ;;  %p4445_p7 = scmp.eq.s32.totalorder %s3784_s28, 1 }
  0x54   : > { %s3882_s19 = scalar_select %p35_p6, %s3700_s26, %s37_s18  }
  0x55   : > { %p46_p5 = por %p45_p3, %p44_p10  ;;  %p3886_p9 = por %p4445_p7, %p44_p10 }
  0x56   : > { %4444 = sst [smem:[#allocation23_spill]] %s3882_s19  ;;  %p3353_p12 = scmp.lt.s32.totalorder %s3704_s27, 2 }
  0x57   : > { %s4446_s21 = scalar_select %p3886_p9, 1, 0 }
  0x58   : > { %s3892_s22 = sand.u32 1, %s3700_s26   ;;  %s4421_s14 = sand.u32 1, %s3704_s27  }
  0x59   : > { %s2589_s23 = sshll.u32 %s3892_s22, 1  ;;  %p3896_p0 = pnand %p3353_p12, %p46_p5 }
  0x5a   : > { %s2625_s29 = sshll.u32 %s3704_s27, 5  ;;  %s4448_s1 = sld [smem:[#allocation24_spill]] }
  0x5b   : > { %s4447_s11 = scalar_select %p3896_p0, 1, 0 }
  0x5c   : > { %s300_s17 = scalar_lea.vmem [#allocation5], %s2589_s23  ;;  %s3910_s4 = scalar_lea.sflag [#allocation6], %s4421_s14 }
  0x5d   : > { %s308_s18 = sshll.u32 %s300_s17, 4  ;;  %p3916_p1 = pneg %p3896_p0  ;;  %s3906_s18 = int_to_ptr.vmem [resolvable:$true] %s308_s18 }
  0x60   : > { %s3904_s15 = scalar_lea.hbm %s4448_s1, %s2625_s29  ;;  %s3479_s23 = scalar_lea.hbm %s4448_s1, 64 }
  0x61   : > { %s3474_s5 = scalar_lea.hbm %s3904_s15, 32  ;;  %p3480_p3 = scmp.lt.u32.totalorder %s3904_s15, %s4448_s1 }
  0x62   : > { %p3475_p2 = scmp.ne.s32.totalorder %s3904_s15, %s3474_s5  ;;  %p3481_p5 = scmp.lt.u32.totalorder %s3479_s23, %s3474_s5 }
  0x63   : > { %p3483_p12 = scmp.lt.u32.totalorder %s3474_s5, %s3904_s15 }
  0x64   : > { %p3477_p6 = pnand %p3916_p1, %p3475_p2  ;;  %p3482_p7 = por %p3481_p5, %p3480_p3 }
  0x66   : > { %p3478_p10 = pneg %p3477_p6  ;;  %p3484_p9 = por %p3483_p12, %p3482_p7 }
  0x68   : > { %p3485_p4 = pnand %p3484_p9, %p3478_p10 }
  0x6a   : > { %3488 = shalt.err (!%p3485_p4)
}
  0x6b   : > { %s3489_s14 = scalar_lea.vmem %s3906_s18, 32  ;;  %s3712_s29 = smov [#allocation5]  }
  0x6c   : > { %p3490_p2 = scmp.ne.s32.totalorder %s3906_s18, %s3489_s14  ;;  %s3494_s10 = sshll.u32 %s3712_s29, 4  ;;  %s3495_s10 = int_to_ptr.vmem [resolvable:$false] %s3494_s10 }
  0x6d   : > { %s3496_s13 = scalar_lea.vmem %s3495_s10, 64  ;;  %p3497_p11 = scmp.lt.s32.totalorder %s3906_s18, %s3495_s10 }
  0x6e   : > { %p3492_p6 = pnand %p3490_p2, %p3916_p1  ;;  %p3498_p13 = scmp.lt.s32.totalorder %s3496_s13, %s3489_s14 }
  0x70   : > { %p3493_p8 = pneg %p3492_p6  ;;  %p3499_p3 = por %p3498_p13, %p3497_p11 }
  0x72   : > { %p3500_p5 = pnand %p3499_p3, %p3493_p8 }
  0x74   : > { %3503 = shalt.err (!%p3500_p5)
}
  0x75   : > { %3339 = dma.hbm_to_vmem [thread:$0]  (!%p3896_p0), %s3904_s15, 32, %s3906_s18, %s3910_s4  }
  0x76   : > { %s3713_s5 = smov [#allocation13]   ;;  %s2587_s17 = sshll.u32 %s3892_s22, 3 }
  0x77   : > { %s267_s23 = sshll.u32 %s3713_s5, 4  ;;  %s3504_s10 = scalar_lea.hbm %s4416_s6, 352  ;;  %s268_s23 = int_to_ptr.vmem [resolvable:$true] %s267_s23 }
  0x78   : > { %p3505_p4 = scmp.ne.s32.totalorder %s4416_s6, %s3504_s10  ;;  %p4450_p8 = scmp.ne.s32.totalorder %s4441_s20, 0 }
  0x79   : > { %p3511_p9 = scmp.lt.u32.totalorder %s3504_s10, %s4416_s6 }
  0x7a   : > { %p3507_p11 = pnand %p3505_p4, %p4450_p8 }
  0x7c   : > { %p3508_p13 = pneg %p3507_p11 }
  0x7e   : > { %p3513_p10 = pnand %p3511_p9, %p3508_p13 }
  0x80   : > { %3516 = shalt.err (!%p3513_p10)
}
  0x81   : > { %s3517_s15 = scalar_lea.vmem %s268_s23, 352  ;;  %p3525_p6 = scmp.lt.s32.totalorder %s268_s23, %s268_s23 }
  0x82   : > { %p3518_p7 = scmp.ne.s32.totalorder %s268_s23, %s3517_s15  ;;  %p3526_p3 = scmp.lt.s32.totalorder %s3517_s15, %s3517_s15 }
  0x84   : > { %p3520_p12 = pnand %p3518_p7, %p4450_p8  ;;  %p3527_p5 = por %p3526_p3, %p3525_p6 }
  0x86   : > { %p3521_p2 = pneg %p3520_p12 }
  0x88   : > { %p3528_p0 = pnand %p3527_p5, %p3521_p2 }
  0x8a   : > { %3531 = shalt.err (!%p3528_p0)
}
  0x8b   : > { %p4451_p4 = scmp.ne.s32.totalorder %s4439_s12, 0  ;;  %s2588_s26 = sshll.u32 %s3704_s27, 7 }
  0x8c   : > { %s3963_s5 = scalar_lea.hbm %s4410_s0, %s2588_s26  ;;  %s282_s29 = scalar_lea.vmem [#allocation2], %s2587_s17 }
  0x8d   : > { %3332 = dma.hbm_to_vmem [thread:$0]  (!%p4451_p4), %s4416_s6, 352, %s268_s23, [#allocation12]  }
  0x8e   : > { %s289_s12 = sshll.u32 %s282_s29, 4  ;;  %s2592_s10 = sshll.u32 %s3892_s22, 7  ;;  %s3965_s12 = int_to_ptr.vmem [resolvable:$true] %s289_s12 }
  0x8f   : > { %s279_s14 = scalar_lea.sflag [#allocation3], %s3892_s22  ;;  %s3532_s13 = scalar_lea.hbm %s3963_s5, 128 }
  0x90   : > { %p3533_p0 = scmp.ne.s32.totalorder %s3963_s5, %s3532_s13  ;;  %s3537_s1 = scalar_lea.hbm %s4410_s0, 256 }
  0x91   : > { %p3538_p13 = scmp.lt.u32.totalorder %s3963_s5, %s4410_s0  ;;  %p3539_p9 = scmp.lt.u32.totalorder %s3537_s1, %s3532_s13 }
  0x92   : > { %p3535_p8 = pnand %p3533_p0, %p3916_p1  ;;  %p3541_p7 = scmp.lt.u32.totalorder %s3532_s13, %s3963_s5 }
  0x93   : > { %p3540_p10 = por %p3539_p9, %p3538_p13 }
  0x94   : > { %p3536_p11 = pneg %p3535_p8 }
  0x95   : > { %p3542_p12 = por %p3541_p7, %p3540_p10 }
  0x97   : > { %p3543_p2 = pnand %p3542_p12, %p3536_p11 }
  0x99   : > { %3546 = shalt.err (!%p3543_p2)
}
  0x9a   : > { %s3547_s17 = scalar_lea.vmem %s3965_s12, 128  ;;  %s3714_s16 = smov [#allocation2]  }
  0x9b   : > { %p3548_p6 = scmp.ne.s32.totalorder %s3965_s12, %s3547_s17  ;;  %s3552_s20 = sshll.u32 %s3714_s16, 4  ;;  %s3553_s20 = int_to_ptr.vmem [resolvable:$false] %s3552_s20 }
  0x9c   : > { %s3554_s29 = scalar_lea.vmem %s3553_s20, 256  ;;  %p3555_p4 = scmp.lt.s32.totalorder %s3965_s12, %s3553_s20 }
  0x9d   : > { %p3550_p3 = pnand %p3548_p6, %p3916_p1  ;;  %p3556_p0 = scmp.lt.s32.totalorder %s3554_s29, %s3547_s17 }
  0x9f   : > { %p3551_p5 = pneg %p3550_p3  ;;  %p3557_p8 = por %p3556_p0, %p3555_p4 }
  0xa1   : > { %p3558_p13 = pnand %p3557_p8, %p3551_p5 }
  0xa3   : > { %3561 = shalt.err (!%p3558_p13)
}
  0xa4   : > { %p4452_p11 = scmp.ne.s32.totalorder %s4447_s11, 0  ;;  %s2626_s13 = sshll.u32 %s3704_s27, 11 }
  0xa5   : > { %s3994_s1 = scalar_lea.hbm %s4412_s2, %s2626_s13  ;;  %s319_s18 = scalar_lea.vmem [#allocation7], %s2592_s10 }
  0xa6   : > { %3336 = dma.hbm_to_vmem [thread:$0]  (!%p4452_p11), %s3963_s5, 128, %s3965_s12, %s279_s14  }
  0xa7   : > { %s326_s26 = sshll.u32 %s319_s18, 4  ;;  %s2595_s17 = sshll.u32 %s3892_s22, 4  ;;  %s3998_s26 = int_to_ptr.vmem [resolvable:$true] %s326_s26 }
  0xa8   : > { %s3562_s16 = scalar_lea.hbm %s3994_s1, 2048  ;;  %s3567_s14 = scalar_lea.hbm %s4412_s2, 4096 }
  0xa9   : > { %p3563_p9 = scmp.ne.s32.totalorder %s3994_s1, %s3562_s16  ;;  %p3568_p12 = scmp.lt.u32.totalorder %s3994_s1, %s4412_s2 }
  0xaa   : > { %p3569_p2 = scmp.lt.u32.totalorder %s3567_s14, %s3562_s16  ;;  %p3571_p3 = scmp.lt.u32.totalorder %s3562_s16, %s3994_s1 }
  0xab   : > { %p3565_p10 = pnand %p3563_p9, %p3916_p1 }
  0xac   : > { %p3570_p6 = por %p3569_p2, %p3568_p12 }
  0xad   : > { %p3566_p7 = pneg %p3565_p10 }
  0xae   : > { %p3572_p5 = por %p3571_p3, %p3570_p6 }
  0xb0   : > { %p3573_p4 = pnand %p3572_p5, %p3566_p7 }
  0xb2   : > { %3576 = shalt.err (!%p3573_p4)
}
  0xb3   : > { %s3577_s10 = scalar_lea.vmem %s3998_s26, 2048  ;;  %s3715_s13 = smov [#allocation7]  }
  0xb4   : > { %p3578_p0 = scmp.ne.s32.totalorder %s3998_s26, %s3577_s10  ;;  %s3582_s23 = sshll.u32 %s3715_s13, 4  ;;  %s3583_s23 = int_to_ptr.vmem [resolvable:$false] %s3582_s23 }
  0xb5   : > { %s3584_s15 = scalar_lea.vmem %s3583_s23, 4096  ;;  %p3585_p9 = scmp.lt.s32.totalorder %s3998_s26, %s3583_s23 }
  0xb6   : > { %p3580_p8 = pnand %p3578_p0, %p3916_p1  ;;  %p3586_p10 = scmp.lt.s32.totalorder %s3584_s15, %s3577_s10 }
  0xb8   : > { %p3581_p13 = pneg %p3580_p8  ;;  %p3587_p12 = por %p3586_p10, %p3585_p9 }
  0xba   : > { %p3588_p2 = pnand %p3587_p12, %p3581_p13 }
  0xbc   : > { %3591 = shalt.err (!%p3588_p2)
}
  0xbd   : > { %s3716_s18 = smov 256   ;;  %s3717_s16 = smov 16  }
  0xbe   : > { %3342 = dma.hbm_to_vmem [thread:$0]  (!%p4452_p11), %s3994_s1, 2048, %s3998_s26, %s3910_s4, %s3716_s18, %s3716_s18, %s3717_s16  }
  0xbf   : > { %s2627_s5 = sshll.u32 %s3704_s27, 8  ;;  %s340_s29 = scalar_lea.vmem [#allocation8], %s2595_s17 }
  0xc0   : > { %s4027_s20 = scalar_lea.hbm %s4413_s3, %s2627_s5  ;;  %s348_s10 = sshll.u32 %s340_s29, 4  ;;  %s349_s10 = int_to_ptr.vmem [resolvable:$true] %s348_s10 }
  0xc1   : > { %s4453_s13 = sand.u32 1, %s3704_s27   ;;  %s3592_s15 = scalar_lea.hbm %s4027_s20, 256 }
  0xc2   : > { %s337_s23 = scalar_lea.sflag [#allocation9], %s4453_s13  ;;  %p3593_p7 = scmp.ne.s32.totalorder %s4027_s20, %s3592_s15 }
  0xc3   : > { %s3597_s26 = scalar_lea.hbm %s4413_s3, 512  ;;  %p3598_p5 = scmp.lt.u32.totalorder %s4027_s20, %s4413_s3 }
  0xc4   : > { %p3595_p6 = pnand %p3593_p7, %p3916_p1  ;;  %p3599_p4 = scmp.lt.u32.totalorder %s3597_s26, %s3592_s15 }
  0xc5   : > { %p3601_p8 = scmp.lt.u32.totalorder %s3592_s15, %s4027_s20 }
  0xc6   : > { %p3596_p3 = pneg %p3595_p6  ;;  %p3600_p0 = por %p3599_p4, %p3598_p5 }
  0xc8   : > { %p3602_p13 = por %p3601_p8, %p3600_p0 }
  0xca   : > { %p3603_p9 = pnand %p3602_p13, %p3596_p3 }
  0xcc   : > { %3606 = shalt.err (!%p3603_p9)
}
  0xcd   : > { %s3607_s17 = scalar_lea.vmem %s349_s10, 256  ;;  %s3718_s16 = smov [#allocation8]  }
  0xce   : > { %p3608_p10 = scmp.ne.s32.totalorder %s349_s10, %s3607_s17  ;;  %s3612_s5 = sshll.u32 %s3718_s16, 4  ;;  %s3613_s5 = int_to_ptr.vmem [resolvable:$false] %s3612_s5 }
  0xcf   : > { %s3614_s12 = scalar_lea.vmem %s3613_s5, 512  ;;  %p3615_p7 = scmp.lt.s32.totalorder %s349_s10, %s3613_s5 }
  0xd0   : > { %p3610_p12 = pnand %p3608_p10, %p3916_p1  ;;  %p3616_p6 = scmp.lt.s32.totalorder %s3614_s12, %s3607_s17 }
  0xd2   : > { %p3611_p2 = pneg %p3610_p12  ;;  %p3617_p11 = por %p3616_p6, %p3615_p7 }
  0xd4   : > { %p3618_p4 = pnand %p3617_p11, %p3611_p2 }
  0xd6   : > { %3621 = shalt.err (!%p3618_p4)
}
  0xd7   : > { %p4454_p5 = scmp.ne.s32.totalorder %s4447_s11, 0  ;;  %p4455_p3 = scmp.ne.s32.totalorder %s4438_s9, 0 }
  0xd8   : > { %s4053_s19 = sand.u32 (!%p4455_p3), 1, %s3696_s25   ;;  %p4456_p1 = scmp.ne.s32.totalorder (!%p4455_p3), %s4436_s30, 0 }
  0xd9   : > { %3345 = dma.hbm_to_vmem [thread:$0]  (!%p4454_p5), %s4027_s20, 256, %s349_s10, %s337_s23  }
  0xda   : > { %357 = sbr.rel (%p4455_p3) target bundleno = 2786 (0xae2), region = 48  ;;  %s2599_s14 = sshll.u32 (!%p4455_p3), %s4053_s19, 3 }
  0xdb   : > { %s360_s29 = scalar_lea.sflag (!%p4455_p3), [#allocation3], %s4053_s19  ;;  %s4057_s13 = scalar_lea.vmem (!%p4455_p3), [#allocation2], %s2599_s14 }
  0xe1   : > { %3667 = dma.done.wait (%p4456_p1), %s360_s29, 128  }
  0xe2   : > { %3669 = vsyncadd (%p4456_p1), %s360_s29, 4294967168  ;;  %s368_s9 = sand.u32 1, %s3784_s28   ;;  %s2600_s11 = sshll.u32 %s4053_s19, 1 }
  0xe3   : > { %s369_s20 = scalar_lea.sflag [#allocation6], %s368_s9  ;;  %s4065_s10 = scalar_lea.vmem [#allocation5], %s2600_s11 }
  0xe4   : > { %3671 = dma.done.wait (%p4456_p1), %s369_s20, 2080  }
  0xe5   : > { %3673 = vsyncadd (%p4456_p1), %s369_s20, 4294965216  ;;  %s2601_s23 = sshll.u32 %s4053_s19, 7  ;;  %s2602_s15 = sshll.u32 %s4053_s19, 4 }
  0xe6   : > { %s4073_s4 = scalar_lea.vmem [#allocation7], %s2601_s23  ;;  %s387_s1 = scalar_lea.sflag [#allocation9], %s368_s9 }
  0xe7   : > { %s4075_s26 = scalar_lea.vmem [#allocation8], %s2602_s15 }
  0xe8   : > { %3675 = dma.done.wait (%p4456_p1), %s387_s1, 256  }
  0xe9   : > { %3677 = vsyncadd (%p4456_p1), %s387_s1, 4294967040  ;;  %p4457_p11 = scmp.eq.s32.totalorder %s3784_s28, 0 }
  0xeb   : > { %3679 = dma.done.wait (%p4457_p11), [#allocation9], 1536   ;;  %p4458_p0 = pmov %p4457_p11 }
  0xed   : > { %3681 = vsyncadd (%p4458_p0), [#allocation9], 4294965760  ;;  %p4459_p8 = pmov %p4458_p0 }
  0xee   : > { %p4460_p13 = pmov %p4458_p0 }
  0xef   : > { %3683 = dma.done.wait (%p4459_p8), [#allocation12], 78176  }
  0xf0   : > { %3685 = vsyncadd (%p4460_p13), [#allocation12], 4294889120  ;;  %v3719_v0 = vmov 0.0   ;;  %v545_v1 = vld [vmem:[#allocation11 + $0x8] sm:$0xff]  ;;  %v547_v2 = vld [vmem:[#allocation11 + $0xa0] sm:$0xff]  ;;  %v458_v30 = vlaneseq  ;;  %vm468_vm0 = vcmask 261120  }
  0xf1   : > { %536 = vmatprep.mubr.f32.mxu0 %v3719_v0  ;;  %v544_v3 = vld [vmem:[#allocation11] sm:$0xff]  ;;  %v2687_v4 = vpack.c.bf16 %v547_v2, %v545_v1  ;;  %v546_v5 = vld [vmem:[#allocation11 + $0x98] sm:$0xff]  ;;  %v551_v7 = vld [vmem:[#allocation11 + $0x1d0] sm:$0xff]  ;;  %vm3721_vm1 = vmmov 0   ;;  %s2622_s30 = sshll.u32 %s3784_s28, 4  ;;  %s446_s18 = scalar_lea.vmem [#allocation14], %s4053_s19 }
  0xf2   : > { %v549_v6 = vld [vmem:[#allocation11 + $0x138] sm:$0xff]  ;;  %v2689_v8 = vpack.c.bf16 %v546_v5, %v544_v3  ;;  %v548_v10 = vld [vmem:[#allocation11 + $0x130] sm:$0xff]  ;;  %v550_v11 = vld [vmem:[#allocation11 + $0x1c8] sm:$0xff]  ;;  %v4090_v37 = vshrl.u32 %v458_v30, 7  ;;  %s2421_s22 = sshll.u32 %s446_s18, 4  ;;  %s4366_s5 = scalar_lea.hbm %s4417_s7, %s2622_s30  ;;  %s4368_s22 = int_to_ptr.vmem [resolvable:$true] %s2421_s22 }
  0xf3   : > { %v2691_v9 = vpack.c.bf16 %v551_v7, %v549_v6  ;;  %v553_v12 = vld [vmem:[#allocation11 + $0x268] sm:$0xff]  ;;  %2688 = vmatprep.subr.bf16.mxu1 %v2687_v4  ;;  %v555_v13 = vld [vmem:[#allocation11 + $0x300] sm:$0xff]  ;;  %v2693_v14 = vpack.c.bf16 %v550_v11, %v548_v10  ;;  %v554_v17 = vld [vmem:[#allocation11 + $0x2f8] sm:$0xff]  ;;  %s2409_s12 = scalar_lea.sflag [#allocation4], %s4053_s19  ;;  %s3622_s14 = scalar_lea.vmem %s4368_s22, 16 }
  0xf4   : > { %2690 = vmatpush1.bf16.msra.mxu1 %v2689_v8  ;;  %v2695_v15 = vpack.c.bf16 %v555_v13, %v553_v12  ;;  %v552_v16 = vld [vmem:[#allocation11 + $0x260] sm:$0xff]  ;;  %v557_v18 = vld [vmem:[#allocation11 + $0x398] sm:$0xff]  ;;  %v559_v19 = vld [vmem:[#allocation11 + $0x430] sm:$0xff]  ;;  %v4093_v50 = vsub.s32 1, %v4090_v37  ;;  %p3623_p9 = scmp.ne.s32.totalorder %s4368_s22, %s3622_s14  ;;  %p4461_p10 = scmp.ne.s32.totalorder %s4446_s21, 0 }
  0xf5   : > { %2692 = vmatprep.subr.bf16.mxu1 %v2691_v9  ;;  %v2697_v20 = vpack.c.bf16 %v554_v17, %v552_v16  ;;  %v2699_v21 = vpack.c.bf16 %v559_v19, %v557_v18  ;;  %v556_v22 = vld [vmem:[#allocation11 + $0x390] sm:$0xff]  ;;  %v558_v23 = vld [vmem:[#allocation11 + $0x428] sm:$0xff]  ;;  %v563_v25 = vld [vmem:[#allocation11 + $0x560] sm:$0xff]  ;;  %s3722_s28 = smov [#allocation14]  }
  0xf6   : > { %v561_v24 = vld [vmem:[#allocation11 + $0x4c8] sm:$0xff]  ;;  %v2701_v26 = vpack.c.bf16 %v558_v23, %v556_v22  ;;  %v560_v28 = vld [vmem:[#allocation11 + $0x4c0] sm:$0xff]  ;;  %v562_v29 = vld [vmem:[#allocation11 + $0x558] sm:$0xff]  ;;  %p3624_p12 = pnand %p3623_p9, %p4461_p10  ;;  %s3626_s29 = sshll.u32 %s3722_s28, 4  ;;  %s3627_s29 = int_to_ptr.vmem [resolvable:$false] %s3626_s29 }
  0xf7   : > { %v2703_v27 = vpack.c.bf16 %v563_v25, %v561_v24  ;;  %v565_v31 = vld [vmem:[#allocation11 + $0x5f8] sm:$0xff]  ;;  %v567_v32 = vld [vmem:[#allocation11 + $0x690] sm:$0xff]  ;;  %v2705_v33 = vpack.c.bf16 %v562_v29, %v560_v28  ;;  %v566_v36 = vld [vmem:[#allocation11 + $0x688] sm:$0xff]  ;;  %p3629_p7 = scmp.lt.s32.totalorder %s4368_s22, %s3627_s29 }
  0xf8   : > { %2694 = vmatpush1.bf16.msra.mxu1 %v2693_v14  ;;  %v2707_v34 = vpack.c.bf16 %v567_v32, %v565_v31  ;;  %v564_v35 = vld [vmem:[#allocation11 + $0x5f0] sm:$0xff]  ;;  %v569_v38 = vld [vmem:[#allocation11 + $0x728] sm:$0xff]  ;;  %v571_v39 = vld [vmem:[#allocation11 + $0x7c0] sm:$0xff]  ;;  %p3625_p2 = pneg %p3624_p12 }
  0xf9   : > { %2696 = vmatprep.subr.bf16.mxu1 %v2695_v15  ;;  %v449_v40 = vld [vmem:[#allocation10 + $0x8] sm:$0xff]  ;;  %v451_v41 = vld [vmem:[#allocation10 + $0x20] sm:$0xff]  ;;  %v2709_v42 = vpack.c.bf16 %v566_v36, %v564_v35  ;;  %v2711_v46 = vpack.c.bf16 %v571_v39, %v569_v38  ;;  %v570_v47 = vld [vmem:[#allocation11 + $0x7b8] sm:$0xff] }
  0xfa   : > { %v568_v43 = vld [vmem:[#allocation11 + $0x720] sm:$0xff]  ;;  %v2679_v44 = vpack.c.bf16 %v451_v41, %v449_v40  ;;  %v573_v48 = vld [vmem:[#allocation11 + $0x858] sm:$0xff]  ;;  %v575_v51 = vld [vmem:[#allocation11 + $0x8f0] sm:$0xff] }
  0xfb   : > { %v448_v45 = vld [vmem:[#allocation10] sm:$0xff]  ;;  %v450_v49 = vld [vmem:[#allocation10 + $0x18] sm:$0xff]  ;;  %v455_v54 = vld [vmem:[#allocation10 + $0x50] sm:$0xff]  ;;  %v2713_v60 = vpack.c.bf16 %v570_v47, %v568_v43  ;;  %v2715_v2 = vpack.c.bf16 %v575_v51, %v573_v48 }
  0xfc   : > { %2698 = vmatpush1.bf16.msra.mxu1 %v2697_v20  ;;  %2680 = vmatprep.subr.bf16.mxu0 %v2679_v44  ;;  %v2681_v52 = vpack.c.bf16 %v450_v49, %v448_v45  ;;  %v453_v53 = vld [vmem:[#allocation10 + $0x38] sm:$0xff]  ;;  %v572_v55 = vld [vmem:[#allocation11 + $0x850] sm:$0xff]  ;;  %v574_v56 = vld [vmem:[#allocation11 + $0x8e8] sm:$0xff] }
  0xfd   : > { %2700 = vmatprep.subr.bf16.mxu1 %v2699_v21  ;;  %v2683_v57 = vpack.c.bf16 %v455_v54, %v453_v53  ;;  %v452_v58 = vld [vmem:[#allocation10 + $0x30] sm:$0xff]  ;;  %v454_v59 = vld [vmem:[#allocation10 + $0x48] sm:$0xff]  ;;  %v4096_v63 = vld [vmem:[%s4065_s10] sm:$0x3]  ;;  %v2717_v11 = vpack.c.bf16 %v574_v56, %v572_v55 }
  0xfe   : > { %v577_v61 = vld [vmem:[#allocation11 + $0x988] sm:$0xff]  ;;  %2682 = vmatpush1.bf16.msra.mxu0 %v2681_v52  ;;  %v2685_v62 = vpack.c.bf16 %v454_v59, %v452_v58  ;;  %v834_v1 = vld [vmem:[#allocation11 + $0x18] sm:$0xff]  ;;  %v617_v3 = vrot.slane %v4096_v63, %v4093_v50  ;;  %v836_v4 = vld [vmem:[#allocation11 + $0xb0] sm:$0xff] }
  0xff   : > { %2684 = vmatprep.subr.bf16.mxu0 %v2683_v57  ;;  %v833_v5 = vld [vmem:[#allocation11 + $0x10] sm:$0xff]  ;;  %v835_v6 = vld [vmem:[#allocation11 + $0xa8] sm:$0xff]  ;;  %v579_v7 = vld [vmem:[#allocation11 + $0xa20] sm:$0xff]  ;;  %v2751_v8 = vpack.c.bf16 %v836_v4, %v834_v1 }
 0x100   : > { %2702 = vmatpush1.bf16.msra.mxu1 %v2701_v26  ;;  %v838_v9 = vld [vmem:[#allocation11 + $0x148] sm:$0xff]  ;;  %v840_v10 = vld [vmem:[#allocation11 + $0x1e0] sm:$0xff]  ;;  %695 = vmatprep.mubr.f32.mxu1 %v617_v3  ;;  %v578_v13 = vld [vmem:[#allocation11 + $0xa18] sm:$0xff]  ;;  %v2753_v15 = vpack.c.bf16 %v835_v6, %v833_v5  ;;  %v2719_v16 = vpack.c.bf16 %v579_v7, %v577_v61 }
 0x101   : > { %2704 = vmatprep.subr.bf16.mxu1 %v2703_v27  ;;  %v576_v12 = vld [vmem:[#allocation11 + $0x980] sm:$0xff]  ;;  %v447_v14 = vld [vmem:[%s4057_s13] sm:$0xff]  ;;  %v2755_v18 = vpack.c.bf16 %v840_v10, %v838_v9  ;;  %s3628_s13 = scalar_lea.vmem %s3627_s29, 32 }
 0x102   : > { %2686 = vmatpush1.bf16.msra.mxu0 %v2685_v62  ;;  %v581_v17 = vld [vmem:[#allocation11 + $0xab8] sm:$0xff]  ;;  %v837_v19 = vld [vmem:[#allocation11 + $0x140] sm:$0xff]  ;;  %v583_v21 = vld [vmem:[#allocation11 + $0xb50] sm:$0xff]  ;;  %v2721_v24 = vpack.c.bf16 %v578_v13, %v576_v12  ;;  %p3630_p6 = scmp.lt.s32.totalorder %s3628_s13, %s3622_s14 }
 0x103   : > { %2752 = vmatprep.subr.bf16.mxu0 %v2751_v8  ;;  %v839_v20 = vld [vmem:[#allocation11 + $0x1d8] sm:$0xff]  ;;  %v844_v23 = vld [vmem:[#allocation11 + $0x310] sm:$0xff]  ;;  %v582_v26 = vld [vmem:[#allocation11 + $0xb48] sm:$0xff]  ;;  %v2723_v28 = vpack.c.bf16 %v583_v21, %v581_v17 }
 0x104   : > { %2706 = vmatpush1.bf16.msra.mxu1 %v2705_v33  ;;  %v842_v22 = vld [vmem:[#allocation11 + $0x278] sm:$0xff]  ;;  %v580_v25 = vld [vmem:[#allocation11 + $0xab0] sm:$0xff]  ;;  %v2757_v27 = vpack.c.bf16 %v839_v20, %v837_v19  ;;  %v585_v29 = vld [vmem:[#allocation11 + $0xbe8] sm:$0xff]  ;;  %p3631_p4 = por %p3630_p6, %p3629_p7 }
 0x105   : > { %2708 = vmatprep.subr.bf16.mxu1 %v2707_v34  ;;  %2606 = vmatmul.mubr.msk.f32.vlgmr.msra.gmra.mrb[0].mxu0 %vm468_vm0, %v447_v14  ;;  %v2759_v30 = vpack.c.bf16 %v844_v23, %v842_v22  ;;  %v841_v31 = vld [vmem:[#allocation11 + $0x270] sm:$0xff]  ;;  %v843_v32 = vld [vmem:[#allocation11 + $0x308] sm:$0xff]  ;;  %v587_v33 = vld [vmem:[#allocation11 + $0xc80] sm:$0xff]  ;;  %v2725_v36 = vpack.c.bf16 %v582_v26, %v580_v25 }
 0x106   : > { %2754 = vmatpush1.bf16.msra.mxu0 %v2753_v15  ;;  %v846_v34 = vld [vmem:[#allocation11 + $0x3a8] sm:$0xff]  ;;  %v848_v35 = vld [vmem:[#allocation11 + $0x440] sm:$0xff]  ;;  %v586_v39 = vld [vmem:[#allocation11 + $0xc78] sm:$0xff]  ;;  %v2761_v40 = vpack.c.bf16 %v843_v32, %v841_v31  ;;  %v2727_v41 = vpack.c.bf16 %v587_v33, %v585_v29  ;;  %p3632_p5 = pnand %p3631_p4, %p3625_p2 }
 0x107   : > { %2756 = vmatprep.subr.bf16.mxu0 %v2755_v18  ;;  %v584_v38 = vld [vmem:[#allocation11 + $0xbe0] sm:$0xff]  ;;  %v2763_v43 = vpack.c.bf16 %v848_v35, %v846_v34  ;;  %v847_v45 = vld [vmem:[#allocation11 + $0x438] sm:$0xff]  ;;  %v852_v48 = vld [vmem:[#allocation11 + $0x570] sm:$0xff] }
 0x108   : > { %2710 = vmatpush1.bf16.msra.mxu1 %v2709_v42  ;;  %v589_v42 = vld [vmem:[#allocation11 + $0xd18] sm:$0xff]  ;;  %v845_v44 = vld [vmem:[#allocation11 + $0x3a0] sm:$0xff]  ;;  %v2729_v49 = vpack.c.bf16 %v586_v39, %v584_v38  ;;  %v588_v51 = vld [vmem:[#allocation11 + $0xd10] sm:$0xff] }
 0x109   : > { %2712 = vmatprep.subr.bf16.mxu1 %v2711_v46  ;;  %v591_v46 = vld [vmem:[#allocation11 + $0xdb0] sm:$0xff]  ;;  %v850_v47 = vld [vmem:[#allocation11 + $0x4d8] sm:$0xff]  ;;  %v590_v52 = vld [vmem:[#allocation11 + $0xda8] sm:$0xff]  ;;  %v2765_v53 = vpack.c.bf16 %v847_v45, %v845_v44  ;;  %v4103_v45 = vsub.s32 0, %v4090_v37 }
 0x10a   : > { %2758 = vmatpush1.bf16.msra.mxu0 %v2757_v27  ;;  %v2731_v54 = vpack.c.bf16 %v591_v46, %v589_v42  ;;  %v593_v55 = vld [vmem:[#allocation11 + $0xe48] sm:$0xff]  ;;  %v2767_v56 = vpack.c.bf16 %v852_v48, %v850_v47  ;;  %v849_v57 = vld [vmem:[#allocation11 + $0x4d0] sm:$0xff]  ;;  %v595_v59 = vld [vmem:[#allocation11 + $0xee0] sm:$0xff]  ;;  %v2733_v62 = vpack.c.bf16 %v590_v52, %v588_v51 }
 0x10b   : > { %2760 = vmatprep.subr.bf16.mxu0 %v2759_v30  ;;  %v851_v58 = vld [vmem:[#allocation11 + $0x568] sm:$0xff]  ;;  %v856_v61 = vld [vmem:[#allocation11 + $0x6a0] sm:$0xff]  ;;  %v2735_v4 = vpack.c.bf16 %v595_v59, %v593_v55  ;;  %v597_v5 = vld [vmem:[#allocation11 + $0xf78] sm:$0xff]  ;;  %v613_v48 = vrot.slane %v4096_v63, %v4103_v45 }
 0x10c   : > { %2714 = vmatpush1.bf16.msra.mxu1 %v2713_v60  ;;  %v854_v60 = vld [vmem:[#allocation11 + $0x608] sm:$0xff]  ;;  %v592_v1 = vld [vmem:[#allocation11 + $0xe40] sm:$0xff]  ;;  %v2769_v3 = vpack.c.bf16 %v851_v58, %v849_v57  ;;  %v855_v8 = vld [vmem:[#allocation11 + $0x698] sm:$0xff] }
 0x10d   : > { %2716 = vmatprep.subr.bf16.mxu1 %v2715_v2  ;;  %v594_v2 = vld [vmem:[#allocation11 + $0xed8] sm:$0xff]  ;;  %v2771_v6 = vpack.c.bf16 %v856_v61, %v854_v60  ;;  %v853_v7 = vld [vmem:[#allocation11 + $0x600] sm:$0xff]  ;;  %v599_v9 = vld [vmem:[#allocation11 + $0x1010] sm:$0xff] }
 0x10e   : > { %2762 = vmatpush1.bf16.msra.mxu0 %v2761_v40  ;;  %v858_v10 = vld [vmem:[#allocation11 + $0x738] sm:$0xff]  ;;  %v2737_v12 = vpack.c.bf16 %v594_v2, %v592_v1  ;;  %v596_v13 = vld [vmem:[#allocation11 + $0xf70] sm:$0xff]  ;;  %v598_v14 = vld [vmem:[#allocation11 + $0x1008] sm:$0xff]  ;;  %v2773_v15 = vpack.c.bf16 %v855_v8, %v853_v7 }
 0x10f   : > { %2764 = vmatprep.subr.bf16.mxu0 %v2763_v43  ;;  %v601_v17 = vld [vmem:[#allocation11 + $0x10a8] sm:$0xff]  ;;  %v857_v19 = vld [vmem:[#allocation11 + $0x730] sm:$0xff]  ;;  %v603_v21 = vld [vmem:[#allocation11 + $0x1140] sm:$0xff] }
 0x110   : > { %2718 = vmatpush1.bf16.msra.mxu1 %v2717_v11  ;;  %v860_v11 = vld [vmem:[#allocation11 + $0x7d0] sm:$0xff]  ;;  %v859_v20 = vld [vmem:[#allocation11 + $0x7c8] sm:$0xff]  ;;  %v864_v23 = vld [vmem:[#allocation11 + $0x900] sm:$0xff] }
 0x111   : > { %2720 = vmatprep.subr.bf16.mxu1 %v2719_v16  ;;  %v2739_v16 = vpack.c.bf16 %v599_v9, %v597_v5  ;;  %v2775_v18 = vpack.c.bf16 %v860_v11, %v858_v10  ;;  %v862_v22 = vld [vmem:[#allocation11 + $0x868] sm:$0xff]  ;;  %v600_v25 = vld [vmem:[#allocation11 + $0x10a0] sm:$0xff]  ;;  %v602_v26 = vld [vmem:[#allocation11 + $0x1138] sm:$0xff]  ;;  %v2777_v27 = vpack.c.bf16 %v859_v20, %v857_v19 }
 0x112   : > { %2766 = vmatpush1.bf16.msra.mxu0 %v2765_v53  ;;  %v605_v29 = vld [vmem:[#allocation11 + $0x11d8] sm:$0xff]  ;;  %v2779_v30 = vpack.c.bf16 %v864_v23, %v862_v22  ;;  %v861_v31 = vld [vmem:[#allocation11 + $0x860] sm:$0xff]  ;;  %v607_v33 = vld [vmem:[#allocation11 + $0x1270] sm:$0xff] }
 0x113   : > { %2768 = vmatprep.subr.bf16.mxu0 %v2767_v56  ;;  %v863_v32 = vld [vmem:[#allocation11 + $0x8f8] sm:$0xff]  ;;  %v868_v35 = vld [vmem:[#allocation11 + $0xa30] sm:$0xff]  ;;  %v2747_v40 = vpack.c.bf16 %v607_v33, %v605_v29  ;;  %v867_v44 = vld [vmem:[#allocation11 + $0xa28] sm:$0xff] }
 0x114   : > { %2722 = vmatpush1.bf16.msra.mxu1 %v2721_v24  ;;  %v2741_v24 = vpack.c.bf16 %v598_v14, %v596_v13  ;;  %v866_v34 = vld [vmem:[#allocation11 + $0x998] sm:$0xff]  ;;  %v604_v38 = vld [vmem:[#allocation11 + $0x11d0] sm:$0xff]  ;;  %v2781_v39 = vpack.c.bf16 %v863_v32, %v861_v31  ;;  %v872_v51 = vld [vmem:[#allocation11 + $0xb60] sm:$0xff] }
 0x115   : > { %2724 = vmatprep.subr.bf16.mxu1 %v2723_v28  ;;  %v2743_v28 = vpack.c.bf16 %v603_v21, %v601_v17  ;;  %v2783_v42 = vpack.c.bf16 %v868_v35, %v866_v34  ;;  %v865_v43 = vld [vmem:[#allocation11 + $0x990] sm:$0xff]  ;;  %v869_v53 = vld [vmem:[#allocation11 + $0xac0] sm:$0xff]  ;;  %v874_v56 = vld [vmem:[#allocation11 + $0xbf8] sm:$0xff] }
 0x116   : > { %2770 = vmatpush1.bf16.msra.mxu0 %v2769_v3  ;;  %v2785_v47 = vpack.c.bf16 %v867_v44, %v865_v43  ;;  %v876_v57 = vld [vmem:[#allocation11 + $0xc90] sm:$0xff]  ;;  %v875_v60 = vld [vmem:[#allocation11 + $0xc88] sm:$0xff]  ;;  %v877_v2 = vld [vmem:[#allocation11 + $0xd20] sm:$0xff] }
 0x117   : > { %2772 = vmatprep.subr.bf16.mxu0 %v2771_v6  ;;  %v2791_v58 = vpack.c.bf16 %v876_v57, %v874_v56  ;;  %v873_v59 = vld [vmem:[#allocation11 + $0xbf0] sm:$0xff]  ;;  %v878_v63 = vld [vmem:[#allocation11 + $0xd28] sm:$0xff]  ;;  %v879_v3 = vld [vmem:[#allocation11 + $0xdb8] sm:$0xff] }
 0x118   : > { %2726 = vmatpush1.bf16.msra.mxu1 %v2725_v36  ;;  %v2745_v36 = vpack.c.bf16 %v602_v26, %v600_v25  ;;  %v2793_v61 = vpack.c.bf16 %v875_v60, %v873_v59  ;;  %v882_v5 = vld [vmem:[#allocation11 + $0xe58] sm:$0xff]  ;;  %v884_v6 = vld [vmem:[#allocation11 + $0xef0] sm:$0xff]  ;;  %v883_v9 = vld [vmem:[#allocation11 + $0xee8] sm:$0xff] }
 0x119   : > { %2728 = vmatprep.subr.bf16.mxu1 %v2727_v41  ;;  %v606_v41 = vld [vmem:[#allocation11 + $0x1268] sm:$0xff]  ;;  %v881_v7 = vld [vmem:[#allocation11 + $0xe50] sm:$0xff]  ;;  %v2799_v8 = vpack.c.bf16 %v884_v6, %v882_v5  ;;  %v888_v11 = vld [vmem:[#allocation11 + $0x1020] sm:$0xff] }
 0x11a   : > { %2774 = vmatpush1.bf16.msra.mxu0 %v2773_v15  ;;  %v2749_v46 = vpack.c.bf16 %v606_v41, %v604_v38  ;;  %v886_v10 = vld [vmem:[#allocation11 + $0xf88] sm:$0xff]  ;;  %v885_v14 = vld [vmem:[#allocation11 + $0xf80] sm:$0xff]  ;;  %v887_v15 = vld [vmem:[#allocation11 + $0x1018] sm:$0xff] }
 0x11b   : > { %2776 = vmatprep.subr.bf16.mxu0 %v2775_v18  ;;  %v2803_v13 = vpack.c.bf16 %v888_v11, %v886_v10  ;;  %v892_v17 = vld [vmem:[#allocation11 + $0x1150] sm:$0xff]  ;;  %v2805_v18 = vpack.c.bf16 %v887_v15, %v885_v14  ;;  %v891_v21 = vld [vmem:[#allocation11 + $0x1148] sm:$0xff]  ;;  %v896_v23 = vld [vmem:[#allocation11 + $0x1280] sm:$0xff] }
 0x11c   : > { %2730 = vmatpush1.bf16.msra.mxu1 %v2729_v49  ;;  %v870_v49 = vld [vmem:[#allocation11 + $0xac8] sm:$0xff]  ;;  %v889_v20 = vld [vmem:[#allocation11 + $0x10b0] sm:$0xff]  ;;  %v893_v26 = vld [vmem:[#allocation11 + $0x11e0] sm:$0xff] }
 0x11d   : > { %2732 = vmatprep.subr.bf16.mxu1 %v2731_v54  ;;  %v2787_v52 = vpack.c.bf16 %v872_v51, %v870_v49  ;;  %v871_v54 = vld [vmem:[#allocation11 + $0xb58] sm:$0xff]  ;;  %v894_v22 = vld [vmem:[#allocation11 + $0x11e8] sm:$0xff]  ;;  %v982_v31 = vld [vmem:[#allocation11 + $0x40] sm:$0xff] }
 0x11e   : > { %2778 = vmatpush1.bf16.msra.mxu0 %v2777_v27  ;;  %v2789_v55 = vpack.c.bf16 %v871_v54, %v869_v53  ;;  %v2811_v25 = vpack.c.bf16 %v896_v23, %v894_v22  ;;  %v895_v27 = vld [vmem:[#allocation11 + $0x1278] sm:$0xff]  ;;  %v983_v29 = vld [vmem:[#allocation11 + $0x48] sm:$0xff]  ;;  %v989_v35 = vld [vmem:[#allocation11 + $0x210] sm:$0xff] }
 0x11f   : > { %2780 = vmatprep.subr.bf16.mxu0 %v2779_v30  ;;  %v985_v30 = vld [vmem:[#allocation11 + $0xe0] sm:$0xff]  ;;  %v984_v33 = vld [vmem:[#allocation11 + $0xd8] sm:$0xff]  ;;  %v991_v41 = vld [vmem:[#allocation11 + $0x2a8] sm:$0xff] }
 0x120   : > { %2734 = vmatpush1.bf16.msra.mxu1 %v2733_v62  ;;  %v880_v62 = vld [vmem:[#allocation11 + $0xdc0] sm:$0xff]  ;;  %v2815_v32 = vpack.c.bf16 %v985_v30, %v983_v29  ;;  %v987_v34 = vld [vmem:[#allocation11 + $0x178] sm:$0xff]  ;;  %v997_v49 = vld [vmem:[#allocation11 + $0x470] sm:$0xff] }
 0x121   : > { %2736 = vmatprep.subr.bf16.mxu1 %v2735_v4  ;;  %v2795_v1 = vpack.c.bf16 %v880_v62, %v878_v63  ;;  %v2797_v4 = vpack.c.bf16 %v879_v3, %v877_v2  ;;  %v2819_v38 = vpack.c.bf16 %v989_v35, %v987_v34  ;;  %v994_v53 = vld [vmem:[#allocation11 + $0x3d0] sm:$0xff]  ;;  %v996_v54 = vld [vmem:[#allocation11 + $0x468] sm:$0xff]  ;;  %v1001_v56 = vld [vmem:[#allocation11 + $0x5a0] sm:$0xff] }
 0x122   : > { %2782 = vmatpush1.bf16.msra.mxu0 %v2781_v39  ;;  %v986_v39 = vld [vmem:[#allocation11 + $0x170] sm:$0xff]  ;;  %v2829_v57 = vpack.c.bf16 %v996_v54, %v994_v53  ;;  %v998_v59 = vld [vmem:[#allocation11 + $0x500] sm:$0xff]  ;;  %v1000_v60 = vld [vmem:[#allocation11 + $0x598] sm:$0xff] }
 0x123   : > { %2784 = vmatprep.subr.bf16.mxu0 %v2783_v42  ;;  %v993_v42 = vld [vmem:[#allocation11 + $0x340] sm:$0xff]  ;;  %v1005_v63 = vld [vmem:[#allocation11 + $0x6d0] sm:$0xff]  ;;  %v2833_v62 = vpack.c.bf16 %v1000_v60, %v998_v59  ;;  %v1004_v3 = vld [vmem:[#allocation11 + $0x6c8] sm:$0xff] }
 0x124   : > { %2738 = vmatpush1.bf16.msra.mxu1 %v2737_v12  ;;  %v2801_v12 = vpack.c.bf16 %v883_v9, %v881_v7  ;;  %v2823_v44 = vpack.c.bf16 %v993_v42, %v991_v41  ;;  %v1002_v2 = vld [vmem:[#allocation11 + $0x630] sm:$0xff]  ;;  %v1009_v5 = vld [vmem:[#allocation11 + $0x800] sm:$0xff]  ;;  %v1008_v9 = vld [vmem:[#allocation11 + $0x7f8] sm:$0xff] }
 0x125   : > { %2740 = vmatprep.subr.bf16.mxu1 %v2739_v16  ;;  %v890_v16 = vld [vmem:[#allocation11 + $0x10b8] sm:$0xff]  ;;  %v2837_v6 = vpack.c.bf16 %v1004_v3, %v1002_v2  ;;  %v1013_v11 = vld [vmem:[#allocation11 + $0x930] sm:$0xff]  ;;  %v1012_v15 = vld [vmem:[#allocation11 + $0x928] sm:$0xff] }
 0x126   : > { %2786 = vmatpush1.bf16.msra.mxu0 %v2785_v47  ;;  %v2807_v19 = vpack.c.bf16 %v892_v17, %v890_v16  ;;  %v992_v47 = vld [vmem:[#allocation11 + $0x338] sm:$0xff]  ;;  %v1010_v14 = vld [vmem:[#allocation11 + $0x890] sm:$0xff]  ;;  %v1015_v16 = vld [vmem:[#allocation11 + $0x9c8] sm:$0xff] }
 0x127   : > { %2788 = vmatprep.subr.bf16.mxu0 %v2787_v52  ;;  %v1011_v10 = vld [vmem:[#allocation11 + $0x898] sm:$0xff]  ;;  %v1017_v17 = vld [vmem:[#allocation11 + $0xa60] sm:$0xff]  ;;  %v1021_v23 = vld [vmem:[#allocation11 + $0xb90] sm:$0xff] }
 0x128   : > { %2742 = vmatpush1.bf16.msra.mxu1 %v2741_v24  ;;  %v2809_v24 = vpack.c.bf16 %v891_v21, %v889_v20  ;;  %v1014_v20 = vld [vmem:[#allocation11 + $0x9c0] sm:$0xff]  ;;  %v1016_v21 = vld [vmem:[#allocation11 + $0xa58] sm:$0xff]  ;;  %v1029_v35 = vld [vmem:[#allocation11 + $0xdf0] sm:$0xff] }
 0x129   : > { %2744 = vmatprep.subr.bf16.mxu1 %v2743_v28  ;;  %v2813_v28 = vpack.c.bf16 %v895_v27, %v893_v26  ;;  %v1019_v22 = vld [vmem:[#allocation11 + $0xaf8] sm:$0xff]  ;;  %v1018_v26 = vld [vmem:[#allocation11 + $0xaf0] sm:$0xff]  ;;  %v1020_v27 = vld [vmem:[#allocation11 + $0xb88] sm:$0xff] }
 0x12a   : > { %2790 = vmatpush1.bf16.msra.mxu0 %v2789_v55  ;;  %v999_v55 = vld [vmem:[#allocation11 + $0x508] sm:$0xff]  ;;  %v1025_v29 = vld [vmem:[#allocation11 + $0xcc0] sm:$0xff]  ;;  %v2853_v30 = vpack.c.bf16 %v1020_v27, %v1018_v26  ;;  %v1027_v34 = vld [vmem:[#allocation11 + $0xd58] sm:$0xff] }
 0x12b   : > { %2792 = vmatprep.subr.bf16.mxu0 %v2791_v58  ;;  %v2831_v58 = vpack.c.bf16 %v1001_v56, %v999_v55  ;;  %v1031_v41 = vld [vmem:[#allocation11 + $0xe88] sm:$0xff]  ;;  %v1033_v42 = vld [vmem:[#allocation11 + $0xf20] sm:$0xff]  ;;  %v1034_v53 = vld [vmem:[#allocation11 + $0xfb0] sm:$0xff] }
 0x12c   : > { %2746 = vmatpush1.bf16.msra.mxu1 %v2745_v36  ;;  %v2817_v36 = vpack.c.bf16 %v984_v33, %v982_v31  ;;  %v1024_v33 = vld [vmem:[#allocation11 + $0xcb8] sm:$0xff]  ;;  %v1036_v54 = vld [vmem:[#allocation11 + $0x1048] sm:$0xff]  ;;  %v1041_v56 = vld [vmem:[#allocation11 + $0x1180] sm:$0xff] }
 0x12d   : > { %2748 = vmatprep.subr.bf16.mxu1 %v2747_v40  ;;  %v988_v40 = vld [vmem:[#allocation11 + $0x208] sm:$0xff] }
 0x12e   : > { %2794 = vmatpush1.bf16.msra.mxu0 %v2793_v61  ;;  %v2821_v43 = vpack.c.bf16 %v988_v40, %v986_v39  ;;  %v1003_v61 = vld [vmem:[#allocation11 + $0x638] sm:$0xff]  ;;  %v1026_v39 = vld [vmem:[#allocation11 + $0xd50] sm:$0xff]  ;;  %v1028_v40 = vld [vmem:[#allocation11 + $0xde8] sm:$0xff] }
 0x12f   : > { %2796 = vmatprep.subr.bf16.mxu0 %v2795_v1  ;;  %v2835_v1 = vpack.c.bf16 %v1005_v63, %v1003_v61  ;;  %v1039_v55 = vld [vmem:[#allocation11 + $0x10e8] sm:$0xff]  ;;  %v608_v61 = vld [vmem:[#allocation13 + $0x2] sm:$0x3]  ;;  %v456_v63 = vld [vmem:[#allocation13] sm:$0x3] }
 0x130   : > { %2750 = vmatpush1.bf16.msra.mxu1 %v2749_v46  ;;  %v990_v46 = vld [vmem:[#allocation11 + $0x2a0] sm:$0xff]  ;;  %v628_v2 = vrot.slane %v608_v61, %v4093_v50  ;;  %v465_v3 = vrot.slane %v456_v63, %v4093_v50 }
 0x131   : > { %2816 = vmatprep.subr.bf16.mxu1 %v2815_v32  ;;  %v2825_v51 = vpack.c.bf16 %v992_v47, %v990_v46  ;;  %v1022_v32 = vld [vmem:[#allocation11 + $0xc20] sm:$0xff]  ;;  %v1032_v47 = vld [vmem:[#allocation11 + $0xf18] sm:$0xff] }
 0x132   : > { %2798 = vmatpush1.bf16.msra.mxu0 %v2797_v4  ;;  %v1007_v4 = vld [vmem:[#allocation11 + $0x768] sm:$0xff]  ;;  %v1030_v46 = vld [vmem:[#allocation11 + $0xe80] sm:$0xff] }
 0x133   : > { %696 = vmatmul.mubr.f32.vlgmr.msra.gmra.mrb[0].mxu1 %v613_v48  ;;  %2800 = vmatprep.subr.bf16.mxu0 %v2799_v8  ;;  %v995_v48 = vld [vmem:[#allocation11 + $0x3d8] sm:$0xff]  ;;  %v2839_v7 = vpack.c.bf16 %v1009_v5, %v1007_v4  ;;  %v1006_v8 = vld [vmem:[#allocation11 + $0x760] sm:$0xff] }
 0x134   : > { %2818 = vmatpush1.bf16.msra.mxu1 %v2817_v36  ;;  %v2827_v52 = vpack.c.bf16 %v997_v49, %v995_v48  ;;  %v2857_v36 = vpack.c.bf16 %v1024_v33, %v1022_v32  ;;  %v1035_v48 = vld [vmem:[#allocation11 + $0xfb8] sm:$0xff]  ;;  %v1037_v49 = vld [vmem:[#allocation11 + $0x1050] sm:$0xff] }
 0x135   : > { %2820 = vmatprep.subr.bf16.mxu1 %v2819_v38  ;;  %v2859_v38 = vpack.c.bf16 %v1029_v35, %v1027_v34  ;;  %v4156_v32 = vld [vmem:[%s4073_s4 + $0x10] sm:$0xff]  ;;  %v4161_v35 = vld [vmem:[%s4073_s4 + $0x38] sm:$0xff] }
 0x136   : > { %2802 = vmatpush1.bf16.msra.mxu0 %v2801_v12  ;;  %v2841_v12 = vpack.c.bf16 %v1008_v9, %v1006_v8 }
 0x137   : > { %2804 = vmatprep.subr.bf16.mxu0 %v2803_v13  ;;  %v2843_v13 = vpack.c.bf16 %v1013_v11, %v1011_v10  ;;  %v712_v11 = vld [vmem:[%s4075_s26] sm:$0xff] }
 0x138   : > { %2822 = vmatpush1.bf16.msra.mxu1 %v2821_v43  ;;  %v2861_v43 = vpack.c.bf16 %v1028_v40, %v1026_v39  ;;  %v4168_v39 = vsub.s32 6, %v4090_v37  ;;  %v4171_v40 = vld [vmem:[%s4073_s4 + $0x20] sm:$0xff] }
 0x139   : > { %2824 = vmatprep.subr.bf16.mxu1 %v2823_v44  ;;  %v2863_v44 = vpack.c.bf16 %v1033_v42, %v1031_v41 }
 0x13a   : > { %2806 = vmatpush1.bf16.msra.mxu0 %v2805_v18  ;;  %v2845_v18 = vpack.c.bf16 %v1012_v15, %v1010_v14  ;;  %v713_v14 = vld [vmem:[%s4075_s26 + $0x8] sm:$0xff] }
 0x13b   : > { %2808 = vmatprep.subr.bf16.mxu0 %v2807_v19  ;;  %v2847_v19 = vpack.c.bf16 %v1017_v17, %v1015_v16  ;;  %v4116_v16 = vsub.s32 2, %v4090_v37 }
 0x13c   : > { %2826 = vmatpush1.bf16.msra.mxu1 %v2825_v51  ;;  %v2865_v51 = vpack.c.bf16 %v1032_v47, %v1030_v46 }
 0x13d   : > { %2828 = vmatprep.subr.bf16.mxu1 %v2827_v52  ;;  %v2867_v52 = vpack.c.bf16 %v1037_v49, %v1035_v48 }
 0x13e   : > { %2810 = vmatpush1.bf16.msra.mxu0 %v2809_v24  ;;  %v2849_v24 = vpack.c.bf16 %v1016_v21, %v1014_v20  ;;  %v4126_v20 = vld [vmem:[%s4073_s4 + $0x8] sm:$0xff]  ;;  %v4129_v21 = vld [vmem:[%s4073_s4 + $0x18] sm:$0xff] }
 0x13f   : > { %2812 = vmatprep.subr.bf16.mxu0 %v2811_v25  ;;  %v2851_v25 = vpack.c.bf16 %v1021_v23, %v1019_v22  ;;  %v4132_v22 = vsub.s32 4, %v4090_v37 }
 0x140   : > { %2830 = vmatpush1.bf16.msra.mxu1 %v2829_v57  ;;  %v2869_v57 = vpack.c.bf16 %v1036_v54, %v1034_v53  ;;  %v4191_v54 = vld [vmem:[%s4073_s4 + $0x58] sm:$0xff] }
 0x141   : > { %2832 = vmatprep.subr.bf16.mxu1 %v2831_v58  ;;  %v2871_v58 = vpack.c.bf16 %v1041_v56, %v1039_v55 }
 0x142   : > { %2814 = vmatpush1.bf16.msra.mxu0 %v2813_v28  ;;  %v1023_v28 = vld [vmem:[#allocation11 + $0xc28] sm:$0xff] }
 0x143   : > { %v2855_v31 = vpack.c.bf16 %v1025_v29, %v1023_v28  ;;  %v4145_v28 = vld [vmem:[%s4073_s4 + $0x28] sm:$0xff] }
 0x144   : > { %2834 = vmatpush1.bf16.msra.mxu1 %v2833_v62  ;;  %v624_v62 = vrot.slane %v608_v61, %v4103_v45  ;;  %v4203_v61 = vld [vmem:[%s4073_s4 + $0x68] sm:$0xff] }
 0x145   : > { %2836 = vmatprep.subr.bf16.mxu1 %v2835_v1  ;;  %v461_v1 = vrot.slane %v456_v63, %v4103_v45 }
 0x148   : > { %2838 = vmatpush1.bf16.msra.mxu1 %v2837_v6 }
 0x149   : > { %2840 = vmatprep.subr.bf16.mxu1 %v2839_v7 }
 0x14c   : > { %2842 = vmatpush1.bf16.msra.mxu1 %v2841_v12 }
 0x14d   : > { %2844 = vmatprep.subr.bf16.mxu1 %v2843_v13 }
 0x150   : > { %2846 = vmatpush1.bf16.msra.mxu1 %v2845_v18  ;;  %v4121_v18 = vsub.s32 3, %v4090_v37 }
 0x151   : > { %2848 = vmatprep.subr.bf16.mxu1 %v2847_v19 }
 0x154   : > { %2850 = vmatpush1.bf16.msra.mxu1 %v2849_v24 }
 0x155   : > { %2852 = vmatprep.subr.bf16.mxu1 %v2851_v25 }
 0x158   : > { %2854 = vmatpush1.bf16.msra.mxu1 %v2853_v30  ;;  %v4150_v30 = vsub.s32 5, %v4090_v37 }
 0x159   : > { %2856 = vmatprep.subr.bf16.mxu1 %v2855_v31  ;;  %v4153_v31 = vld [vmem:[%s4073_s4] sm:$0xff] }
 0x15c   : > { %2858 = vmatpush1.bf16.msra.mxu1 %v2857_v36 }
 0x15d   : > { %2860 = vmatprep.subr.bf16.mxu1 %v2859_v38 }
 0x160   : > { %2862 = vmatpush1.bf16.msra.mxu1 %v2861_v43 }
 0x161   : > { %2864 = vmatprep.subr.bf16.mxu1 %v2863_v44  ;;  %v4177_v44 = vld [vmem:[%s4073_s4 + $0x48] sm:$0xff] }
 0x164   : > { %2866 = vmatpush1.bf16.msra.mxu1 %v2865_v51  ;;  %v4185_v51 = vsub.s32 7, %v4090_v37  ;;  %v4200_v37 = vld [vmem:[%s4073_s4 + $0x40] sm:$0xff] }
 0x165   : > { %2868 = vmatprep.subr.bf16.mxu1 %v2867_v52  ;;  %v4188_v52 = vld [vmem:[%s4073_s4 + $0x30] sm:$0xff] }
 0x168   : > { %2870 = vmatpush1.bf16.msra.mxu1 %v2869_v57 }
 0x169   : > { %2872 = vmatprep.subr.bf16.mxu1 %v2871_v58 }
 0x1d8   : > { %v538_v59 = vpop.f32.mrb[0].mxu0 }
 0x1d9   : > { %v540_v60 = vpop.f32.mrb[1].mxu0  ;;  %v539_v6 = vadd.f32 %v538_v59, %v461_v1 }
 0x1da   : > { %v541_v9 = vadd.f32 %v540_v60, %v465_v3 }
 0x206   : > { %v697_v4 = vpop.f32.mrb[0].mxu1 }
 0x207   : > { %v698_v5 = vadd.f32 %v697_v4, %v624_v62  ;;  %v699_v7 = vpop.f32.mrb[1].mxu1  ;;  %v4212_v4 = vld [vmem:[%s4073_s4 + $0x50] sm:$0xff] }
 0x208   : > { %v700_v8 = vadd.f32 %v699_v7, %v628_v2 }
 0x209   : > { %v705_v10 = vrot.slane %v698_v5, %v4103_v45 }
 0x20a   : > { %v709_v12 = vrot.slane %v700_v8, %v4103_v45 }
 0x20b   : > { %v710_v13 = vmul.f32 %v705_v10, %v539_v6  ;;  %v4219_v10 = vld [vmem:[%s4073_s4 + $0x78] sm:$0xff] }
 0x20c   : > { %v711_v15 = vmul.f32 %v709_v12, %v541_v9 }
 0x20d   : > { %v4118_v17 = vmul.f32 %v712_v11, %v710_v13  ;;  %v4222_v11 = vld [vmem:[%s4073_s4 + $0x60] sm:$0xff] }
 0x20e   : > { %v4123_v19 = vmul.f32 %v713_v14, %v711_v15 }
 0x20f   : > { %v721_v23 = vrot.slane %v4118_v17, %v4103_v45  ;;  %v734_v27 = vrot.slane %v4118_v17, %v4093_v50  ;;  %v749_v36 = vrot.slane %v4118_v17, %v4116_v16  ;;  %v764_v41 = vrot.slane %v4118_v17, %v4121_v18 }
 0x210   : > { %v725_v24 = vrot.slane %v4123_v19, %v4103_v45  ;;  %v738_v25 = vrot.slane %v4123_v19, %v4093_v50  ;;  %v753_v26 = vrot.slane %v4123_v19, %v4116_v16  ;;  %v768_v29 = vrot.slane %v4123_v19, %v4121_v18 }
 0x211   : > { %v783_v38 = vrot.slane %v4123_v19, %v4132_v22  ;;  %v726_v46 = vmul.f32 %v721_v23, %v4153_v31  ;;  %v739_v47 = vmul.f32 %v4156_v32, %v734_v27  ;;  %v798_v49 = vrot.slane %v4123_v19, %v4150_v30  ;;  %v4228_v23 = vld [vmem:[%s4073_s4 + $0x70] sm:$0xff] }
 0x212   : > { %v727_v33 = vmul.f32 %v725_v24, %v4126_v20  ;;  %v740_v34 = vmul.f32 %v4129_v21, %v738_v25  ;;  %v755_v43 = vmul.f32 %v4145_v28, %v753_v26  ;;  %v770_v48 = vmul.f32 %v4161_v35, %v768_v29 }
 0x213   : > { %v741_v55 = vadd.f32 %v739_v47, %v726_v46  ;;  %v754_v56 = vmul.f32 %v4171_v40, %v749_v36  ;;  %v779_v57 = vrot.slane %v4118_v17, %v4132_v22  ;;  %v785_v58 = vmul.f32 %v4177_v44, %v783_v38  ;;  %v1038_v38 = vld [vmem:[#allocation11 + $0x10e0] sm:$0xff]  ;;  %v1045_v46 = vld [vmem:[#allocation11 + $0x12b0] sm:$0xff] }
 0x214   : > { %v742_v42 = vadd.f32 %v740_v34, %v727_v33  ;;  %v813_v59 = vrot.slane %v4123_v19, %v4168_v39  ;;  %v769_v62 = vmul.f32 %v4188_v52, %v764_v41  ;;  %v794_v1 = vrot.slane %v4118_v17, %v4150_v30  ;;  %v1040_v41 = vld [vmem:[#allocation11 + $0x1178] sm:$0xff]  ;;  %v1042_v47 = vld [vmem:[#allocation11 + $0x1210] sm:$0xff] }
 0x215   : > { %v756_v63 = vadd.f32 %v754_v56, %v741_v55  ;;  %v800_v2 = vmul.f32 %v4191_v54, %v798_v49  ;;  %v828_v3 = vrot.slane %v4123_v19, %v4185_v51  ;;  %v784_v7 = vmul.f32 %v4200_v37, %v779_v57  ;;  %v1044_v49 = vld [vmem:[#allocation11 + $0x12a8] sm:$0xff]  ;;  %v1228_v56 = vld [vmem:[#allocation11 + $0xc0] sm:$0xff] }
 0x216   : > { %v757_v53 = vadd.f32 %v755_v43, %v742_v42  ;;  %v809_v8 = vrot.slane %v4118_v17, %v4168_v39  ;;  %v815_v9 = vmul.f32 %v4203_v61, %v813_v59  ;;  %v799_v14 = vmul.f32 %v4212_v4, %v794_v1  ;;  %v1043_v43 = vld [vmem:[#allocation11 + $0x1218] sm:$0xff]  ;;  %v1226_v55 = vld [vmem:[#allocation11 + $0x28] sm:$0xff]  ;;  %v1225_v57 = vld [vmem:[#allocation11 + $0x20] sm:$0xff] }
 0x217   : > { %v771_v6 = vadd.f32 %v769_v62, %v756_v63  ;;  %v824_v15 = vrot.slane %v4118_v17, %v4185_v51  ;;  %v830_v25 = vmul.f32 %v4219_v10, %v828_v3  ;;  %v2873_v42 = vpack.c.bf16 %v1040_v41, %v1038_v38  ;;  %v1227_v59 = vld [vmem:[#allocation11 + $0xb8] sm:$0xff]  ;;  %v1232_v63 = vld [vmem:[#allocation11 + $0x1f0] sm:$0xff]  ;;  %v1231_v3 = vld [vmem:[#allocation11 + $0x1e8] sm:$0xff] }
 0x218   : > { %v772_v60 = vadd.f32 %v770_v48, %v757_v53  ;;  %v814_v27 = vmul.f32 %v4222_v11, %v809_v8  ;;  %v2875_v48 = vpack.c.bf16 %v1045_v46, %v1043_v43  ;;  %v2877_v53 = vpack.c.bf16 %v1044_v49, %v1042_v47  ;;  %v1243_v38 = vld [vmem:[#allocation11 + $0x578] sm:$0xff]  ;;  %v1245_v47 = vld [vmem:[#allocation11 + $0x610] sm:$0xff]  ;;  %v1250_v49 = vld [vmem:[#allocation11 + $0x748] sm:$0xff] }
 0x219   : > { %v786_v13 = vadd.f32 %v784_v7, %v771_v6  ;;  %v829_v34 = vmul.f32 %v4228_v23, %v824_v15  ;;  %2874 = vmatpush1.bf16.msra.mxu1 %v2873_v42  ;;  %v2881_v62 = vpack.c.bf16 %v1227_v59, %v1225_v57  ;;  %v1236_v6 = vld [vmem:[#allocation11 + $0x320] sm:$0xff]  ;;  %v1246_v41 = vld [vmem:[#allocation11 + $0x618] sm:$0xff]  ;;  %v1248_v42 = vld [vmem:[#allocation11 + $0x6b0] sm:$0xff] }
 0x21a   : > { %v787_v5 = vadd.f32 %v785_v58, %v772_v60  ;;  %2876 = vmatprep.subr.bf16.mxu1 %v2875_v48  ;;  %v2879_v58 = vpack.c.bf16 %v1228_v56, %v1226_v55  ;;  %v1230_v60 = vld [vmem:[#allocation11 + $0x158] sm:$0xff]  ;;  %v2899_v46 = vpack.c.bf16 %v1248_v42, %v1246_v41  ;;  %v1247_v48 = vld [vmem:[#allocation11 + $0x6a8] sm:$0xff]  ;;  %v1249_v57 = vld [vmem:[#allocation11 + $0x740] sm:$0xff] }
 0x21b   : > { %v801_v26 = vadd.f32 %v799_v14, %v786_v13  ;;  %v2883_v1 = vpack.c.bf16 %v1232_v63, %v1230_v60  ;;  %v1238_v13 = vld [vmem:[#allocation11 + $0x3b8] sm:$0xff]  ;;  %v1240_v14 = vld [vmem:[#allocation11 + $0x450] sm:$0xff]  ;;  %v2901_v55 = vpack.c.bf16 %v1247_v48, %v1245_v47  ;;  %v1268_v47 = vld [vmem:[#allocation11 + $0xca0] sm:$0xff] }
 0x21c   : > { %v802_v12 = vadd.f32 %v800_v2, %v787_v5  ;;  %v1229_v2 = vld [vmem:[#allocation11 + $0x150] sm:$0xff]  ;;  %v1234_v5 = vld [vmem:[#allocation11 + $0x288] sm:$0xff]  ;;  %2880 = vmatprep.subr.bf16.mxu0 %v2879_v58  ;;  %v1251_v58 = vld [vmem:[#allocation11 + $0x7d8] sm:$0xff] }
 0x21d   : > { %v816_v33 = vadd.f32 %v814_v27, %v801_v26  ;;  %2878 = vmatpush1.bf16.msra.mxu1 %v2877_v53  ;;  %v2885_v7 = vpack.c.bf16 %v1231_v3, %v1229_v2  ;;  %v2887_v8 = vpack.c.bf16 %v1236_v6, %v1234_v5  ;;  %v1239_v26 = vld [vmem:[#allocation11 + $0x448] sm:$0xff]  ;;  %v1252_v53 = vld [vmem:[#allocation11 + $0x7e0] sm:$0xff]  ;;  %v1254_v59 = vld [vmem:[#allocation11 + $0x878] sm:$0xff]  ;;  %v2905_v63 = vpack.c.bf16 %v1251_v58, %v1249_v57 }
 0x21e   : > { %v817_v24 = vadd.f32 %v815_v9, %v802_v12  ;;  %v1233_v9 = vld [vmem:[#allocation11 + $0x280] sm:$0xff]  ;;  %v1235_v12 = vld [vmem:[#allocation11 + $0x318] sm:$0xff]  ;;  %v1242_v27 = vld [vmem:[#allocation11 + $0x4e8] sm:$0xff]  ;;  %v2903_v56 = vpack.c.bf16 %v1252_v53, %v1250_v49 }
 0x21f   : > { %v831_v36 = vadd.f32 %v829_v34, %v816_v33  ;;  %v2889_v15 = vpack.c.bf16 %v1235_v12, %v1233_v9  ;;  %v1256_v60 = vld [vmem:[#allocation11 + $0x910] sm:$0xff]  ;;  %v1255_v2 = vld [vmem:[#allocation11 + $0x908] sm:$0xff]  ;;  %v1260_v5 = vld [vmem:[#allocation11 + $0xa40] sm:$0xff] }
 0x220   : > { %v832_v29 = vadd.f32 %v830_v25, %v817_v24  ;;  %v2891_v24 = vpack.c.bf16 %v1240_v14, %v1238_v13  ;;  %v1237_v25 = vld [vmem:[#allocation11 + $0x3b0] sm:$0xff]  ;;  %v1258_v3 = vld [vmem:[#allocation11 + $0x9a8] sm:$0xff]  ;;  %v1259_v9 = vld [vmem:[#allocation11 + $0xa38] sm:$0xff] }
 0x221   : > { %v2893_v33 = vpack.c.bf16 %v1239_v26, %v1237_v25  ;;  %v1262_v12 = vld [vmem:[#allocation11 + $0xad8] sm:$0xff]  ;;  %v1264_v13 = vld [vmem:[#allocation11 + $0xb70] sm:$0xff]  ;;  %v1263_v25 = vld [vmem:[#allocation11 + $0xb68] sm:$0xff] }
 0x222   : > { %973 = vmatprep.mubr.f32.mxu0 %v832_v29  ;;  %v1244_v29 = vld [vmem:[#allocation11 + $0x580] sm:$0xff]  ;;  %v1267_v53 = vld [vmem:[#allocation11 + $0xc98] sm:$0xff] }
 0x223   : > { %974 = vmatmul.mubr.f32.vlgmr.msra.gmra.mrb[2].mxu0 %v831_v36  ;;  %v2895_v34 = vpack.c.bf16 %v1244_v29, %v1242_v27  ;;  %v1241_v36 = vld [vmem:[#allocation11 + $0x4e0] sm:$0xff] }
 0x224   : > { %2882 = vmatpush1.bf16.msra.mxu0 %v2881_v62  ;;  %v2897_v43 = vpack.c.bf16 %v1243_v38, %v1241_v36  ;;  %v2907_v62 = vpack.c.bf16 %v1256_v60, %v1254_v59  ;;  %v897_v27 = vld [vmem:[#allocation13 + $0x4] sm:$0x3]  ;;  %v1269_v59 = vld [vmem:[#allocation11 + $0xd30] sm:$0xff]  ;;  %v1271_v60 = vld [vmem:[#allocation11 + $0xdc8] sm:$0xff] }
 0x225   : > { %2884 = vmatprep.subr.bf16.mxu0 %v2883_v1  ;;  %v1253_v1 = vld [vmem:[#allocation11 + $0x870] sm:$0xff]  ;;  %v902_v29 = vrot.slane %v897_v27, %v4103_v45  ;;  %v1265_v48 = vld [vmem:[#allocation11 + $0xc00] sm:$0xff] }
 0x226   : > { %v2909_v6 = vpack.c.bf16 %v1255_v2, %v1253_v1  ;;  %v2921_v57 = vpack.c.bf16 %v1267_v53, %v1265_v48  ;;  %v2925_v1 = vpack.c.bf16 %v1271_v60, %v1269_v59  ;;  %v1379_v53 = vld [vmem:[#allocation11 + $0x188] sm:$0xff]  ;;  %v1380_v59 = vld [vmem:[#allocation11 + $0x218] sm:$0xff] }
 0x227   : > { %v1383_v60 = vld [vmem:[#allocation11 + $0x2b8] sm:$0xff] }
 0x228   : > { %2886 = vmatpush1.bf16.msra.mxu0 %v2885_v7  ;;  %v2911_v7 = vpack.c.bf16 %v1260_v5, %v1258_v3  ;;  %v1273_v3 = vld [vmem:[#allocation11 + $0xe60] sm:$0xff]  ;;  %v1275_v5 = vld [vmem:[#allocation11 + $0xef8] sm:$0xff] }
 0x229   : > { %2888 = vmatprep.subr.bf16.mxu0 %v2887_v8  ;;  %v1257_v8 = vld [vmem:[#allocation11 + $0x9a0] sm:$0xff] }
 0x22a   : > { %v2913_v14 = vpack.c.bf16 %v1259_v9, %v1257_v8  ;;  %v2929_v8 = vpack.c.bf16 %v1275_v5, %v1273_v3  ;;  %v1384_v3 = vld [vmem:[#allocation11 + $0x348] sm:$0xff] }
 0x22b   : > { %v1387_v5 = vld [vmem:[#allocation11 + $0x3e8] sm:$0xff] }
 0x22c   : > { %2890 = vmatpush1.bf16.msra.mxu0 %v2889_v15  ;;  %v2915_v15 = vpack.c.bf16 %v1264_v13, %v1262_v12  ;;  %v1277_v12 = vld [vmem:[#allocation11 + $0xf90] sm:$0xff]  ;;  %v1279_v13 = vld [vmem:[#allocation11 + $0x1028] sm:$0xff] }
 0x22d   : > { %2892 = vmatprep.subr.bf16.mxu0 %v2891_v24  ;;  %v1261_v24 = vld [vmem:[#allocation11 + $0xad0] sm:$0xff] }
 0x22e   : > { %v2917_v26 = vpack.c.bf16 %v1263_v25, %v1261_v24  ;;  %v2933_v24 = vpack.c.bf16 %v1279_v13, %v1277_v12  ;;  %v1388_v12 = vld [vmem:[#allocation11 + $0x478] sm:$0xff] }
 0x22f   : > { %v1391_v13 = vld [vmem:[#allocation11 + $0x518] sm:$0xff] }
 0x230   : > { %2894 = vmatpush1.bf16.msra.mxu0 %v2893_v33  ;;  %v906_v33 = vrot.slane %v897_v27, %v4093_v50  ;;  %v1283_v27 = vld [vmem:[#allocation11 + $0x1158] sm:$0xff] }
 0x231   : > { %2896 = vmatprep.subr.bf16.mxu0 %v2895_v34 }
 0x234   : > { %2898 = vmatpush1.bf16.msra.mxu0 %v2897_v43 }
 0x235   : > { %2900 = vmatprep.subr.bf16.mxu0 %v2899_v46  ;;  %v1266_v46 = vld [vmem:[#allocation11 + $0xc08] sm:$0xff] }
 0x236   : > { %v2919_v49 = vpack.c.bf16 %v1268_v47, %v1266_v46  ;;  %v1377_v46 = vld [vmem:[#allocation11 + $0xf0] sm:$0xff] }
 0x237   : > { %v1374_v47 = vld [vmem:[#allocation11 + $0x50] sm:$0xff] }
 0x238   : > { %2902 = vmatpush1.bf16.msra.mxu0 %v2901_v55  ;;  %v1270_v55 = vld [vmem:[#allocation11 + $0xd38] sm:$0xff] }
 0x239   : > { %2904 = vmatprep.subr.bf16.mxu0 %v2903_v56  ;;  %v1272_v56 = vld [vmem:[#allocation11 + $0xdd0] sm:$0xff] }
 0x23a   : > { %v2923_v58 = vpack.c.bf16 %v1272_v56, %v1270_v55  ;;  %v1381_v55 = vld [vmem:[#allocation11 + $0x220] sm:$0xff] }
 0x23c   : > { %2906 = vmatpush1.bf16.msra.mxu0 %v2905_v63  ;;  %v1274_v63 = vld [vmem:[#allocation11 + $0xe68] sm:$0xff] }
 0x23d   : > { %2908 = vmatprep.subr.bf16.mxu0 %v2907_v62  ;;  %v1276_v62 = vld [vmem:[#allocation11 + $0xf00] sm:$0xff] }
 0x23e   : > { %v2927_v2 = vpack.c.bf16 %v1276_v62, %v1274_v63  ;;  %v1385_v63 = vld [vmem:[#allocation11 + $0x350] sm:$0xff] }
 0x240   : > { %2910 = vmatpush1.bf16.msra.mxu0 %v2909_v6  ;;  %v1278_v6 = vld [vmem:[#allocation11 + $0xf98] sm:$0xff] }
 0x241   : > { %2912 = vmatprep.subr.bf16.mxu0 %v2911_v7  ;;  %v1280_v7 = vld [vmem:[#allocation11 + $0x1030] sm:$0xff] }
 0x242   : > { %v2931_v9 = vpack.c.bf16 %v1280_v7, %v1278_v6  ;;  %v1389_v6 = vld [vmem:[#allocation11 + $0x480] sm:$0xff] }
 0x244   : > { %2914 = vmatpush1.bf16.msra.mxu0 %v2913_v14  ;;  %v1282_v14 = vld [vmem:[#allocation11 + $0x10c8] sm:$0xff] }
 0x245   : > { %2916 = vmatprep.subr.bf16.mxu0 %v2915_v15  ;;  %v1284_v15 = vld [vmem:[#allocation11 + $0x1160] sm:$0xff] }
 0x246   : > { %v2935_v25 = vpack.c.bf16 %v1284_v15, %v1282_v14  ;;  %v1393_v14 = vld [vmem:[#allocation11 + $0x5b0] sm:$0xff] }
 0x248   : > { %2918 = vmatpush1.bf16.msra.mxu0 %v2917_v26  ;;  %v1281_v26 = vld [vmem:[#allocation11 + $0x10c0] sm:$0xff] }
 0x249   : > { %2920 = vmatprep.subr.bf16.mxu0 %v2919_v49  ;;  %v1376_v49 = vld [vmem:[#allocation11 + $0xe8] sm:$0xff] }
 0x24a   : > { %v2945_v56 = vpack.c.bf16 %v1376_v49, %v1374_v47  ;;  %v1398_v47 = vld [vmem:[#allocation11 + $0x770] sm:$0xff]  ;;  %v1403_v49 = vld [vmem:[#allocation11 + $0x8a8] sm:$0xff] }
 0x24c   : > { %2922 = vmatpush1.bf16.msra.mxu0 %v2921_v57  ;;  %v2947_v57 = vpack.c.bf16 %v1381_v55, %v1379_v53  ;;  %v1405_v53 = vld [vmem:[#allocation11 + $0x940] sm:$0xff] }
 0x24d   : > { %2924 = vmatprep.subr.bf16.mxu0 %v2923_v58  ;;  %v1378_v58 = vld [vmem:[#allocation11 + $0x180] sm:$0xff] }
 0x24e   : > { %v2949_v62 = vpack.c.bf16 %v1380_v59, %v1378_v58  ;;  %v1404_v58 = vld [vmem:[#allocation11 + $0x938] sm:$0xff] }
 0x24f   : > { %v1407_v59 = vld [vmem:[#allocation11 + $0x9d8] sm:$0xff] }
 0x250   : > { %2926 = vmatpush1.bf16.msra.mxu0 %v2925_v1  ;;  %v2951_v1 = vpack.c.bf16 %v1385_v63, %v1383_v60  ;;  %v1409_v60 = vld [vmem:[#allocation11 + $0xa70] sm:$0xff] }
 0x251   : > { %2928 = vmatprep.subr.bf16.mxu0 %v2927_v2  ;;  %v1382_v2 = vld [vmem:[#allocation11 + $0x2b0] sm:$0xff] }
 0x252   : > { %v2953_v7 = vpack.c.bf16 %v1384_v3, %v1382_v2  ;;  %v1408_v2 = vld [vmem:[#allocation11 + $0xa68] sm:$0xff] }
 0x253   : > { %v1411_v3 = vld [vmem:[#allocation11 + $0xb08] sm:$0xff] }
 0x254   : > { %2930 = vmatpush1.bf16.msra.mxu0 %v2929_v8  ;;  %v2955_v8 = vpack.c.bf16 %v1389_v6, %v1387_v5  ;;  %v1413_v5 = vld [vmem:[#allocation11 + $0xba0] sm:$0xff] }
 0x255   : > { %2932 = vmatprep.subr.bf16.mxu0 %v2931_v9  ;;  %v1386_v9 = vld [vmem:[#allocation11 + $0x3e0] sm:$0xff] }
 0x256   : > { %v2957_v15 = vpack.c.bf16 %v1388_v12, %v1386_v9  ;;  %v1412_v9 = vld [vmem:[#allocation11 + $0xb98] sm:$0xff] }
 0x257   : > { %v1415_v12 = vld [vmem:[#allocation11 + $0xc38] sm:$0xff] }
 0x258   : > { %2934 = vmatpush1.bf16.msra.mxu0 %v2933_v24  ;;  %v2959_v24 = vpack.c.bf16 %v1393_v14, %v1391_v13  ;;  %v1417_v13 = vld [vmem:[#allocation11 + $0xcd0] sm:$0xff] }
 0x259   : > { %2936 = vmatprep.subr.bf16.mxu0 %v2935_v25  ;;  %v1390_v25 = vld [vmem:[#allocation11 + $0x510] sm:$0xff] }
 0x2f6   : > { %v975_v34 = vpop.f32.mrb[2].mxu0 }
 0x2f7   : > { %v976_v36 = vadd.f32 %v975_v34, %v902_v29  ;;  %v977_v38 = vpop.f32.mrb[3].mxu0  ;;  %v1286_v29 = vld [vmem:[#allocation11 + $0x11f8] sm:$0xff]  ;;  %v2937_v34 = vpack.c.bf16 %v1283_v27, %v1281_v26  ;;  %v1392_v26 = vld [vmem:[#allocation11 + $0x5a8] sm:$0xff] }
 0x2f8   : > { %v978_v41 = vadd.f32 %v977_v38, %v906_v33  ;;  %v1288_v33 = vld [vmem:[#allocation11 + $0x1290] sm:$0xff]  ;;  %v1395_v27 = vld [vmem:[#allocation11 + $0x648] sm:$0xff] }
 0x2f9   : > { %v980_v43 = vmax.f32 %v976_v36, 0.0  ;;  %v2939_v36 = vpack.c.bf16 %v1288_v33, %v1286_v29  ;;  %v1285_v38 = vld [vmem:[#allocation11 + $0x11f0] sm:$0xff]  ;;  %2938 = vmatpush1.bf16.msra.mxu0 %v2937_v34  ;;  %v1397_v29 = vld [vmem:[#allocation11 + $0x6e0] sm:$0xff]  ;;  %v2961_v33 = vpack.c.bf16 %v1392_v26, %v1390_v25  ;;  %v1416_v25 = vld [vmem:[#allocation11 + $0xcc8] sm:$0xff] }
 0x2fa   : > { %v981_v42 = vmax.f32 %v978_v41, 0.0  ;;  %v1287_v41 = vld [vmem:[#allocation11 + $0x1288] sm:$0xff]  ;;  %v2963_v34 = vpack.c.bf16 %v1397_v29, %v1395_v27  ;;  %v1421_v27 = vld [vmem:[#allocation11 + $0xe00] sm:$0xff] }
 0x2fb   : > { %2940 = vmatprep.subr.bf16.mxu0 %v2939_v36  ;;  %v1394_v36 = vld [vmem:[#allocation11 + $0x640] sm:$0xff]  ;;  %v1419_v26 = vld [vmem:[#allocation11 + $0xd68] sm:$0xff] }
 0x2fc   : > { %1122 = vmatprep.mubr.f32.mxu1 %v981_v42  ;;  %v2941_v42 = vpack.c.bf16 %v1287_v41, %v1285_v38  ;;  %v1396_v38 = vld [vmem:[#allocation11 + $0x6d8] sm:$0xff] }
 0x2fd   : > { %1123 = vmatmul.mubr.f32.vlgmr.msra.gmra.mrb[2].mxu1 %v980_v43  ;;  %v1375_v43 = vld [vmem:[#allocation11 + $0x58] sm:$0xff] }
 0x2fe   : > { %v2943_v48 = vpack.c.bf16 %v1377_v46, %v1375_v43  ;;  %2942 = vmatpush1.bf16.msra.mxu0 %v2941_v42  ;;  %v1399_v41 = vld [vmem:[#allocation11 + $0x778] sm:$0xff]  ;;  %v1401_v42 = vld [vmem:[#allocation11 + $0x810] sm:$0xff]  ;;  %v2965_v43 = vpack.c.bf16 %v1396_v38, %v1394_v36 }
 0x2ff   : > { %v2967_v46 = vpack.c.bf16 %v1401_v42, %v1399_v41  ;;  %v1420_v36 = vld [vmem:[#allocation11 + $0xdf8] sm:$0xff]  ;;  %v1425_v41 = vld [vmem:[#allocation11 + $0xf30] sm:$0xff] }
 0x300   : > { %2944 = vmatprep.subr.bf16.mxu1 %v2943_v48  ;;  %v1400_v48 = vld [vmem:[#allocation11 + $0x808] sm:$0xff]  ;;  %v1423_v38 = vld [vmem:[#allocation11 + $0xe98] sm:$0xff] }
 0x301   : > { %2946 = vmatpush1.bf16.msra.mxu1 %v2945_v56  ;;  %v2969_v55 = vpack.c.bf16 %v1400_v48, %v1398_v47  ;;  %v2971_v56 = vpack.c.bf16 %v1405_v53, %v1403_v49  ;;  %v1424_v47 = vld [vmem:[#allocation11 + $0xf28] sm:$0xff]  ;;  %v1429_v49 = vld [vmem:[#allocation11 + $0x1060] sm:$0xff] }
 0x302   : > { %2948 = vmatprep.subr.bf16.mxu1 %v2947_v57  ;;  %v1402_v57 = vld [vmem:[#allocation11 + $0x8a0] sm:$0xff]  ;;  %v1427_v48 = vld [vmem:[#allocation11 + $0xfc8] sm:$0xff] }
 0x303   : > { %v2973_v63 = vpack.c.bf16 %v1404_v58, %v1402_v57  ;;  %v1428_v57 = vld [vmem:[#allocation11 + $0x1058] sm:$0xff] }
 0x304   : > { %v1431_v58 = vld [vmem:[#allocation11 + $0x10f8] sm:$0xff] }
 0x305   : > { %2950 = vmatpush1.bf16.msra.mxu1 %v2949_v62  ;;  %v2975_v62 = vpack.c.bf16 %v1409_v60, %v1407_v59  ;;  %v1433_v59 = vld [vmem:[#allocation11 + $0x1190] sm:$0xff] }
 0x306   : > { %2952 = vmatprep.subr.bf16.mxu1 %v2951_v1  ;;  %v1406_v1 = vld [vmem:[#allocation11 + $0x9d0] sm:$0xff] }
 0x307   : > { %v2977_v6 = vpack.c.bf16 %v1408_v2, %v1406_v1 }
 0x309   : > { %2954 = vmatpush1.bf16.msra.mxu1 %v2953_v7  ;;  %v2979_v7 = vpack.c.bf16 %v1413_v5, %v1411_v3 }
 0x30a   : > { %2956 = vmatprep.subr.bf16.mxu1 %v2955_v8  ;;  %v1410_v8 = vld [vmem:[#allocation11 + $0xb00] sm:$0xff] }
 0x30b   : > { %v2981_v14 = vpack.c.bf16 %v1412_v9, %v1410_v8 }
 0x30d   : > { %2958 = vmatpush1.bf16.msra.mxu1 %v2957_v15  ;;  %v2983_v15 = vpack.c.bf16 %v1417_v13, %v1415_v12 }
 0x30e   : > { %2960 = vmatprep.subr.bf16.mxu1 %v2959_v24  ;;  %v1414_v24 = vld [vmem:[#allocation11 + $0xc30] sm:$0xff] }
 0x30f   : > { %v2985_v29 = vpack.c.bf16 %v1416_v25, %v1414_v24 }
 0x311   : > { %2962 = vmatpush1.bf16.msra.mxu1 %v2961_v33  ;;  %v2987_v33 = vpack.c.bf16 %v1421_v27, %v1419_v26 }
 0x312   : > { %2964 = vmatprep.subr.bf16.mxu1 %v2963_v34  ;;  %v1418_v34 = vld [vmem:[#allocation11 + $0xd60] sm:$0xff] }
 0x313   : > { %v2989_v42 = vpack.c.bf16 %v1420_v36, %v1418_v34 }
 0x315   : > { %2966 = vmatpush1.bf16.msra.mxu1 %v2965_v43  ;;  %v2991_v43 = vpack.c.bf16 %v1425_v41, %v1423_v38 }
 0x316   : > { %2968 = vmatprep.subr.bf16.mxu1 %v2967_v46  ;;  %v1422_v46 = vld [vmem:[#allocation11 + $0xe90] sm:$0xff] }
 0x317   : > { %v2993_v53 = vpack.c.bf16 %v1424_v47, %v1422_v46 }
 0x319   : > { %2970 = vmatpush1.bf16.msra.mxu1 %v2969_v55  ;;  %v2995_v55 = vpack.c.bf16 %v1429_v49, %v1427_v48 }
 0x31a   : > { %2972 = vmatprep.subr.bf16.mxu1 %v2971_v56  ;;  %v1426_v56 = vld [vmem:[#allocation11 + $0xfc0] sm:$0xff] }
 0x31b   : > { %v2997_v60 = vpack.c.bf16 %v1428_v57, %v1426_v56 }
 0x31d   : > { %2974 = vmatpush1.bf16.msra.mxu1 %v2973_v63  ;;  %v2999_v63 = vpack.c.bf16 %v1433_v59, %v1431_v58 }
 0x31e   : > { %2976 = vmatprep.subr.bf16.mxu1 %v2975_v62  ;;  %v1046_v62 = vld [vmem:[#allocation13 + $0xa] sm:$0x3] }
 0x31f   : > { %v1051_v1 = vrot.slane %v1046_v62, %v4103_v45  ;;  %v1055_v2 = vrot.slane %v1046_v62, %v4093_v50 }
 0x321   : > { %2978 = vmatpush1.bf16.msra.mxu1 %v2977_v6 }
 0x322   : > { %2980 = vmatprep.subr.bf16.mxu1 %v2979_v7 }
 0x325   : > { %2982 = vmatpush1.bf16.msra.mxu1 %v2981_v14 }
 0x326   : > { %2984 = vmatprep.subr.bf16.mxu1 %v2983_v15 }
 0x329   : > { %2986 = vmatpush1.bf16.msra.mxu1 %v2985_v29 }
 0x32a   : > { %2988 = vmatprep.subr.bf16.mxu1 %v2987_v33 }
 0x32d   : > { %2990 = vmatpush1.bf16.msra.mxu1 %v2989_v42 }
 0x32e   : > { %2992 = vmatprep.subr.bf16.mxu1 %v2991_v43 }
 0x331   : > { %2994 = vmatpush1.bf16.msra.mxu1 %v2993_v53 }
 0x332   : > { %2996 = vmatprep.subr.bf16.mxu1 %v2995_v55 }
 0x335   : > { %2998 = vmatpush1.bf16.msra.mxu1 %v2997_v60 }
 0x336   : > { %3000 = vmatprep.subr.bf16.mxu1 %v2999_v63 }
 0x3d0   : > { %v1124_v3 = vpop.f32.mrb[2].mxu1 }
 0x3d1   : > { %v1125_v5 = vadd.f32 %v1124_v3, %v1051_v1  ;;  %v1126_v6 = vpop.f32.mrb[3].mxu1 }
 0x3d2   : > { %v1127_v7 = vadd.f32 %v1126_v6, %v1055_v2  ;;  %v1432_v6 = vld [vmem:[#allocation11 + $0x1188] sm:$0xff] }
 0x3d3   : > { %v4238_v8 = vadd.f32 %v1125_v5, %v4118_v17 }
 0x3d4   : > { %v4241_v9 = vadd.f32 %v1127_v7, %v4123_v19 }
 0x3d5   : > { %v1134_v12 = vrot.slane %v4238_v8, %v4103_v45  ;;  %v1144_v24 = vrot.slane %v4238_v8, %v4093_v50  ;;  %v1156_v26 = vrot.slane %v4238_v8, %v4116_v16  ;;  %v1168_v29 = vrot.slane %v4238_v8, %v4121_v18 }
 0x3d6   : > { %v1138_v13 = vrot.slane %v4241_v9, %v4103_v45  ;;  %v1148_v14 = vrot.slane %v4241_v9, %v4093_v50  ;;  %v1160_v15 = vrot.slane %v4241_v9, %v4116_v16  ;;  %v1172_v17 = vrot.slane %v4241_v9, %v4121_v18 }
 0x3d7   : > { %v1184_v27 = vrot.slane %v4241_v9, %v4132_v22  ;;  %v1139_v36 = vmul.f32 %v1134_v12, %v4153_v31  ;;  %v1149_v38 = vmul.f32 %v4156_v32, %v1144_v24  ;;  %v1161_v43 = vmul.f32 %v4171_v40, %v1156_v26  ;;  %v1437_v12 = vld [vmem:[#allocation11 + $0x12c0] sm:$0xff]  ;;  %v1618_v24 = vld [vmem:[#allocation11 + $0x38] sm:$0xff] }
 0x3d8   : > { %v1140_v19 = vmul.f32 %v1138_v13, %v4126_v20  ;;  %v1150_v25 = vmul.f32 %v4129_v21, %v1148_v14  ;;  %v1162_v34 = vmul.f32 %v4145_v28, %v1160_v15  ;;  %v1174_v20 = vmul.f32 %v4161_v35, %v1172_v17  ;;  %v1434_v13 = vld [vmem:[#allocation11 + $0x1220] sm:$0xff]  ;;  %v1436_v15 = vld [vmem:[#allocation11 + $0x12b8] sm:$0xff]  ;;  %v1617_v17 = vld [vmem:[#allocation11 + $0x30] sm:$0xff] }
 0x3d9   : > { %v1196_v21 = vrot.slane %v4241_v9, %v4150_v30  ;;  %v1151_v42 = vadd.f32 %v1149_v38, %v1139_v36  ;;  %v1180_v46 = vrot.slane %v4238_v8, %v4132_v22  ;;  %v1186_v47 = vmul.f32 %v4177_v44, %v1184_v27  ;;  %v1624_v26 = vld [vmem:[#allocation11 + $0x200] sm:$0xff]  ;;  %v1626_v36 = vld [vmem:[#allocation11 + $0x298] sm:$0xff]  ;;  %v1628_v38 = vld [vmem:[#allocation11 + $0x330] sm:$0xff] }
 0x3da   : > { %v1152_v33 = vadd.f32 %v1150_v25, %v1140_v19  ;;  %v1208_v28 = vrot.slane %v4241_v9, %v4168_v39  ;;  %v1173_v32 = vmul.f32 %v4188_v52, %v1168_v29  ;;  %v1192_v35 = vrot.slane %v4238_v8, %v4150_v30  ;;  %v1619_v25 = vld [vmem:[#allocation11 + $0xc8] sm:$0xff] }
 0x3db   : > { %v1163_v48 = vadd.f32 %v1161_v43, %v1151_v42  ;;  %v1198_v49 = vmul.f32 %v4191_v54, %v1196_v21  ;;  %v1220_v40 = vrot.slane %v4241_v9, %v4185_v51  ;;  %v1185_v56 = vmul.f32 %v4200_v37, %v1180_v46  ;;  %v1627_v42 = vld [vmem:[#allocation11 + $0x328] sm:$0xff]  ;;  %v1632_v46 = vld [vmem:[#allocation11 + $0x460] sm:$0xff] }
 0x3dc   : > { %v1164_v41 = vadd.f32 %v1162_v34, %v1152_v33  ;;  %v1204_v44 = vrot.slane %v4238_v8, %v4168_v39  ;;  %v1210_v57 = vmul.f32 %v4203_v61, %v1208_v28  ;;  %v1197_v52 = vmul.f32 %v4212_v4, %v1192_v35  ;;  %v1430_v61 = vld [vmem:[#allocation11 + $0x10f0] sm:$0xff]  ;;  %v1435_v4 = vld [vmem:[#allocation11 + $0x1228] sm:$0xff]  ;;  %v1621_v33 = vld [vmem:[#allocation11 + $0x160] sm:$0xff] }
 0x3dd   : > { %v1175_v55 = vadd.f32 %v1173_v32, %v1163_v48  ;;  %v1216_v60 = vrot.slane %v4238_v8, %v4185_v51  ;;  %v1222_v63 = vmul.f32 %v4219_v10, %v1220_v40  ;;  %v3001_v7 = vpack.c.bf16 %v1432_v6, %v1430_v61  ;;  %v1623_v34 = vld [vmem:[#allocation11 + $0x1f8] sm:$0xff]  ;;  %v1630_v43 = vld [vmem:[#allocation11 + $0x3c8] sm:$0xff]  ;;  %v1636_v35 = vld [vmem:[#allocation11 + $0x590] sm:$0xff] }
 0x3de   : > { %v1176_v31 = vadd.f32 %v1174_v20, %v1164_v41  ;;  %v1209_v1 = vmul.f32 %v4222_v11, %v1204_v44  ;;  %v3003_v14 = vpack.c.bf16 %v1437_v12, %v1435_v4  ;;  %v3005_v10 = vpack.c.bf16 %v1436_v15, %v1434_v13  ;;  %v1620_v11 = vld [vmem:[#allocation11 + $0xd0] sm:$0xff]  ;;  %v1631_v48 = vld [vmem:[#allocation11 + $0x458] sm:$0xff]  ;;  %v1640_v44 = vld [vmem:[#allocation11 + $0x6c0] sm:$0xff] }
 0x3df   : > { %v1187_v59 = vadd.f32 %v1185_v56, %v1175_v55  ;;  %v1221_v3 = vmul.f32 %v4228_v23, %v1216_v60  ;;  %3002 = vmatpush1.bf16.msra.mxu1 %v3001_v7  ;;  %v3007_v19 = vpack.c.bf16 %v1620_v11, %v1618_v24  ;;  %v1622_v23 = vld [vmem:[#allocation11 + $0x168] sm:$0xff]  ;;  %v3009_v27 = vpack.c.bf16 %v1619_v25, %v1617_v17  ;;  %v1625_v41 = vld [vmem:[#allocation11 + $0x290] sm:$0xff]  ;;  %v1634_v32 = vld [vmem:[#allocation11 + $0x4f8] sm:$0xff] }
 0x3e0   : > { %v1188_v53 = vadd.f32 %v1186_v47, %v1176_v31  ;;  %3004 = vmatprep.subr.bf16.mxu1 %v3003_v14  ;;  %v3011_v29 = vpack.c.bf16 %v1624_v26, %v1622_v23  ;;  %v3013_v20 = vpack.c.bf16 %v1623_v34, %v1621_v33  ;;  %v3015_v21 = vpack.c.bf16 %v1628_v38, %v1626_v36  ;;  %v1629_v31 = vld [vmem:[#allocation11 + $0x3c0] sm:$0xff]  ;;  %v1635_v55 = vld [vmem:[#allocation11 + $0x588] sm:$0xff]  ;;  %v1642_v60 = vld [vmem:[#allocation11 + $0x758] sm:$0xff] }
 0x3e1   : > { %v1199_v62 = vadd.f32 %v1197_v52, %v1187_v59  ;;  %3008 = vmatprep.subr.bf16.mxu0 %v3007_v19  ;;  %v3017_v47 = vpack.c.bf16 %v1627_v42, %v1625_v41  ;;  %v3019_v28 = vpack.c.bf16 %v1632_v46, %v1630_v43  ;;  %v3023_v40 = vpack.c.bf16 %v1636_v35, %v1634_v32  ;;  %v1638_v56 = vld [vmem:[#allocation11 + $0x628] sm:$0xff]  ;;  %v1637_v59 = vld [vmem:[#allocation11 + $0x620] sm:$0xff]  ;;  %v1639_v52 = vld [vmem:[#allocation11 + $0x6b8] sm:$0xff] }
 0x3e2   : > { %v1200_v58 = vadd.f32 %v1198_v49, %v1188_v53  ;;  %v3021_v49 = vpack.c.bf16 %v1631_v48, %v1629_v31  ;;  %v1633_v53 = vld [vmem:[#allocation11 + $0x4f0] sm:$0xff]  ;;  %v1645_v6 = vld [vmem:[#allocation11 + $0x880] sm:$0xff]  ;;  %v1647_v7 = vld [vmem:[#allocation11 + $0x918] sm:$0xff] }
 0x3e3   : > { %v1211_v37 = vadd.f32 %v1209_v1, %v1199_v62  ;;  %3006 = vmatpush1.bf16.msra.mxu1 %v3005_v10  ;;  %v1641_v1 = vld [vmem:[#allocation11 + $0x750] sm:$0xff]  ;;  %v1650_v4 = vld [vmem:[#allocation11 + $0x9b8] sm:$0xff]  ;;  %v3037_v13 = vpack.c.bf16 %v1647_v7, %v1645_v6  ;;  %v1651_v10 = vld [vmem:[#allocation11 + $0xa48] sm:$0xff] }
 0x3e4   : > { %v1212_v54 = vadd.f32 %v1210_v57, %v1200_v58  ;;  %v3025_v57 = vpack.c.bf16 %v1635_v55, %v1633_v53  ;;  %v3027_v58 = vpack.c.bf16 %v1640_v44, %v1638_v56  ;;  %v1652_v12 = vld [vmem:[#allocation11 + $0xa50] sm:$0xff]  ;;  %v1654_v24 = vld [vmem:[#allocation11 + $0xae8] sm:$0xff]  ;;  %v1656_v11 = vld [vmem:[#allocation11 + $0xb80] sm:$0xff] }
 0x3e5   : > { %v1223_v5 = vadd.f32 %v1221_v3, %v1211_v37  ;;  %v1646_v37 = vld [vmem:[#allocation11 + $0x888] sm:$0xff]  ;;  %v1648_v3 = vld [vmem:[#allocation11 + $0x920] sm:$0xff]  ;;  %v3039_v14 = vpack.c.bf16 %v1652_v12, %v1650_v4  ;;  %v1649_v15 = vld [vmem:[#allocation11 + $0x9b0] sm:$0xff]  ;;  %v3043_v19 = vpack.c.bf16 %v1656_v11, %v1654_v24 }
 0x3e6   : > { %v1224_v2 = vadd.f32 %v1222_v63, %v1212_v54  ;;  %v1644_v54 = vld [vmem:[#allocation11 + $0x7f0] sm:$0xff]  ;;  %v3029_v63 = vpack.c.bf16 %v1639_v52, %v1637_v59  ;;  %v3035_v61 = vpack.c.bf16 %v1648_v3, %v1646_v37  ;;  %v3041_v17 = vpack.c.bf16 %v1651_v10, %v1649_v15  ;;  %v1653_v25 = vld [vmem:[#allocation11 + $0xae0] sm:$0xff]  ;;  %v1655_v23 = vld [vmem:[#allocation11 + $0xb78] sm:$0xff] }
 0x3e7   : > { %v3031_v62 = vpack.c.bf16 %v1644_v54, %v1642_v60  ;;  %v3045_v26 = vpack.c.bf16 %v1655_v23, %v1653_v25  ;;  %v1658_v42 = vld [vmem:[#allocation11 + $0xc18] sm:$0xff]  ;;  %v1660_v43 = vld [vmem:[#allocation11 + $0xcb0] sm:$0xff]  ;;  %v1662_v31 = vld [vmem:[#allocation11 + $0xd48] sm:$0xff] }
 0x3e8   : > { %1365 = vmatprep.mubr.f32.mxu0 %v1224_v2  ;;  %v1643_v2 = vld [vmem:[#allocation11 + $0x7e8] sm:$0xff]  ;;  %v1657_v46 = vld [vmem:[#allocation11 + $0xc10] sm:$0xff]  ;;  %v1664_v48 = vld [vmem:[#allocation11 + $0xde0] sm:$0xff] }
 0x3e9   : > { %1366 = vmatmul.mubr.f32.vlgmr.msra.gmra.mrb[4].mxu0 %v1223_v5  ;;  %v3033_v5 = vpack.c.bf16 %v1643_v2, %v1641_v1  ;;  %v3051_v35 = vpack.c.bf16 %v1664_v48, %v1662_v31  ;;  %v1666_v53 = vld [vmem:[#allocation11 + $0xe78] sm:$0xff]  ;;  %v1668_v55 = vld [vmem:[#allocation11 + $0xf10] sm:$0xff]  ;;  %v1670_v59 = vld [vmem:[#allocation11 + $0xfa8] sm:$0xff] }
 0x3ea   : > { %3010 = vmatpush1.bf16.msra.mxu0 %v3009_v27  ;;  %v1289_v27 = vld [vmem:[#allocation13 + $0x6] sm:$0x3]  ;;  %v3055_v44 = vpack.c.bf16 %v1668_v55, %v1666_v53  ;;  %v1674_v1 = vld [vmem:[#allocation11 + $0x10d8] sm:$0xff]  ;;  %v1676_v2 = vld [vmem:[#allocation11 + $0x1170] sm:$0xff] }
 0x3eb   : > { %3012 = vmatprep.subr.bf16.mxu0 %v3011_v29  ;;  %v1294_v29 = vrot.slane %v1289_v27, %v4103_v45  ;;  %v1298_v33 = vrot.slane %v1289_v27, %v4093_v50  ;;  %v1672_v52 = vld [vmem:[#allocation11 + $0x1040] sm:$0xff]  ;;  %v3063_v3 = vpack.c.bf16 %v1676_v2, %v1674_v1  ;;  %v1678_v6 = vld [vmem:[#allocation11 + $0x1208] sm:$0xff]  ;;  %v1771_v25 = vld [vmem:[#allocation11 + $0x198] sm:$0xff] }
 0x3ec   : > { %v3059_v54 = vpack.c.bf16 %v1672_v52, %v1670_v59  ;;  %v1680_v7 = vld [vmem:[#allocation11 + $0x12a0] sm:$0xff]  ;;  %v1767_v10 = vld [vmem:[#allocation11 + $0x68] sm:$0xff]  ;;  %v1773_v23 = vld [vmem:[#allocation11 + $0x230] sm:$0xff] }
 0x3ed   : > { %v3067_v12 = vpack.c.bf16 %v1680_v7, %v1678_v6  ;;  %v1769_v24 = vld [vmem:[#allocation11 + $0x100] sm:$0xff]  ;;  %v3075_v27 = vpack.c.bf16 %v1773_v23, %v1771_v25  ;;  %v1780_v31 = vld [vmem:[#allocation11 + $0x488] sm:$0xff]  ;;  %v1784_v53 = vld [vmem:[#allocation11 + $0x5b8] sm:$0xff] }
 0x3ee   : > { %3014 = vmatpush1.bf16.msra.mxu0 %v3013_v20  ;;  %v1766_v11 = vld [vmem:[#allocation11 + $0x60] sm:$0xff]  ;;  %v1783_v48 = vld [vmem:[#allocation11 + $0x528] sm:$0xff]  ;;  %v1787_v55 = vld [vmem:[#allocation11 + $0x658] sm:$0xff] }
 0x3ef   : > { %3016 = vmatprep.subr.bf16.mxu0 %v3015_v21  ;;  %v1788_v59 = vld [vmem:[#allocation11 + $0x6e8] sm:$0xff]  ;;  %v1792_v1 = vld [vmem:[#allocation11 + $0x818] sm:$0xff] }
 0x3f0   : > { %v1791_v52 = vld [vmem:[#allocation11 + $0x788] sm:$0xff]  ;;  %v1795_v2 = vld [vmem:[#allocation11 + $0x8b8] sm:$0xff] }
 0x3f1   : > { %v1796_v6 = vld [vmem:[#allocation11 + $0x948] sm:$0xff] }
 0x3f2   : > { %3018 = vmatpush1.bf16.msra.mxu0 %v3017_v47  ;;  %v3047_v47 = vpack.c.bf16 %v1660_v43, %v1658_v42  ;;  %v1779_v42 = vld [vmem:[#allocation11 + $0x3f8] sm:$0xff]  ;;  %v1781_v43 = vld [vmem:[#allocation11 + $0x490] sm:$0xff]  ;;  %v1799_v7 = vld [vmem:[#allocation11 + $0x9e8] sm:$0xff] }
 0x3f3   : > { %3020 = vmatprep.subr.bf16.mxu0 %v3019_v28  ;;  %v1659_v28 = vld [vmem:[#allocation11 + $0xca8] sm:$0xff] }
 0x3f4   : > { %v3049_v32 = vpack.c.bf16 %v1659_v28, %v1657_v46  ;;  %v1778_v28 = vld [vmem:[#allocation11 + $0x3f0] sm:$0xff]  ;;  %v1804_v25 = vld [vmem:[#allocation11 + $0xba8] sm:$0xff] }
 0x3f5   : > { %v1807_v23 = vld [vmem:[#allocation11 + $0xc48] sm:$0xff] }
 0x3f6   : > { %3022 = vmatpush1.bf16.msra.mxu0 %v3021_v49  ;;  %v1661_v49 = vld [vmem:[#allocation11 + $0xd40] sm:$0xff] }
 0x3f7   : > { %3024 = vmatprep.subr.bf16.mxu0 %v3023_v40  ;;  %v1663_v40 = vld [vmem:[#allocation11 + $0xdd8] sm:$0xff] }
 0x3f8   : > { %v3053_v56 = vpack.c.bf16 %v1663_v40, %v1661_v49  ;;  %v1782_v40 = vld [vmem:[#allocation11 + $0x520] sm:$0xff] }
 0x3fa   : > { %3026 = vmatpush1.bf16.msra.mxu0 %v3025_v57  ;;  %v1665_v57 = vld [vmem:[#allocation11 + $0xe70] sm:$0xff] }
 0x3fb   : > { %3028 = vmatprep.subr.bf16.mxu0 %v3027_v58  ;;  %v1667_v58 = vld [vmem:[#allocation11 + $0xf08] sm:$0xff] }
 0x3fc   : > { %v3057_v60 = vpack.c.bf16 %v1667_v58, %v1665_v57  ;;  %v1786_v58 = vld [vmem:[#allocation11 + $0x650] sm:$0xff] }
 0x3fe   : > { %3030 = vmatpush1.bf16.msra.mxu0 %v3029_v63  ;;  %v1669_v63 = vld [vmem:[#allocation11 + $0xfa0] sm:$0xff] }
 0x3ff   : > { %3032 = vmatprep.subr.bf16.mxu0 %v3031_v62  ;;  %v1671_v62 = vld [vmem:[#allocation11 + $0x1038] sm:$0xff] }
 0x400   : > { %v3061_v37 = vpack.c.bf16 %v1671_v62, %v1669_v63  ;;  %v1790_v62 = vld [vmem:[#allocation11 + $0x780] sm:$0xff] }
 0x402   : > { %3034 = vmatpush1.bf16.msra.mxu0 %v3033_v5  ;;  %v1673_v5 = vld [vmem:[#allocation11 + $0x10d0] sm:$0xff] }
 0x403   : > { %3036 = vmatprep.subr.bf16.mxu0 %v3035_v61  ;;  %v1675_v61 = vld [vmem:[#allocation11 + $0x1168] sm:$0xff] }
 0x404   : > { %v3065_v4 = vpack.c.bf16 %v1675_v61, %v1673_v5  ;;  %v1794_v61 = vld [vmem:[#allocation11 + $0x8b0] sm:$0xff] }
 0x406   : > { %3038 = vmatpush1.bf16.msra.mxu0 %v3037_v13  ;;  %v1677_v13 = vld [vmem:[#allocation11 + $0x1200] sm:$0xff] }
 0x407   : > { %3040 = vmatprep.subr.bf16.mxu0 %v3039_v14  ;;  %v1679_v14 = vld [vmem:[#allocation11 + $0x1298] sm:$0xff] }
 0x408   : > { %v3069_v15 = vpack.c.bf16 %v1679_v14, %v1677_v13  ;;  %v1798_v14 = vld [vmem:[#allocation11 + $0x9e0] sm:$0xff] }
 0x40a   : > { %3042 = vmatpush1.bf16.msra.mxu0 %v3041_v17  ;;  %v3071_v17 = vpack.c.bf16 %v1769_v24, %v1767_v10  ;;  %v1803_v10 = vld [vmem:[#allocation11 + $0xb18] sm:$0xff]  ;;  %v1805_v24 = vld [vmem:[#allocation11 + $0xbb0] sm:$0xff] }
 0x40b   : > { %3044 = vmatprep.subr.bf16.mxu0 %v3043_v19  ;;  %v1768_v19 = vld [vmem:[#allocation11 + $0xf8] sm:$0xff] }
 0x40c   : > { %3072 = vmatprep.subr.bf16.mxu1 %v3071_v17  ;;  %v3107_v17 = vpack.c.bf16 %v1805_v24, %v1803_v10 }
 0x40e   : > { %3046 = vmatpush1.bf16.msra.mxu0 %v3045_v26  ;;  %v3073_v26 = vpack.c.bf16 %v1768_v19, %v1766_v11  ;;  %v1802_v19 = vld [vmem:[#allocation11 + $0xb10] sm:$0xff] }
 0x40f   : > { %3048 = vmatprep.subr.bf16.mxu0 %v3047_v47  ;;  %v3083_v47 = vpack.c.bf16 %v1781_v43, %v1779_v42  ;;  %v1812_v42 = vld [vmem:[#allocation11 + $0xe08] sm:$0xff] }
 0x410   : > { %v1815_v43 = vld [vmem:[#allocation11 + $0xea8] sm:$0xff] }
 0x412   : > { %3050 = vmatpush1.bf16.msra.mxu0 %v3049_v32  ;;  %v1785_v32 = vld [vmem:[#allocation11 + $0x5c0] sm:$0xff] }
 0x413   : > { %3052 = vmatprep.subr.bf16.mxu0 %v3051_v35  ;;  %v3085_v35 = vpack.c.bf16 %v1780_v31, %v1778_v28  ;;  %v3087_v49 = vpack.c.bf16 %v1785_v32, %v1783_v48  ;;  %v1814_v31 = vld [vmem:[#allocation11 + $0xea0] sm:$0xff]  ;;  %v1816_v48 = vld [vmem:[#allocation11 + $0xf38] sm:$0xff] }
 0x414   : > { %v1819_v32 = vld [vmem:[#allocation11 + $0xfd8] sm:$0xff] }
 0x416   : > { %3054 = vmatpush1.bf16.msra.mxu0 %v3053_v56  ;;  %v1789_v56 = vld [vmem:[#allocation11 + $0x6f0] sm:$0xff] }
 0x417   : > { %3056 = vmatprep.subr.bf16.mxu0 %v3055_v44  ;;  %v3089_v44 = vpack.c.bf16 %v1784_v53, %v1782_v40  ;;  %v3091_v57 = vpack.c.bf16 %v1789_v56, %v1787_v55  ;;  %v1818_v53 = vld [vmem:[#allocation11 + $0xfd0] sm:$0xff]  ;;  %v1820_v55 = vld [vmem:[#allocation11 + $0x1068] sm:$0xff] }
 0x418   : > { %v1823_v56 = vld [vmem:[#allocation11 + $0x1108] sm:$0xff] }
 0x41a   : > { %3058 = vmatpush1.bf16.msra.mxu0 %v3057_v60  ;;  %v1793_v60 = vld [vmem:[#allocation11 + $0x820] sm:$0xff] }
 0x41b   : > { %3060 = vmatprep.subr.bf16.mxu0 %v3059_v54  ;;  %v3093_v54 = vpack.c.bf16 %v1788_v59, %v1786_v58  ;;  %v3095_v63 = vpack.c.bf16 %v1793_v60, %v1791_v52  ;;  %v1438_v59 = vld [vmem:[#allocation13 + $0xc] sm:$0x3] }
 0x41c   : > { %v1443_v52 = vrot.slane %v1438_v59, %v4103_v45  ;;  %v1447_v60 = vrot.slane %v1438_v59, %v4093_v50 }
 0x41e   : > { %3062 = vmatpush1.bf16.msra.mxu0 %v3061_v37  ;;  %v1797_v37 = vld [vmem:[#allocation11 + $0x950] sm:$0xff] }
 0x41f   : > { %3064 = vmatprep.subr.bf16.mxu0 %v3063_v3  ;;  %v3097_v3 = vpack.c.bf16 %v1792_v1, %v1790_v62  ;;  %v3099_v5 = vpack.c.bf16 %v1797_v37, %v1795_v2 }
 0x422   : > { %3066 = vmatpush1.bf16.msra.mxu0 %v3065_v4  ;;  %v1801_v4 = vld [vmem:[#allocation11 + $0xa80] sm:$0xff] }
 0x423   : > { %3068 = vmatprep.subr.bf16.mxu0 %v3067_v12  ;;  %v3101_v12 = vpack.c.bf16 %v1796_v6, %v1794_v61  ;;  %v3103_v13 = vpack.c.bf16 %v1801_v4, %v1799_v7  ;;  %v3402_v7 = vld [vmem:[%s4073_s4 + $0x8] sm:$0xff] }
 0x426   : > { %3070 = vmatpush1.bf16.msra.mxu0 %v3069_v15  ;;  %v1800_v15 = vld [vmem:[#allocation11 + $0xa78] sm:$0xff] }
 0x427   : > { %v3105_v11 = vpack.c.bf16 %v1800_v15, %v1798_v14 }
 0x4bc   : > { %v1367_v34 = vpop.f32.mrb[4].mxu0 }
 0x4bd   : > { %v1368_v36 = vadd.f32 %v1367_v34, %v1294_v29  ;;  %v1369_v38 = vpop.f32.mrb[5].mxu0  ;;  %v1770_v29 = vld [vmem:[#allocation11 + $0x190] sm:$0xff]  ;;  %v1775_v34 = vld [vmem:[#allocation11 + $0x2c8] sm:$0xff] }
 0x4be   : > { %v1370_v20 = vadd.f32 %v1369_v38, %v1298_v33  ;;  %v1772_v33 = vld [vmem:[#allocation11 + $0x228] sm:$0xff] }
 0x4bf   : > { %v1372_v41 = vmax.f32 %v1368_v36, 0.0  ;;  %v1777_v36 = vld [vmem:[#allocation11 + $0x360] sm:$0xff]  ;;  %v3077_v38 = vpack.c.bf16 %v1772_v33, %v1770_v29 }
 0x4c0   : > { %v1373_v21 = vmax.f32 %v1370_v20, 0.0  ;;  %v3079_v20 = vpack.c.bf16 %v1777_v36, %v1775_v34  ;;  %v1806_v33 = vld [vmem:[#allocation11 + $0xc40] sm:$0xff]  ;;  %v1808_v34 = vld [vmem:[#allocation11 + $0xcd8] sm:$0xff] }
 0x4c1   : > { %v1811_v36 = vld [vmem:[#allocation11 + $0xd78] sm:$0xff] }
 0x4c2   : > { %1514 = vmatprep.mubr.f32.mxu1 %v1373_v21  ;;  %v1774_v21 = vld [vmem:[#allocation11 + $0x2c0] sm:$0xff] }
 0x4c3   : > { %1515 = vmatmul.mubr.f32.vlgmr.msra.gmra.mrb[4].mxu1 %v1372_v41  ;;  %v1776_v41 = vld [vmem:[#allocation11 + $0x358] sm:$0xff] }
 0x4c4   : > { %3074 = vmatpush1.bf16.msra.mxu1 %v3073_v26  ;;  %v3081_v46 = vpack.c.bf16 %v1776_v41, %v1774_v21  ;;  %v1809_v26 = vld [vmem:[#allocation11 + $0xce0] sm:$0xff]  ;;  %v1810_v41 = vld [vmem:[#allocation11 + $0xd70] sm:$0xff] }
 0x4c5   : > { %3076 = vmatprep.subr.bf16.mxu1 %v3075_v27  ;;  %v3109_v27 = vpack.c.bf16 %v1804_v25, %v1802_v19  ;;  %v3111_v29 = vpack.c.bf16 %v1809_v26, %v1807_v23  ;;  %v3405_v19 = vld [vmem:[%s4073_s4] sm:$0xff]  ;;  %v3406_v23 = vld [vmem:[%s4073_s4 + $0x10] sm:$0xff] }
 0x4c8   : > { %3078 = vmatpush1.bf16.msra.mxu1 %v3077_v38  ;;  %v1813_v38 = vld [vmem:[#allocation11 + $0xe10] sm:$0xff] }
 0x4c9   : > { %3080 = vmatprep.subr.bf16.mxu1 %v3079_v20  ;;  %v3113_v20 = vpack.c.bf16 %v1808_v34, %v1806_v33  ;;  %v3115_v21 = vpack.c.bf16 %v1813_v38, %v1811_v36  ;;  %v3408_v36 = vld [vmem:[%s4073_s4 + $0x20] sm:$0xff] }
 0x4cc   : > { %3082 = vmatpush1.bf16.msra.mxu1 %v3081_v46  ;;  %v1817_v46 = vld [vmem:[#allocation11 + $0xf40] sm:$0xff] }
 0x4cd   : > { %3084 = vmatprep.subr.bf16.mxu1 %v3083_v47  ;;  %v3117_v47 = vpack.c.bf16 %v1812_v42, %v1810_v41  ;;  %v3119_v28 = vpack.c.bf16 %v1817_v46, %v1815_v43  ;;  %v3410_v46 = vld [vmem:[%s4073_s4 + $0x30] sm:$0xff] }
 0x4d0   : > { %3086 = vmatpush1.bf16.msra.mxu1 %v3085_v35  ;;  %v1821_v35 = vld [vmem:[#allocation11 + $0x1070] sm:$0xff] }
 0x4d1   : > { %3088 = vmatprep.subr.bf16.mxu1 %v3087_v49  ;;  %v3121_v49 = vpack.c.bf16 %v1816_v48, %v1814_v31  ;;  %v3123_v40 = vpack.c.bf16 %v1821_v35, %v1819_v32  ;;  %v3411_v31 = vld [vmem:[%s4073_s4 + $0x58] sm:$0xff] }
 0x4d4   : > { %3090 = vmatpush1.bf16.msra.mxu1 %v3089_v44  ;;  %v1825_v44 = vld [vmem:[#allocation11 + $0x11a0] sm:$0xff] }
 0x4d5   : > { %3092 = vmatprep.subr.bf16.mxu1 %v3091_v57  ;;  %v3125_v57 = vpack.c.bf16 %v1820_v55, %v1818_v53  ;;  %v3127_v58 = vpack.c.bf16 %v1825_v44, %v1823_v56  ;;  %v3413_v55 = vld [vmem:[%s4073_s4 + $0x68] sm:$0xff] }
 0x4d8   : > { %3094 = vmatpush1.bf16.msra.mxu1 %v3093_v54 }
 0x4d9   : > { %3096 = vmatprep.subr.bf16.mxu1 %v3095_v63 }
 0x4dc   : > { %3098 = vmatpush1.bf16.msra.mxu1 %v3097_v3 }
 0x4dd   : > { %3100 = vmatprep.subr.bf16.mxu1 %v3099_v5 }
 0x4e0   : > { %3102 = vmatpush1.bf16.msra.mxu1 %v3101_v12  ;;  %v3403_v12 = vld [vmem:[%s4073_s4 + $0x18] sm:$0xff] }
 0x4e1   : > { %3104 = vmatprep.subr.bf16.mxu1 %v3103_v13 }
 0x4e4   : > { %3106 = vmatpush1.bf16.msra.mxu1 %v3105_v11  ;;  %v3404_v11 = vld [vmem:[%s4073_s4 + $0x28] sm:$0xff] }
 0x4e5   : > { %3108 = vmatprep.subr.bf16.mxu1 %v3107_v17 }
 0x4e8   : > { %3110 = vmatpush1.bf16.msra.mxu1 %v3109_v27  ;;  %v3407_v27 = vld [vmem:[%s4073_s4 + $0x38] sm:$0xff] }
 0x4e9   : > { %3112 = vmatprep.subr.bf16.mxu1 %v3111_v29 }
 0x4ec   : > { %3114 = vmatpush1.bf16.msra.mxu1 %v3113_v20  ;;  %v3409_v20 = vld [vmem:[%s4073_s4 + $0x48] sm:$0xff] }
 0x4ed   : > { %3116 = vmatprep.subr.bf16.mxu1 %v3115_v21 }
 0x4f0   : > { %3118 = vmatpush1.bf16.msra.mxu1 %v3117_v47 }
 0x4f1   : > { %3120 = vmatprep.subr.bf16.mxu1 %v3119_v28 }
 0x4f4   : > { %3122 = vmatpush1.bf16.msra.mxu1 %v3121_v49  ;;  %v3412_v49 = vld [vmem:[%s4073_s4 + $0x40] sm:$0xff] }
 0x4f5   : > { %3124 = vmatprep.subr.bf16.mxu1 %v3123_v40 }
 0x4f8   : > { %3126 = vmatpush1.bf16.msra.mxu1 %v3125_v57 }
 0x4f9   : > { %3128 = vmatprep.subr.bf16.mxu1 %v3127_v58 }
 0x596   : > { %v1516_v54 = vpop.f32.mrb[4].mxu1 }
 0x597   : > { %v1517_v63 = vadd.f32 %v1516_v54, %v1443_v52  ;;  %v1518_v62 = vpop.f32.mrb[5].mxu1 }
 0x598   : > { %v1519_v1 = vadd.f32 %v1518_v62, %v1447_v60  ;;  %v3415_v60 = vld [vmem:[%s4073_s4 + $0x78] sm:$0xff]  ;;  %v3416_v62 = vld [vmem:[%s4073_s4 + $0x60] sm:$0xff] }
 0x599   : > { %v4296_v2 = vadd.f32 %v1517_v63, %v4238_v8 }
 0x59a   : > { %v4299_v37 = vadd.f32 %v1519_v1, %v4241_v9 }
 0x59b   : > { %v1526_v3 = vrot.slane %v4296_v2, %v4103_v45  ;;  %v1536_v8 = vrot.slane %v4296_v2, %v4093_v50  ;;  %v1548_v14 = vrot.slane %v4296_v2, %v4116_v16  ;;  %v1560_v10 = vrot.slane %v4296_v2, %v4121_v18 }
 0x59c   : > { %v1530_v5 = vrot.slane %v4299_v37, %v4103_v45  ;;  %v1540_v61 = vrot.slane %v4299_v37, %v4093_v50  ;;  %v1552_v6 = vrot.slane %v4299_v37, %v4116_v16  ;;  %v1564_v9 = vrot.slane %v4299_v37, %v4121_v18 }
 0x59d   : > { %v1576_v15 = vrot.slane %v4299_v37, %v4132_v22  ;;  %v1531_v25 = vmul.f32 %v3405_v19, %v1526_v3  ;;  %v1541_v26 = vmul.f32 %v3406_v23, %v1536_v8  ;;  %v1588_v16 = vrot.slane %v4299_v37, %v4150_v30  ;;  %v1822_v8 = vld [vmem:[#allocation11 + $0x1100] sm:$0xff]  ;;  %v1929_v19 = vld [vmem:[#allocation11 + $0x108] sm:$0xff] }
 0x59e   : > { %v1532_v4 = vmul.f32 %v3402_v7, %v1530_v5  ;;  %v1542_v13 = vmul.f32 %v3403_v12, %v1540_v61  ;;  %v1554_v17 = vmul.f32 %v3404_v11, %v1552_v6  ;;  %v1566_v29 = vmul.f32 %v3407_v27, %v1564_v9  ;;  %v3417_v61 = vld [vmem:[%s4073_s4 + $0x70] sm:$0xff]  ;;  %v1824_v9 = vld [vmem:[#allocation11 + $0x1198] sm:$0xff]  ;;  %v1934_v23 = vld [vmem:[#allocation11 + $0x240] sm:$0xff] }
 0x59f   : > { %v1543_v34 = vadd.f32 %v1541_v26, %v1531_v25  ;;  %v1553_v18 = vmul.f32 %v3408_v36, %v1548_v14  ;;  %v1572_v38 = vrot.slane %v4296_v2, %v4132_v22  ;;  %v1578_v21 = vmul.f32 %v3409_v20, %v1576_v15  ;;  %v1829_v12 = vld [vmem:[#allocation11 + $0x12d0] sm:$0xff]  ;;  %v1828_v14 = vld [vmem:[#allocation11 + $0x12c8] sm:$0xff] }
 0x5a0   : > { %v1544_v24 = vadd.f32 %v1542_v13, %v1532_v4  ;;  %v1600_v41 = vrot.slane %v4299_v37, %v4168_v39  ;;  %v1565_v47 = vmul.f32 %v3410_v46, %v1560_v10  ;;  %v1584_v28 = vrot.slane %v4296_v2, %v4150_v30  ;;  %v3414_v30 = vld [vmem:[%s4073_s4 + $0x50] sm:$0xff]  ;;  %v1827_v4 = vld [vmem:[#allocation11 + $0x1238] sm:$0xff]  ;;  %v1932_v25 = vld [vmem:[#allocation11 + $0x1a8] sm:$0xff] }
 0x5a1   : > { %v1555_v43 = vadd.f32 %v1553_v18, %v1543_v34  ;;  %v1590_v48 = vmul.f32 %v3411_v31, %v1588_v16  ;;  %v1612_v22 = vrot.slane %v4299_v37, %v4185_v51  ;;  %v1577_v40 = vmul.f32 %v3412_v49, %v1572_v38  ;;  %v1826_v13 = vld [vmem:[#allocation11 + $0x1230] sm:$0xff]  ;;  %v1928_v10 = vld [vmem:[#allocation11 + $0x78] sm:$0xff]  ;;  %v1937_v20 = vld [vmem:[#allocation11 + $0x368] sm:$0xff] }
 0x5a2   : > { %v1556_v33 = vadd.f32 %v1554_v17, %v1544_v24  ;;  %v1596_v53 = vrot.slane %v4296_v2, %v4168_v39  ;;  %v1602_v56 = vmul.f32 %v3413_v55, %v1600_v41  ;;  %v1589_v58 = vmul.f32 %v3414_v30, %v1584_v28  ;;  %v1930_v24 = vld [vmem:[#allocation11 + $0x110] sm:$0xff]  ;;  %v1933_v16 = vld [vmem:[#allocation11 + $0x238] sm:$0xff]  ;;  %v1942_v41 = vld [vmem:[#allocation11 + $0x4a0] sm:$0xff] }
 0x5a3   : > { %v1567_v35 = vadd.f32 %v1565_v47, %v1555_v43  ;;  %v1608_v59 = vrot.slane %v4296_v2, %v4185_v51  ;;  %v1614_v54 = vmul.f32 %v3415_v60, %v1612_v22  ;;  %v3129_v7 = vpack.c.bf16 %v1824_v9, %v1822_v8  ;;  %v1927_v11 = vld [vmem:[#allocation11 + $0x70] sm:$0xff]  ;;  %v1939_v46 = vld [vmem:[#allocation11 + $0x400] sm:$0xff]  ;;  %v1941_v47 = vld [vmem:[#allocation11 + $0x498] sm:$0xff] }
 0x5a4   : > { %v1568_v42 = vadd.f32 %v1566_v29, %v1556_v33  ;;  %v1601_v1 = vmul.f32 %v3416_v62, %v1596_v53  ;;  %v3131_v51 = vpack.c.bf16 %v1829_v12, %v1827_v4  ;;  %v3133_v15 = vpack.c.bf16 %v1828_v14, %v1826_v13  ;;  %v1931_v29 = vld [vmem:[#allocation11 + $0x1a0] sm:$0xff]  ;;  %v1936_v33 = vld [vmem:[#allocation11 + $0x2d8] sm:$0xff]  ;;  %v1938_v34 = vld [vmem:[#allocation11 + $0x370] sm:$0xff] }
 0x5a5   : > { %v1579_v57 = vadd.f32 %v1577_v40, %v1567_v35  ;;  %v1613_v39 = vmul.f32 %v3417_v61, %v1608_v59  ;;  %3130 = vmatpush1.bf16.msra.mxu1 %v3129_v7  ;;  %v3135_v17 = vpack.c.bf16 %v1930_v24, %v1928_v10  ;;  %v3137_v26 = vpack.c.bf16 %v1929_v19, %v1927_v11  ;;  %v1935_v38 = vld [vmem:[#allocation11 + $0x2d0] sm:$0xff]  ;;  %v1944_v28 = vld [vmem:[#allocation11 + $0x538] sm:$0xff]  ;;  %v1945_v35 = vld [vmem:[#allocation11 + $0x5c8] sm:$0xff] }
 0x5a6   : > { %v1580_v32 = vadd.f32 %v1578_v21, %v1568_v42  ;;  %3132 = vmatprep.subr.bf16.mxu1 %v3131_v51  ;;  %v3139_v27 = vpack.c.bf16 %v1934_v23, %v1932_v25  ;;  %v3141_v36 = vpack.c.bf16 %v1933_v16, %v1931_v29  ;;  %v3143_v18 = vpack.c.bf16 %v1938_v34, %v1936_v33  ;;  %v1940_v21 = vld [vmem:[#allocation11 + $0x408] sm:$0xff]  ;;  %v1946_v31 = vld [vmem:[#allocation11 + $0x5d0] sm:$0xff]  ;;  %v1950_v40 = vld [vmem:[#allocation11 + $0x700] sm:$0xff] }
 0x5a7   : > { %v1591_v63 = vadd.f32 %v1589_v58, %v1579_v57  ;;  %3136 = vmatprep.subr.bf16.mxu0 %v3135_v17  ;;  %v3145_v42 = vpack.c.bf16 %v1937_v20, %v1935_v38  ;;  %v3147_v43 = vpack.c.bf16 %v1942_v41, %v1940_v21  ;;  %v3151_v22 = vpack.c.bf16 %v1946_v31, %v1944_v28  ;;  %v1948_v49 = vld [vmem:[#allocation11 + $0x668] sm:$0xff]  ;;  %v1952_v57 = vld [vmem:[#allocation11 + $0x798] sm:$0xff]  ;;  %v1954_v30 = vld [vmem:[#allocation11 + $0x830] sm:$0xff] }
 0x5a8   : > { %v1592_v44 = vadd.f32 %v1590_v48, %v1580_v32  ;;  %v3149_v48 = vpack.c.bf16 %v1941_v47, %v1939_v46  ;;  %v1943_v32 = vld [vmem:[#allocation11 + $0x530] sm:$0xff]  ;;  %v3155_v55 = vpack.c.bf16 %v1950_v40, %v1948_v49  ;;  %v3159_v59 = vpack.c.bf16 %v1954_v30, %v1952_v57  ;;  %v1953_v60 = vld [vmem:[#allocation11 + $0x828] sm:$0xff]  ;;  %v1960_v61 = vld [vmem:[#allocation11 + $0x9f8] sm:$0xff] }
 0x5a9   : > { %v1603_v5 = vadd.f32 %v1601_v1, %v1591_v63  ;;  %3134 = vmatpush1.bf16.msra.mxu1 %v3133_v15  ;;  %v3153_v53 = vpack.c.bf16 %v1945_v35, %v1943_v32  ;;  %v1958_v63 = vld [vmem:[#allocation11 + $0x960] sm:$0xff]  ;;  %v1959_v9 = vld [vmem:[#allocation11 + $0x9f0] sm:$0xff]  ;;  %v1961_v7 = vld [vmem:[#allocation11 + $0xa88] sm:$0xff] }
 0x5aa   : > { %v1604_v52 = vadd.f32 %v1602_v56, %v1592_v44  ;;  %v1947_v56 = vld [vmem:[#allocation11 + $0x660] sm:$0xff]  ;;  %v1949_v44 = vld [vmem:[#allocation11 + $0x6f8] sm:$0xff]  ;;  %v1964_v4 = vld [vmem:[#allocation11 + $0xb28] sm:$0xff]  ;;  %v3169_v13 = vpack.c.bf16 %v1961_v7, %v1959_v9 }
 0x5ab   : > { %v1615_v6 = vadd.f32 %v1613_v39, %v1603_v5  ;;  %v3157_v58 = vpack.c.bf16 %v1949_v44, %v1947_v56  ;;  %v1957_v5 = vld [vmem:[#allocation11 + $0x958] sm:$0xff]  ;;  %v1962_v39 = vld [vmem:[#allocation11 + $0xa90] sm:$0xff]  ;;  %v1966_v12 = vld [vmem:[#allocation11 + $0xbc0] sm:$0xff] }
 0x5ac   : > { %v1616_v3 = vadd.f32 %v1614_v54, %v1604_v52  ;;  %v1951_v52 = vld [vmem:[#allocation11 + $0x790] sm:$0xff]  ;;  %v1956_v54 = vld [vmem:[#allocation11 + $0x8c8] sm:$0xff]  ;;  %v3167_v8 = vpack.c.bf16 %v1962_v39, %v1960_v61  ;;  %v3171_v51 = vpack.c.bf16 %v1966_v12, %v1964_v4  ;;  %v1963_v14 = vld [vmem:[#allocation11 + $0xb20] sm:$0xff] }
 0x5ad   : > { %v3161_v62 = vpack.c.bf16 %v1953_v60, %v1951_v52  ;;  %v3163_v1 = vpack.c.bf16 %v1958_v63, %v1956_v54  ;;  %v1965_v15 = vld [vmem:[#allocation11 + $0xbb8] sm:$0xff]  ;;  %v1970_v24 = vld [vmem:[#allocation11 + $0xcf0] sm:$0xff]  ;;  %v1969_v25 = vld [vmem:[#allocation11 + $0xce8] sm:$0xff] }
 0x5ae   : > { %1757 = vmatprep.mubr.f32.mxu0 %v1616_v3  ;;  %v1955_v3 = vld [vmem:[#allocation11 + $0x8c0] sm:$0xff]  ;;  %v1968_v10 = vld [vmem:[#allocation11 + $0xc58] sm:$0xff]  ;;  %v3173_v11 = vpack.c.bf16 %v1965_v15, %v1963_v14  ;;  %v1967_v19 = vld [vmem:[#allocation11 + $0xc50] sm:$0xff] }
 0x5af   : > { %1758 = vmatmul.mubr.f32.vlgmr.msra.gmra.mrb[6].mxu0 %v1615_v6  ;;  %v3165_v6 = vpack.c.bf16 %v1957_v5, %v1955_v3  ;;  %v3175_v17 = vpack.c.bf16 %v1970_v24, %v1968_v10  ;;  %v1972_v23 = vld [vmem:[#allocation11 + $0xd88] sm:$0xff]  ;;  %v1976_v47 = vld [vmem:[#allocation11 + $0xeb8] sm:$0xff]  ;;  %v1978_v28 = vld [vmem:[#allocation11 + $0xf50] sm:$0xff] }
 0x5b0   : > { %3138 = vmatpush1.bf16.msra.mxu0 %v3137_v26  ;;  %v1974_v26 = vld [vmem:[#allocation11 + $0xe20] sm:$0xff]  ;;  %v1681_v16 = vld [vmem:[#allocation13 + $0x8] sm:$0x3]  ;;  %v3183_v31 = vpack.c.bf16 %v1978_v28, %v1976_v47  ;;  %v1984_v44 = vld [vmem:[#allocation11 + $0x1118] sm:$0xff] }
 0x5b1   : > { %3140 = vmatprep.subr.bf16.mxu0 %v3139_v27  ;;  %v3177_v27 = vpack.c.bf16 %v1969_v25, %v1967_v19  ;;  %v3179_v29 = vpack.c.bf16 %v1974_v26, %v1972_v23  ;;  %v1686_v33 = vrot.slane %v1681_v16, %v4103_v45  ;;  %v1690_v34 = vrot.slane %v1681_v16, %v4093_v50  ;;  %v1980_v35 = vld [vmem:[#allocation11 + $0xfe8] sm:$0xff]  ;;  %v1982_v49 = vld [vmem:[#allocation11 + $0x1080] sm:$0xff]  ;;  %v1986_v57 = vld [vmem:[#allocation11 + $0x11b0] sm:$0xff] }
 0x5b2   : > { %v3187_v40 = vpack.c.bf16 %v1982_v49, %v1980_v35  ;;  %v1983_v30 = vld [vmem:[#allocation11 + $0x1110] sm:$0xff]  ;;  %v1988_v52 = vld [vmem:[#allocation11 + $0x1248] sm:$0xff]  ;;  %v1990_v60 = vld [vmem:[#allocation11 + $0x12e0] sm:$0xff] }
 0x5b3   : > { %v3195_v63 = vpack.c.bf16 %v1990_v60, %v1988_v52  ;;  %v2077_v5 = vld [vmem:[#allocation11 + $0x88] sm:$0xff]  ;;  %v2079_v61 = vld [vmem:[#allocation11 + $0x120] sm:$0xff]  ;;  %v2081_v9 = vld [vmem:[#allocation11 + $0x1b8] sm:$0xff] }
 0x5b4   : > { %3142 = vmatpush1.bf16.msra.mxu0 %v3141_v36  ;;  %v2076_v39 = vld [vmem:[#allocation11 + $0x80] sm:$0xff]  ;;  %v2083_v7 = vld [vmem:[#allocation11 + $0x250] sm:$0xff]  ;;  %v2085_v14 = vld [vmem:[#allocation11 + $0x2e8] sm:$0xff] }
 0x5b5   : > { %3144 = vmatprep.subr.bf16.mxu0 %v3143_v18  ;;  %v3203_v12 = vpack.c.bf16 %v2083_v7, %v2081_v9  ;;  %v2087_v15 = vld [vmem:[#allocation11 + $0x380] sm:$0xff]  ;;  %v2089_v19 = vld [vmem:[#allocation11 + $0x418] sm:$0xff]  ;;  %v2091_v25 = vld [vmem:[#allocation11 + $0x4b0] sm:$0xff] }
 0x5b6   : > { %v3207_v24 = vpack.c.bf16 %v2087_v15, %v2085_v14  ;;  %v3211_v26 = vpack.c.bf16 %v2091_v25, %v2089_v19  ;;  %v2093_v16 = vld [vmem:[#allocation11 + $0x548] sm:$0xff]  ;;  %v2103_v28 = vld [vmem:[#allocation11 + $0x840] sm:$0xff]  ;;  %v2105_v35 = vld [vmem:[#allocation11 + $0x8d8] sm:$0xff] }
 0x5b7   : > { %v2101_v47 = vld [vmem:[#allocation11 + $0x7a8] sm:$0xff]  ;;  %v2107_v49 = vld [vmem:[#allocation11 + $0x970] sm:$0xff]  ;;  %v2110_v52 = vld [vmem:[#allocation11 + $0xa98] sm:$0xff] }
 0x5b8   : > { %3146 = vmatpush1.bf16.msra.mxu0 %v3145_v42  ;;  %v1971_v42 = vld [vmem:[#allocation11 + $0xd80] sm:$0xff]  ;;  %v2113_v60 = vld [vmem:[#allocation11 + $0xb38] sm:$0xff]  ;;  %v2122_v14 = vld [vmem:[#allocation11 + $0xe28] sm:$0xff] }
 0x5b9   : > { %3148 = vmatprep.subr.bf16.mxu0 %v3147_v43  ;;  %v1973_v43 = vld [vmem:[#allocation11 + $0xe18] sm:$0xff]  ;;  %v2125_v15 = vld [vmem:[#allocation11 + $0xec8] sm:$0xff] }
 0x5ba   : > { %v3181_v46 = vpack.c.bf16 %v1973_v43, %v1971_v42  ;;  %v2096_v43 = vld [vmem:[#allocation11 + $0x670] sm:$0xff]  ;;  %v2118_v9 = vld [vmem:[#allocation11 + $0xcf8] sm:$0xff] }
 0x5bb   : > { %v2121_v7 = vld [vmem:[#allocation11 + $0xd98] sm:$0xff] }
 0x5bc   : > { %3150 = vmatpush1.bf16.msra.mxu0 %v3149_v48  ;;  %v1975_v48 = vld [vmem:[#allocation11 + $0xeb0] sm:$0xff]  ;;  %v2126_v19 = vld [vmem:[#allocation11 + $0xf58] sm:$0xff] }
 0x5bd   : > { %3152 = vmatprep.subr.bf16.mxu0 %v3151_v22  ;;  %v1977_v22 = vld [vmem:[#allocation11 + $0xf48] sm:$0xff]  ;;  %v2129_v25 = vld [vmem:[#allocation11 + $0xff8] sm:$0xff] }
 0x5be   : > { %v3185_v32 = vpack.c.bf16 %v1977_v22, %v1975_v48  ;;  %v3223_v48 = vpack.c.bf16 %v2103_v28, %v2101_v47  ;;  %v2100_v22 = vld [vmem:[#allocation11 + $0x7a0] sm:$0xff] }
 0x5c0   : > { %3154 = vmatpush1.bf16.msra.mxu0 %v3153_v53  ;;  %v1979_v53 = vld [vmem:[#allocation11 + $0xfe0] sm:$0xff] }
 0x5c1   : > { %3156 = vmatprep.subr.bf16.mxu0 %v3155_v55  ;;  %v1981_v55 = vld [vmem:[#allocation11 + $0x1078] sm:$0xff] }
 0x5c2   : > { %v3189_v56 = vpack.c.bf16 %v1981_v55, %v1979_v53  ;;  %v3227_v53 = vpack.c.bf16 %v2107_v49, %v2105_v35  ;;  %v2104_v55 = vld [vmem:[#allocation11 + $0x8d0] sm:$0xff] }
 0x5c4   : > { %3158 = vmatpush1.bf16.msra.mxu0 %v3157_v58  ;;  %v3191_v58 = vpack.c.bf16 %v1986_v57, %v1984_v44  ;;  %v2109_v44 = vld [vmem:[#allocation11 + $0xa08] sm:$0xff]  ;;  %v2111_v57 = vld [vmem:[#allocation11 + $0xaa0] sm:$0xff] }
 0x5c5   : > { %3160 = vmatprep.subr.bf16.mxu0 %v3159_v59  ;;  %v1985_v59 = vld [vmem:[#allocation11 + $0x11a8] sm:$0xff] }
 0x5c6   : > { %v3193_v54 = vpack.c.bf16 %v1985_v59, %v1983_v30  ;;  %v2108_v59 = vld [vmem:[#allocation11 + $0xa00] sm:$0xff] }
 0x5c8   : > { %3162 = vmatpush1.bf16.msra.mxu0 %v3161_v62  ;;  %v1987_v62 = vld [vmem:[#allocation11 + $0x1240] sm:$0xff] }
 0x5c9   : > { %3164 = vmatprep.subr.bf16.mxu0 %v3163_v1  ;;  %v1989_v1 = vld [vmem:[#allocation11 + $0x12d8] sm:$0xff] }
 0x5ca   : > { %v3197_v3 = vpack.c.bf16 %v1989_v1, %v1987_v62  ;;  %v2112_v1 = vld [vmem:[#allocation11 + $0xb30] sm:$0xff] }
 0x5cc   : > { %3166 = vmatpush1.bf16.msra.mxu0 %v3165_v6  ;;  %v3199_v6 = vpack.c.bf16 %v2079_v61, %v2077_v5  ;;  %v2117_v5 = vld [vmem:[#allocation11 + $0xc68] sm:$0xff]  ;;  %v2119_v61 = vld [vmem:[#allocation11 + $0xd00] sm:$0xff] }
 0x5cd   : > { %3168 = vmatprep.subr.bf16.mxu0 %v3167_v8  ;;  %v2078_v8 = vld [vmem:[#allocation11 + $0x118] sm:$0xff] }
 0x5ce   : > { %v3201_v4 = vpack.c.bf16 %v2078_v8, %v2076_v39  ;;  %3200 = vmatprep.subr.bf16.mxu1 %v3199_v6  ;;  %v3239_v6 = vpack.c.bf16 %v2119_v61, %v2117_v5  ;;  %v2116_v8 = vld [vmem:[#allocation11 + $0xc60] sm:$0xff]  ;;  %v2226_v61 = vld [vmem:[#allocation11 + $0x128] sm:$0xff] }
 0x5d0   : > { %3170 = vmatpush1.bf16.msra.mxu0 %v3169_v13  ;;  %v2080_v13 = vld [vmem:[#allocation11 + $0x1b0] sm:$0xff] }
 0x5d1   : > { %3172 = vmatprep.subr.bf16.mxu0 %v3171_v51  ;;  %v2082_v51 = vld [vmem:[#allocation11 + $0x248] sm:$0xff] }
 0x5d2   : > { %v3205_v10 = vpack.c.bf16 %v2082_v51, %v2080_v13  ;;  %v2120_v51 = vld [vmem:[#allocation11 + $0xd90] sm:$0xff] }
 0x5d4   : > { %3174 = vmatpush1.bf16.msra.mxu0 %v3173_v11  ;;  %v2084_v11 = vld [vmem:[#allocation11 + $0x2e0] sm:$0xff] }
 0x5d5   : > { %3176 = vmatprep.subr.bf16.mxu0 %v3175_v17  ;;  %v2086_v17 = vld [vmem:[#allocation11 + $0x378] sm:$0xff] }
 0x5d6   : > { %v3209_v23 = vpack.c.bf16 %v2086_v17, %v2084_v11  ;;  %v2124_v17 = vld [vmem:[#allocation11 + $0xec0] sm:$0xff] }
 0x5d8   : > { %3178 = vmatpush1.bf16.msra.mxu0 %v3177_v27  ;;  %v2088_v27 = vld [vmem:[#allocation11 + $0x410] sm:$0xff] }
 0x5d9   : > { %3180 = vmatprep.subr.bf16.mxu0 %v3179_v29  ;;  %v2090_v29 = vld [vmem:[#allocation11 + $0x4a8] sm:$0xff] }
 0x5dc   : > { %3182 = vmatpush1.bf16.msra.mxu0 %v3181_v46  ;;  %v2098_v46 = vld [vmem:[#allocation11 + $0x708] sm:$0xff] }
 0x5dd   : > { %3184 = vmatprep.subr.bf16.mxu0 %v3183_v31  ;;  %v3221_v31 = vpack.c.bf16 %v2098_v46, %v2096_v43 }
 0x5e0   : > { %3186 = vmatpush1.bf16.msra.mxu0 %v3185_v32  ;;  %v2102_v32 = vld [vmem:[#allocation11 + $0x838] sm:$0xff] }
 0x5e1   : > { %3188 = vmatprep.subr.bf16.mxu0 %v3187_v40  ;;  %v3225_v40 = vpack.c.bf16 %v2102_v32, %v2100_v22 }
 0x5e4   : > { %3190 = vmatpush1.bf16.msra.mxu0 %v3189_v56  ;;  %v2106_v56 = vld [vmem:[#allocation11 + $0x968] sm:$0xff] }
 0x5e5   : > { %3192 = vmatprep.subr.bf16.mxu0 %v3191_v58  ;;  %v3229_v30 = vpack.c.bf16 %v2106_v56, %v2104_v55  ;;  %v3231_v58 = vpack.c.bf16 %v2111_v57, %v2109_v44 }
 0x5e8   : > { %3194 = vmatpush1.bf16.msra.mxu0 %v3193_v54  ;;  %v2115_v54 = vld [vmem:[#allocation11 + $0xbd0] sm:$0xff] }
 0x5e9   : > { %3196 = vmatprep.subr.bf16.mxu0 %v3195_v63  ;;  %v3233_v63 = vpack.c.bf16 %v2110_v52, %v2108_v59  ;;  %v3235_v62 = vpack.c.bf16 %v2115_v54, %v2113_v60  ;;  %v2139_v52 = vld [vmem:[#allocation11 + $0x12f0] sm:$0xff]  ;;  %v2138_v54 = vld [vmem:[#allocation11 + $0x12e8] sm:$0xff] }
 0x5ec   : > { %3198 = vmatpush1.bf16.msra.mxu0 %v3197_v3  ;;  %v2114_v3 = vld [vmem:[#allocation11 + $0xbc8] sm:$0xff] }
 0x5ed   : > { %v3237_v39 = vpack.c.bf16 %v2114_v3, %v2112_v1  ;;  %v2242_v1 = vld [vmem:[#allocation11 + $0xaa8] sm:$0xff]  ;;  %v2225_v3 = vld [vmem:[#allocation11 + $0x90] sm:$0xff] }
 0x682   : > { %v1759_v36 = vpop.f32.mrb[6].mxu0 }
 0x683   : > { %v1760_v18 = vadd.f32 %v1759_v36, %v1686_v33  ;;  %v1761_v38 = vpop.f32.mrb[7].mxu0  ;;  %v2095_v33 = vld [vmem:[#allocation11 + $0x5e0] sm:$0xff] }
 0x684   : > { %v1762_v20 = vadd.f32 %v1761_v38, %v1690_v34  ;;  %v3213_v34 = vpack.c.bf16 %v2090_v29, %v2088_v27  ;;  %v3215_v36 = vpack.c.bf16 %v2095_v33, %v2093_v16  ;;  %v2094_v38 = vld [vmem:[#allocation11 + $0x5d8] sm:$0xff]  ;;  %v2128_v29 = vld [vmem:[#allocation11 + $0xff0] sm:$0xff]  ;;  %v2130_v16 = vld [vmem:[#allocation11 + $0x1088] sm:$0xff] }
 0x685   : > { %v1764_v41 = vmax.f32 %v1760_v18, 0.0  ;;  %v2092_v18 = vld [vmem:[#allocation11 + $0x540] sm:$0xff]  ;;  %v2133_v33 = vld [vmem:[#allocation11 + $0x1128] sm:$0xff] }
 0x686   : > { %v1765_v21 = vmax.f32 %v1762_v20, 0.0  ;;  %v2097_v20 = vld [vmem:[#allocation11 + $0x678] sm:$0xff] }
 0x688   : > { %1906 = vmatprep.mubr.f32.mxu1 %v1765_v21  ;;  %v2099_v21 = vld [vmem:[#allocation11 + $0x710] sm:$0xff] }
 0x689   : > { %1907 = vmatmul.mubr.f32.vlgmr.msra.gmra.mrb[6].mxu1 %v1764_v41  ;;  %v3217_v41 = vpack.c.bf16 %v2094_v38, %v2092_v18  ;;  %v3219_v42 = vpack.c.bf16 %v2099_v21, %v2097_v20  ;;  %v1830_v38 = vld [vmem:[#allocation13 + $0xe] sm:$0x3] }
 0x68a   : > { %3202 = vmatpush1.bf16.msra.mxu1 %v3201_v4  ;;  %v2123_v4 = vld [vmem:[#allocation11 + $0xe30] sm:$0xff]  ;;  %v1835_v20 = vrot.slane %v1830_v38, %v4103_v45  ;;  %v1839_v21 = vrot.slane %v1830_v38, %v4093_v50 }
 0x68b   : > { %3204 = vmatprep.subr.bf16.mxu1 %v3203_v12  ;;  %v3241_v12 = vpack.c.bf16 %v2118_v9, %v2116_v8  ;;  %v3243_v13 = vpack.c.bf16 %v2123_v4, %v2121_v7  ;;  %v3265_v8 = vpack.c.bf16 %v2226_v61, %v2225_v3  ;;  %v2227_v7 = vld [vmem:[#allocation11 + $0x1c0] sm:$0xff]  ;;  %v2228_v4 = vld [vmem:[#allocation11 + $0x258] sm:$0xff] }
 0x68e   : > { %3206 = vmatpush1.bf16.msra.mxu1 %v3205_v10  ;;  %v2127_v10 = vld [vmem:[#allocation11 + $0xf60] sm:$0xff] }
 0x68f   : > { %3208 = vmatprep.subr.bf16.mxu1 %v3207_v24  ;;  %v3245_v24 = vpack.c.bf16 %v2122_v14, %v2120_v51  ;;  %v3247_v11 = vpack.c.bf16 %v2127_v10, %v2125_v15  ;;  %v3269_v51 = vpack.c.bf16 %v2228_v4, %v2227_v7  ;;  %v2229_v15 = vld [vmem:[#allocation11 + $0x2f0] sm:$0xff]  ;;  %v2230_v10 = vld [vmem:[#allocation11 + $0x388] sm:$0xff]  ;;  %v2331_v7 = vld [vmem:[#allocation10 + $0x40] sm:$0xff] }
 0x690   : > { %v2332_v4 = vld [vmem:[#allocation10 + $0x58] sm:$0xff] }
 0x692   : > { %3210 = vmatpush1.bf16.msra.mxu1 %v3209_v23  ;;  %v2131_v23 = vld [vmem:[#allocation11 + $0x1090] sm:$0xff] }
 0x693   : > { %3212 = vmatprep.subr.bf16.mxu1 %v3211_v26  ;;  %v3249_v26 = vpack.c.bf16 %v2126_v19, %v2124_v17  ;;  %v3251_v27 = vpack.c.bf16 %v2131_v23, %v2129_v25  ;;  %v3273_v17 = vpack.c.bf16 %v2230_v10, %v2229_v15  ;;  %v2231_v25 = vld [vmem:[#allocation11 + $0x420] sm:$0xff]  ;;  %v2232_v23 = vld [vmem:[#allocation11 + $0x4b8] sm:$0xff]  ;;  %v2333_v10 = vld [vmem:[#allocation13 + $0x15] sm:$0x1] }
 0x696   : > { %3214 = vmatpush1.bf16.msra.mxu1 %v3213_v34  ;;  %v2135_v34 = vld [vmem:[#allocation11 + $0x11c0] sm:$0xff] }
 0x697   : > { %3216 = vmatprep.subr.bf16.mxu1 %v3215_v36  ;;  %v3253_v36 = vpack.c.bf16 %v2130_v16, %v2128_v29  ;;  %v3255_v18 = vpack.c.bf16 %v2135_v34, %v2133_v33  ;;  %v3277_v29 = vpack.c.bf16 %v2232_v23, %v2231_v25  ;;  %v2233_v33 = vld [vmem:[#allocation11 + $0x550] sm:$0xff]  ;;  %v2234_v34 = vld [vmem:[#allocation11 + $0x5e8] sm:$0xff] }
 0x698   : > { %v3281_v38 = vpack.c.bf16 %v2234_v34, %v2233_v33 }
 0x69a   : > { %3218 = vmatpush1.bf16.msra.mxu1 %v3217_v41 }
 0x69b   : > { %3220 = vmatprep.subr.bf16.mxu1 %v3219_v42 }
 0x69e   : > { %3222 = vmatpush1.bf16.msra.mxu1 %v3221_v31 }
 0x69f   : > { %3224 = vmatprep.subr.bf16.mxu1 %v3223_v48 }
 0x6a2   : > { %3226 = vmatpush1.bf16.msra.mxu1 %v3225_v40 }
 0x6a3   : > { %3228 = vmatprep.subr.bf16.mxu1 %v3227_v53 }
 0x6a6   : > { %3230 = vmatpush1.bf16.msra.mxu1 %v3229_v30  ;;  %v2132_v30 = vld [vmem:[#allocation11 + $0x1120] sm:$0xff] }
 0x6a7   : > { %3232 = vmatprep.subr.bf16.mxu1 %v3231_v58  ;;  %v2134_v58 = vld [vmem:[#allocation11 + $0x11b8] sm:$0xff] }
 0x6a8   : > { %v3257_v59 = vpack.c.bf16 %v2134_v58, %v2132_v30  ;;  %v2256_v30 = vld [vmem:[#allocation11 + $0x12f8] sm:$0xff]  ;;  %v2239_v58 = vld [vmem:[#allocation11 + $0x8e0] sm:$0xff] }
 0x6aa   : > { %3234 = vmatpush1.bf16.msra.mxu1 %v3233_v63 }
 0x6ab   : > { %3236 = vmatprep.subr.bf16.mxu1 %v3235_v62  ;;  %v2241_v62 = vld [vmem:[#allocation11 + $0xa10] sm:$0xff] }
 0x6ac   : > { %v3263_v5 = vpack.c.bf16 %v2242_v1, %v2241_v62 }
 0x6ae   : > { %3238 = vmatpush1.bf16.msra.mxu1 %v3237_v39  ;;  %v2243_v39 = vld [vmem:[#allocation11 + $0xb40] sm:$0xff]  ;;  %3264 = vmatprep.subr.bf16.mxu0 %v3263_v5 }
 0x6af   : > { %3240 = vmatprep.subr.bf16.mxu1 %v3239_v6  ;;  %v2244_v6 = vld [vmem:[#allocation11 + $0xbd8] sm:$0xff] }
 0x6b0   : > { %v3267_v9 = vpack.c.bf16 %v2244_v6, %v2243_v39  ;;  %v3720_v39 = vmov 0.0|0.0   ;;  %v2329_v6 = vld [vmem:[#allocation10 + $0x10] sm:$0xff] }
 0x6b2   : > { %3242 = vmatpush1.bf16.msra.mxu1 %v3241_v12  ;;  %v2245_v12 = vld [vmem:[#allocation11 + $0xc70] sm:$0xff] }
 0x6b3   : > { %3244 = vmatprep.subr.bf16.mxu1 %v3243_v13  ;;  %v2246_v13 = vld [vmem:[#allocation11 + $0xd08] sm:$0xff] }
 0x6b4   : > { %v3271_v14 = vpack.c.bf16 %v2246_v13, %v2245_v12  ;;  %v2257_v12 = vld [vmem:[#allocation13 + $0x14] sm:$0x1] }
 0x6b6   : > { %3246 = vmatpush1.bf16.msra.mxu1 %v3245_v24  ;;  %v2247_v24 = vld [vmem:[#allocation11 + $0xda0] sm:$0xff] }
 0x6b7   : > { %3248 = vmatprep.subr.bf16.mxu1 %v3247_v11  ;;  %v2248_v11 = vld [vmem:[#allocation11 + $0xe38] sm:$0xff] }
 0x6b8   : > { %v3275_v19 = vpack.c.bf16 %v2248_v11, %v2247_v24 }
 0x6ba   : > { %3250 = vmatpush1.bf16.msra.mxu1 %v3249_v26  ;;  %v2249_v26 = vld [vmem:[#allocation11 + $0xed0] sm:$0xff] }
 0x6bb   : > { %3252 = vmatprep.subr.bf16.mxu1 %v3251_v27  ;;  %v2250_v27 = vld [vmem:[#allocation11 + $0xf68] sm:$0xff] }
 0x6bc   : > { %v3279_v16 = vpack.c.bf16 %v2250_v27, %v2249_v26 }
 0x6be   : > { %3254 = vmatpush1.bf16.msra.mxu1 %v3253_v36  ;;  %v2251_v36 = vld [vmem:[#allocation11 + $0x1000] sm:$0xff] }
 0x6bf   : > { %3256 = vmatprep.subr.bf16.mxu1 %v3255_v18  ;;  %v2252_v18 = vld [vmem:[#allocation11 + $0x1098] sm:$0xff] }
 0x6c2   : > { %3258 = vmatpush1.bf16.msra.mxu1 %v3257_v59 }
 0x75c   : > { %v1908_v41 = vpop.f32.mrb[6].mxu1 }
 0x75d   : > { %v1909_v42 = vadd.f32 %v1908_v41, %v1835_v20  ;;  %v1910_v43 = vpop.f32.mrb[7].mxu1  ;;  %v3283_v20 = vpack.c.bf16 %v2252_v18, %v2251_v36  ;;  %v2236_v41 = vld [vmem:[#allocation11 + $0x718] sm:$0xff] }
 0x75e   : > { %v1911_v46 = vadd.f32 %v1910_v43, %v1839_v21  ;;  %v2235_v21 = vld [vmem:[#allocation11 + $0x680] sm:$0xff]  ;;  %v2254_v43 = vld [vmem:[#allocation11 + $0x11c8] sm:$0xff] }
 0x75f   : > { %v1913_v47 = vadd.f32 %v1909_v42, %v4296_v2  ;;  %v2137_v2 = vld [vmem:[#allocation11 + $0x1258] sm:$0xff]  ;;  %v2253_v42 = vld [vmem:[#allocation11 + $0x1130] sm:$0xff] }
 0x760   : > { %v1914_v28 = vadd.f32 %v1911_v46, %v4299_v37  ;;  %v2136_v37 = vld [vmem:[#allocation11 + $0x1250] sm:$0xff]  ;;  %v3259_v60 = vpack.c.bf16 %v2139_v52, %v2137_v2  ;;  %v3285_v46 = vpack.c.bf16 %v2236_v41, %v2235_v21  ;;  %v2240_v2 = vld [vmem:[#allocation11 + $0x978] sm:$0xff] }
 0x761   : > { %v1915_v31 = vrot.slane %v1913_v47, 4  ;;  %v3261_v63 = vpack.c.bf16 %v2138_v54, %v2136_v37  ;;  %v3293_v52 = vpack.c.bf16 %v2240_v2, %v2239_v58  ;;  %v2140_v37 = vld [vmem:[#allocation13 + $0x12] sm:$0x3] }
 0x762   : > { %v1921_v48 = vrot.slane %v1914_v28, 4  ;;  %3260 = vmatprep.subr.bf16.mxu1 %v3259_v60  ;;  %v2145_v60 = vrot.slane %v2140_v37, %v4103_v45  ;;  %v2149_v54 = vrot.slane %v2140_v37, %v4093_v50 }
 0x763   : > { %v1916_v22 = vmax.f32 %v1913_v47, %v1915_v31  ;;  %3262 = vmatpush1.bf16.msra.mxu1 %v3261_v63  ;;  %v3287_v47 = vpack.c.bf16 %v2254_v43, %v2253_v42 }
 0x764   : > { %v1922_v32 = vmax.f32 %v1914_v28, %v1921_v48  ;;  %v1991_v28 = vld [vmem:[#allocation13 + $0x10] sm:$0x3] }
 0x765   : > { %v1917_v35 = vrot.slane %v1916_v22, 2  ;;  %v1996_v31 = vrot.slane %v1991_v28, %v4103_v45  ;;  %v2000_v48 = vrot.slane %v1991_v28, %v4093_v50  ;;  %v3299_v45 = vpack.c.bf16 %v2332_v4, %v2331_v7 }
 0x766   : > { %v1923_v49 = vrot.slane %v1922_v32, 2 }
 0x767   : > { %v1918_v40 = vmax.f32 %v1916_v22, %v1917_v35 }
 0x768   : > { %v1924_v53 = vmax.f32 %v1922_v32, %v1923_v49 }
 0x769   : > { %v1919_v55 = vrot.slane %v1918_v40, 1 }
 0x76a   : > { %v1925_v56 = vrot.slane %v1924_v53, 1 }
 0x76b   : > { %v1920_v57 = vmax.f32 %v1918_v40, %v1919_v55  ;;  %v2237_v55 = vld [vmem:[#allocation11 + $0x7b0] sm:$0xff] }
 0x76c   : > { %v1926_v44 = vmax.f32 %v1924_v53, %v1925_v56  ;;  %v2238_v56 = vld [vmem:[#allocation11 + $0x848] sm:$0xff] }
 0x76e   : > { %2067 = vmatprep.mubr.f32.mxu0 %v1926_v44  ;;  %v3289_v44 = vpack.c.bf16 %v2238_v56, %v2237_v55 }
 0x76f   : > { %2068 = vmatmul.mubr.f32.vlgmr.msra.gmra.mrb[8].mxu0 %v1920_v57  ;;  %v2255_v57 = vld [vmem:[#allocation11 + $0x1260] sm:$0xff] }
 0x770   : > { %3266 = vmatpush3.bf16.msra.mxu0 %v3265_v8  ;;  %v3291_v59 = vpack.c.bf16 %v2256_v30, %v2255_v57  ;;  %v2330_v8 = vld [vmem:[#allocation10 + $0x28] sm:$0xff] }
 0x771   : > { %3268 = vmatprep.subr.bf16.mxu0 %v3267_v9  ;;  %v3296_v9 = vpack.c.bf16 %v2330_v8, %v2329_v6 }
 0x774   : > { %3270 = vmatpush3.bf16.msra.mxu0 %v3269_v51 }
 0x775   : > { %3272 = vmatprep.subr.bf16.mxu0 %v3271_v14 }
 0x778   : > { %3274 = vmatpush3.bf16.msra.mxu0 %v3273_v17 }
 0x779   : > { %3276 = vmatprep.subr.bf16.mxu0 %v3275_v19 }
 0x77c   : > { %3278 = vmatpush3.bf16.msra.mxu0 %v3277_v29 }
 0x77d   : > { %3280 = vmatprep.subr.bf16.mxu0 %v3279_v16 }
 0x780   : > { %3282 = vmatpush3.bf16.msra.mxu0 %v3281_v38 }
 0x781   : > { %3284 = vmatprep.subr.bf16.mxu0 %v3283_v20 }
 0x784   : > { %3286 = vmatpush3.bf16.msra.mxu0 %v3285_v46 }
 0x785   : > { %3288 = vmatprep.subr.bf16.mxu0 %v3287_v47 }
 0x788   : > { %3290 = vmatpush3.bf16.msra.mxu0 %v3289_v44 }
 0x789   : > { %3292 = vmatprep.subr.bf16.mxu0 %v3291_v59 }
 0x78c   : > { %3294 = vmatpush3.bf16.msra.mxu0 %v3293_v52 }
 0x78d   : > { %3295 = vmatprep.subr.bf16.mxu0 %v3720_v39 }
 0x842   : > { %v2069_v22 = vpop.f32.mrb[8].mxu0 }
 0x843   : > { %v2070_v32 = vadd.f32 %v2069_v22, %v1996_v31  ;;  %v2071_v35 = vpop.f32.mrb[9].mxu0 }
 0x844   : > { %v2072_v49 = vadd.f32 %v2071_v35, %v2000_v48 }
 0x845   : > { %v2074_v53 = vmax.f32 %v2070_v32, 0.0 }
 0x846   : > { %v2075_v40 = vmax.f32 %v2072_v49, 0.0 }
 0x848   : > { %2216 = vmatprep.mubr.f32.mxu1 %v2075_v40 }
 0x849   : > { %2217 = vmatmul.mubr.f32.vlgmr.msra.gmra.mrb[8].mxu1 %v2074_v53 }
 0x91c   : > { %v2218_v63 = vpop.f32.mrb[8].mxu1 }
 0x91d   : > { %v2219_v62 = vadd.f32 %v2218_v63, %v2145_v60  ;;  %v2220_v1 = vpop.f32.mrb[9].mxu1 }
 0x91e   : > { %v2221_v3 = vadd.f32 %v2220_v1, %v2149_v54 }
 0x91f   : > { %v2223_v61 = vmax.f32 %v2219_v62, 0.0 }
 0x920   : > { %v2224_v5 = vmax.f32 %v2221_v3, 0.0 }
 0x922   : > { %2322 = vmatprep.mubr.f32.mxu0 %v2224_v5 }
 0x923   : > { %2323 = vmatmul.mubr.f32.vlgmr.msra.gmra.mrb[10].mxu0 %v2223_v61 }
 0x924   : > { %3297 = vmatpush3.bf16.msra.mxu0 %v3296_v9  ;;  %2676 = vmatprep.mubr.msk.f32.mxu0 %vm3721_vm1, %v3719_v0 }
 0x925   : > { %3298 = vmatprep.subr.bf16.mxu0 %v3720_v39 }
 0x928   : > { %3300 = vmatpush3.bf16.msra.mxu0 %v3299_v45 }
 0x9f6   : > { %v2660_v50 = vpop.f32.mrb[10].mxu0 }
 0x9f7   : > { %v2661_v13 = vpop.f32.mrb[11].mxu0 }
 0x9f8   : > { %v2662_v51 = vadd.f32 %v2661_v13, %v2660_v50 }
 0x9fa   : > { %v2325_v14 = vadd.f32 %v2662_v51, %v2257_v12 }
 0x9fc   : > { %v2328_v15 = vmax.f32 %v2325_v14, 0.0 }
 0x9fe   : > { %2677 = vmatmul.mubr.msk.f32.vlgmr.msra.gmra.mrb[12].mxu0 %vm468_vm0, %v2328_v15 }
 0xad1   : > { %v2403_v24 = vpop.f32.mrb[12].mxu0 }
 0xad2   : > { %v2404_v11 = vadd.f32 %v2403_v24, %v2333_v10  ;;  %v2678_v17 = vpop.f32.mrb[13].mxu0 }
 0xad4   : > { %2407 = vst [vmem:[%s446_s18] sm:$0x1] %v2404_v11 }
 0xad5   : > { %3635 = shalt.err (!%p3632_p5)
}
 0xad6   : > { %s3636_s19 = scalar_lea.hbm %s4366_s5, 16  ;;  %s3640_s20 = scalar_lea.hbm %s4417_s7, 32 }
 0xad7   : > { %p3637_p3 = scmp.ne.s32.totalorder %s4366_s5, %s3636_s19  ;;  %p3641_p0 = scmp.lt.u32.totalorder %s4366_s5, %s4417_s7 }
 0xad8   : > { %p3642_p8 = scmp.lt.u32.totalorder %s3640_s20, %s3636_s19  ;;  %p3644_p9 = scmp.lt.u32.totalorder %s3636_s19, %s4366_s5 }
 0xad9   : > { %p3638_p1 = pnand %p3637_p3, %p4461_p10 }
 0xada   : > { %p3643_p13 = por %p3642_p8, %p3641_p0 }
 0xadb   : > { %p3639_p11 = pneg %p3638_p1 }
 0xadc   : > { %p3645_p12 = por %p3644_p9, %p3643_p13 }
 0xade   : > { %p3646_p2 = pnand %p3645_p12, %p3639_p11 }
 0xae0   : > { %3649 = shalt.err (!%p3646_p2)
}
 0xae1   : > { %3321 = dma.vmem_to_hbm [thread:$0]  (%p4461_p10), %s4368_s22, 16, %s4366_s5, %s2409_s12  }
 0xae2 PF: > { %s2433_s15 = sand.u32 1, %s3692_s24   ;;  %p4462_p7 = scmp.ne.s32.totalorder %s4437_s8, 0 }
 0xae3   : > { %p4463_p6 = scmp.ge.s32.totalorder %s3704_s27, 2  ;;  %s2434_s4 = scalar_lea.sflag [#allocation4], %s2433_s15 }
 0xae5   : > { %p3347_p4 = pnand %p4463_p6, %p4462_p7 }
 0xae7   : > { %3687 = dma.done.wait (!%p3347_p4), %s2434_s4, 16  }
 0xae8   : > { %3689 = vsyncadd (!%p3347_p4), %s2434_s4, 4294967280  ;;  %s4464_s27 = sld [smem:[#allocation22_spill]]  ;;  %s4465_s1 = sld [smem:[#allocation21_spill]] }
 0xae9   : > { %s4466_s26 = sld [smem:[#allocation23_spill]]  ;;  %s4467_s24 = smov %s3696_s25 }
 0xaee   : > { %p27_p5 = scmp.ge.s32.totalorder %s4464_s27, 4   ;;  %s4468_s25 = smov %s4465_s1 }
 0xaf0   :  { %29 = sbr.rel (!%p27_p5) target bundleno = 14 (0xe), region = 149 }
 0xaf7   :  { %2438 = vsyncpa [#allocation3], 1 }
 0xaf8   :  { %2440 = vsyncpa [#allocation3 + $0x1], 1 }
 0xaf9   :  { %2441 = vsyncpa [#allocation6], 1 }
 0xafa   :  { %2443 = vsyncpa [#allocation6 + $0x1], 1 }
 0xafb   :  { %2444 = vsyncpa [#allocation9], 1 }
 0xafc   :  { %2446 = vsyncpa [#allocation9 + $0x1], 1 }
 0xafd   :  { %2447 = vsyncpa [#allocation12], 1 }
 0xafe   :  { %2448 = vsyncpa [#allocation4], 1 }
 0xaff   :  { %2450 = vsyncpa [#allocation4 + $0x1], 1 }

</bundles_post_ra>
